<compile_context>
chip_gen: v7x
topology: tpu7x:2x2x1
jax: 0.10.0
libtpu: 0.0.40
codegen_flags: <defaults>
</compile_context>

<pallas_src>
import functools
import math

import jax
import jax.numpy as jnp
from jax.experimental import pallas as pl
from jax.experimental.pallas import tpu as pltpu


HIDDEN = 1024  # l2 output width, fixed by GammaNetwork.


def _round_up(x, m):
    return ((x + m - 1) // m) * m


def _pick_chunk(tile_b):
    """Largest power-of-two hidden chunk with CHUNK*TILE_B <= 32768 (~32 f32 vregs)."""
    target = max(8, 32768 // tile_b)
    chunk = 8
    while chunk * 2 <= target and chunk * 2 <= HIDDEN:
        chunk *= 2
    return chunk


def _gamma_network_kernel(scal_ref, w2h_ref, b2h_ref, w3h_ref, t_ref, gamma_ref,
                          *, chunk):
    """Fused GammaNetwork forward on one (1, TILE_B) tile of t values.

    scal_ref : SMEM (4,) f32       = [softplus(w1), b1, scale, offset]
    w2h_ref  : VMEM (HIDDEN, 1)    = 0.5 * softplus(l2.weight)   (resident)
    b2h_ref  : VMEM (HIDDEN, 1)    = 0.5 * l2.bias               (resident)
    w3h_ref  : VMEM (HIDDEN, 1)    = 0.5 * softplus(l3.weight)   (resident)
    t_ref    : VMEM (1, TILE_B)    batch along lanes
    gamma_ref: VMEM (1, TILE_B)

    gamma = scale * (l1(t) + sum_h tanh(l1(t)*w2h + b2h) * w3h) + offset
    with scale/offset folding gamma_0/1, gamma_tilde(0/1), b3 and 0.5*sum(softplus(w3)).
    """
    sp_w1 = scal_ref[0]
    b1 = scal_ref[1]
    scale = scal_ref[2]
    offset = scal_ref[3]

    t_row = t_ref[...]                               # (1, TILE_B)
    l1 = t_row * sp_w1 + b1                          # (1, TILE_B)   VPU FMA

    # Chunked hidden-dim accumulation: per-chunk intermediates stay in vregs; the
    # per-chunk weight slices are static (8,128)-aligned sublane windows of the
    # resident (HIDDEN, 1) columns.
    acc = jnp.zeros_like(l1)                         # (1, TILE_B) f32 accumulator
    for c in range(HIDDEN // chunk):                 # fully unrolled straight-line code
        lo, hi = c * chunk, (c + 1) * chunk
        zh = l1 * w2h_ref[lo:hi, :] + b2h_ref[lo:hi, :]          # (CHUNK, TILE_B) VPU
        th = jnp.tanh(zh) * w3h_ref[lo:hi, :]                    # EUP tanh + VPU mul
        acc = acc + jnp.sum(th.astype(jnp.float32),
                            axis=0, keepdims=True)               # XLU sublane reduce

    gamma_ref[...] = (scale * (l1 + acc) + offset).astype(gamma_ref.dtype)


def gamma_network_forward(t, params, *, tile_b=None):
    """gamma(t) for t of shape (...,) or (..., 1); returns the same shape as t."""
    orig_shape = t.shape
    t_flat = t.reshape(-1).astype(jnp.float32)
    batch = t_flat.shape[0]

    # ---- Parameter preprocessing (tiny, once per call, plain XLA) -------------------
    sp_w1 = jax.nn.softplus(params["w1"]).reshape(())
    b1 = params["b1"].reshape(())
    sp_w2 = jax.nn.softplus(params["w2"]).reshape(HIDDEN)
    b2 = params["b2"].reshape(HIDDEN)
    sp_w3 = jax.nn.softplus(params["w3"]).reshape(HIDDEN)
    b3 = params["b3"].reshape(())
    gamma_0 = params["gamma_0"].reshape(())
    gamma_1 = params["gamma_1"].reshape(())

    # Batch-independent endpoints gamma_tilde(0), gamma_tilde(1) -- hoisted out of the
    # kernel entirely (item 1 of the review).
    def gamma_tilde_scalar(x):
        l1 = sp_w1 * x + b1
        sig = jax.nn.sigmoid(sp_w2 * l1 + b2)
        return l1 + jnp.sum(sig * sp_w3) + b3

    gt0 = gamma_tilde_scalar(jnp.float32(0.0))
    gt1 = gamma_tilde_scalar(jnp.float32(1.0))

    # tanh rewrite: sigmoid(z) = 0.5*tanh(0.5*z) + 0.5; fold the halves into the weights
    # and the "+0.5*sum(sp_w3)" constant (plus b3, gamma_0, gamma_tilde(0)) into offset.
    w2h = (0.5 * sp_w2).reshape(HIDDEN, 1).astype(jnp.float32)
    b2h = (0.5 * b2).reshape(HIDDEN, 1).astype(jnp.float32)
    w3h = (0.5 * sp_w3).reshape(HIDDEN, 1).astype(jnp.float32)

    scale = (gamma_1 - gamma_0) / (gt1 - gt0)
    offset = gamma_0 + scale * (b3 + jnp.sum(w3h) - gt0)
    scalars = jnp.stack([sp_w1, b1, scale, offset]).astype(jnp.float32)

    # ---- Batch tiling: batch along lanes, multiple of 128 ---------------------------
    if tile_b is None:
        # >=2 grid steps for batch > 128 (keeps both v7x TensorCores busy), capped at
        # 512 to bound per-chunk vreg pressure and amortize per-step overhead.
        tile_b = max(128, min(512, _round_up(-(-batch // 2), 128)))
    tile_b = _round_up(tile_b, 128)
    chunk = _pick_chunk(tile_b)
    batch_pad = _round_up(batch, tile_b)
    num_tiles = batch_pad // tile_b
    t2d = jnp.zeros((1, batch_pad), jnp.float32).at[0, :batch].set(t_flat)

    grid_spec = pltpu.PrefetchScalarGridSpec(
        num_scalar_prefetch=1,                                   # scalars -> SMEM
        grid=(num_tiles,),
        in_specs=[
            pl.BlockSpec((HIDDEN, 1), lambda i, s: (0, 0)),      # w2h, resident
            pl.BlockSpec((HIDDEN, 1), lambda i, s: (0, 0)),      # b2h, resident
            pl.BlockSpec((HIDDEN, 1), lambda i, s: (0, 0)),      # w3h, resident
            pl.BlockSpec((1, tile_b), lambda i, s: (0, i)),      # t tile, lane-dense
        ],
        out_specs=pl.BlockSpec((1, tile_b), lambda i, s: (0, i)),
    )

    out = pl.pallas_call(
        functools.partial(_gamma_network_kernel, chunk=chunk),
        out_shape=jax.ShapeDtypeStruct((1, batch_pad), jnp.float32),
        grid_spec=grid_spec,
        compiler_params=pltpu.CompilerParams(
            dimension_semantics=("parallel",),   # independent batch tiles
            vmem_limit_bytes=32 * 1024 * 1024,
        ),
    )(scalars, w2h, b2h, w3h, t2d)

    return out[0, :batch].reshape(orig_shape)


# ----------------------------------------------------------------------------------
# Parameter init (mirrors GammaNetwork / PositiveLinear.reset_parameters) + reference.
# ----------------------------------------------------------------------------------
def init_gamma_network_params(key):
    def positive_linear_init(k, in_f, out_f, weight_init_offset=-2.0):
        kw, kb = jax.random.split(k)
        bound = 1.0 / math.sqrt(in_f)   # kaiming_uniform_(a=sqrt(5)) on (out, in)
        w = jax.random.uniform(kw, (out_f, in_f), jnp.float32, -bound, bound)
        w = w + weight_init_offset
        b = jax.random.uniform(kb, (out_f,), jnp.float32, -bound, bound)
        return w, b

    k1, k2, k3 = jax.random.split(key, 3)
    w1, b1 = positive_linear_init(k1, 1, 1)
    w2, b2 = positive_linear_init(k2, 1, HIDDEN)
    w3, b3 = positive_linear_init(k3, HIDDEN, 1)
    return dict(w1=w1, b1=b1, w2=w2, b2=b2, w3=w3, b3=b3,
                gamma_0=jnp.array([-5.0], jnp.float32),
                gamma_1=jnp.array([10.0], jnp.float32))


def _positive_linear_ref(x, w, b):
    y = jnp.einsum("bi,oi->bo", x, jax.nn.softplus(w),
                   precision=jax.lax.Precision.HIGHEST)
    return y + b[None, :]


def gamma_network_reference(t, params):
    def gamma_tilde(x):
        l1 = _positive_linear_ref(x, params["w1"], params["b1"])
        h = jax.nn.sigmoid(_positive_linear_ref(l1, params["w2"], params["b2"]))
        return l1 + _positive_linear_ref(h, params["w3"], params["b3"])

    gt0 = gamma_tilde(jnp.zeros_like(t))
    gt1 = gamma_tilde(jnp.ones_like(t))
    gtt = gamma_tilde(t)
    norm = (gtt - gt0) / (gt1 - gt0)
    return params["gamma_0"] + (params["gamma_1"] - params["gamma_0"]) * norm


if __name__ == "__main__":
    key = jax.random.PRNGKey(0)
    k_t, k_p = jax.random.split(key)
    params = init_gamma_network_params(k_p)

    # Small batch (single lane-dense tile).
    t_small = jax.random.uniform(k_t, (8, 1), dtype=jnp.float32)
    gamma_small = jax.block_until_ready(gamma_network_forward(t_small, params))
    ref_small = gamma_network_reference(t_small, params)
    assert gamma_small.shape == t_small.shape
    assert jnp.allclose(gamma_small, ref_small, atol=2e-2, rtol=2e-3), \
        "mismatch vs reference (small batch)"

    # Non-multiple-of-tile batch over a multi-step "parallel" grid (padding + pipeline path).
    t_sched = jnp.linspace(0.0, 1.0, 200, dtype=jnp.float32).reshape(200, 1)
    gamma_sched = jax.block_until_ready(
        gamma_network_forward(t_sched, params, tile_b=128))
    ref_sched = gamma_network_reference(t_sched, params)
    assert jnp.allclose(gamma_sched, ref_sched, atol=2e-2, rtol=2e-3), \
        "mismatch vs reference (schedule batch)"

    # Default tile_b selection path (>=2 tiles for batch > 128).
    gamma_sched2 = jax.block_until_ready(gamma_network_forward(t_sched, params))
    assert jnp.allclose(gamma_sched2, ref_sched, atol=2e-2, rtol=2e-3), \
        "mismatch vs reference (default tiling)"

    # Monotonicity sanity check: gamma must be non-decreasing in t (positive weights).
    assert bool(jnp.all(jnp.diff(gamma_sched[:, 0]) >= -1e-4))

    print("KERNEL_OK")
</pallas_src>

<mosaic_0001>
module attributes {stable_mosaic.version = 11 : i64} {
  func.func @_gamma_network_kernel(%arg0: i32, %arg1: memref<4xf32, #tpu.memory_space<smem>>, %arg2: memref<1024x1xf32, #tpu.memory_space<vmem>>, %arg3: memref<1024x1xf32, #tpu.memory_space<vmem>>, %arg4: memref<1024x1xf32, #tpu.memory_space<vmem>>, %arg5: memref<1x128xf32, #tpu.memory_space<vmem>>, %arg6: memref<1x128xf32, #tpu.memory_space<vmem>>) attributes {dimension_semantics = [#tpu.dimension_semantics<parallel>], iteration_bounds = array<i64: 1>, scalar_prefetch = 1 : i64, scratch_operands = 0 : i64, tpu.core_type = #tpu.core_type<tc>, window_params = [{pipeline_mode = #tpu.pipeline_mode<synchronous>, transform_indices = @transform_0, window_bounds = array<i64: 1024, 1>}, {pipeline_mode = #tpu.pipeline_mode<synchronous>, transform_indices = @transform_1, window_bounds = array<i64: 1024, 1>}, {pipeline_mode = #tpu.pipeline_mode<synchronous>, transform_indices = @transform_2, window_bounds = array<i64: 1024, 1>}, {transform_indices = @transform_3, window_bounds = array<i64: 1, 128>}, {transform_indices = @transform_4, window_bounds = array<i64: 1, 128>}]} {
    %c0 = arith.constant 0 : index
    %0 = memref.load %arg1[%c0] : memref<4xf32, #tpu.memory_space<smem>>
    %c1 = arith.constant 1 : index
    %1 = memref.load %arg1[%c1] : memref<4xf32, #tpu.memory_space<smem>>
    %c2 = arith.constant 2 : index
    %2 = memref.load %arg1[%c2] : memref<4xf32, #tpu.memory_space<smem>>
    %c3 = arith.constant 3 : index
    %3 = memref.load %arg1[%c3] : memref<4xf32, #tpu.memory_space<smem>>
    %c0_0 = arith.constant 0 : index
    %c0_1 = arith.constant 0 : index
    %4 = vector.load %arg5[%c0_0, %c0_1] : memref<1x128xf32, #tpu.memory_space<vmem>>, vector<1x128xf32>
    %5 = vector.broadcast %0 : f32 to vector<1x128xf32>
    %6 = arith.mulf %4, %5 : vector<1x128xf32>
    %7 = vector.broadcast %1 : f32 to vector<1x128xf32>
    %8 = arith.addf %6, %7 : vector<1x128xf32>
    %cst = arith.constant 0.000000e+00 : f32
    %9 = vector.broadcast %cst : f32 to vector<1x128xf32>
    %c0_2 = arith.constant 0 : index
    %c0_3 = arith.constant 0 : index
    %10 = vector.load %arg2[%c0_2, %c0_3] : memref<1024x1xf32, #tpu.memory_space<vmem>>, vector<256x1xf32>
    %11 = vector.broadcast %8 : vector<1x128xf32> to vector<256x128xf32>
    %12 = vector.broadcast %10 : vector<256x1xf32> to vector<256x128xf32>
    %13 = arith.mulf %11, %12 : vector<256x128xf32>
    %c0_4 = arith.constant 0 : index
    %c0_5 = arith.constant 0 : index
    %14 = vector.load %arg3[%c0_4, %c0_5] : memref<1024x1xf32, #tpu.memory_space<vmem>>, vector<256x1xf32>
    %15 = vector.broadcast %14 : vector<256x1xf32> to vector<256x128xf32>
    %16 = arith.addf %13, %15 : vector<256x128xf32>
    %17 = math.tanh %16 : vector<256x128xf32>
    %c0_6 = arith.constant 0 : index
    %c0_7 = arith.constant 0 : index
    %18 = vector.load %arg4[%c0_6, %c0_7] : memref<1024x1xf32, #tpu.memory_space<vmem>>, vector<256x1xf32>
    %19 = vector.broadcast %18 : vector<256x1xf32> to vector<256x128xf32>
    %20 = arith.mulf %17, %19 : vector<256x128xf32>
    %cst_8 = arith.constant dense<0.000000e+00> : vector<128xf32>
    %21 = vector.multi_reduction <add>, %20, %cst_8 [0] : vector<256x128xf32> to vector<128xf32>
    %22 = vector.shape_cast %21 : vector<128xf32> to vector<1x128xf32>
    %23 = arith.addf %9, %22 : vector<1x128xf32>
    %c256 = arith.constant 256 : index
    %c0_9 = arith.constant 0 : index
    %24 = vector.load %arg2[%c256, %c0_9] : memref<1024x1xf32, #tpu.memory_space<vmem>>, vector<256x1xf32>
    %25 = vector.broadcast %8 : vector<1x128xf32> to vector<256x128xf32>
    %26 = vector.broadcast %24 : vector<256x1xf32> to vector<256x128xf32>
    %27 = arith.mulf %25, %26 : vector<256x128xf32>
    %c256_10 = arith.constant 256 : index
    %c0_11 = arith.constant 0 : index
    %28 = vector.load %arg3[%c256_10, %c0_11] : memref<1024x1xf32, #tpu.memory_space<vmem>>, vector<256x1xf32>
    %29 = vector.broadcast %28 : vector<256x1xf32> to vector<256x128xf32>
    %30 = arith.addf %27, %29 : vector<256x128xf32>
    %31 = math.tanh %30 : vector<256x128xf32>
    %c256_12 = arith.constant 256 : index
    %c0_13 = arith.constant 0 : index
    %32 = vector.load %arg4[%c256_12, %c0_13] : memref<1024x1xf32, #tpu.memory_space<vmem>>, vector<256x1xf32>
    %33 = vector.broadcast %32 : vector<256x1xf32> to vector<256x128xf32>
    %34 = arith.mulf %31, %33 : vector<256x128xf32>
    %cst_14 = arith.constant dense<0.000000e+00> : vector<128xf32>
    %35 = vector.multi_reduction <add>, %34, %cst_14 [0] : vector<256x128xf32> to vector<128xf32>
    %36 = vector.shape_cast %35 : vector<128xf32> to vector<1x128xf32>
    %37 = arith.addf %23, %36 : vector<1x128xf32>
    %c512 = arith.constant 512 : index
    %c0_15 = arith.constant 0 : index
    %38 = vector.load %arg2[%c512, %c0_15] : memref<1024x1xf32, #tpu.memory_space<vmem>>, vector<256x1xf32>
    %39 = vector.broadcast %8 : vector<1x128xf32> to vector<256x128xf32>
    %40 = vector.broadcast %38 : vector<256x1xf32> to vector<256x128xf32>
    %41 = arith.mulf %39, %40 : vector<256x128xf32>
    %c512_16 = arith.constant 512 : index
    %c0_17 = arith.constant 0 : index
    %42 = vector.load %arg3[%c512_16, %c0_17] : memref<1024x1xf32, #tpu.memory_space<vmem>>, vector<256x1xf32>
    %43 = vector.broadcast %42 : vector<256x1xf32> to vector<256x128xf32>
    %44 = arith.addf %41, %43 : vector<256x128xf32>
    %45 = math.tanh %44 : vector<256x128xf32>
    %c512_18 = arith.constant 512 : index
    %c0_19 = arith.constant 0 : index
    %46 = vector.load %arg4[%c512_18, %c0_19] : memref<1024x1xf32, #tpu.memory_space<vmem>>, vector<256x1xf32>
    %47 = vector.broadcast %46 : vector<256x1xf32> to vector<256x128xf32>
    %48 = arith.mulf %45, %47 : vector<256x128xf32>
    %cst_20 = arith.constant dense<0.000000e+00> : vector<128xf32>
    %49 = vector.multi_reduction <add>, %48, %cst_20 [0] : vector<256x128xf32> to vector<128xf32>
    %50 = vector.shape_cast %49 : vector<128xf32> to vector<1x128xf32>
    %51 = arith.addf %37, %50 : vector<1x128xf32>
    %c768 = arith.constant 768 : index
    %c0_21 = arith.constant 0 : index
    %52 = vector.load %arg2[%c768, %c0_21] : memref<1024x1xf32, #tpu.memory_space<vmem>>, vector<256x1xf32>
    %53 = vector.broadcast %8 : vector<1x128xf32> to vector<256x128xf32>
    %54 = vector.broadcast %52 : vector<256x1xf32> to vector<256x128xf32>
    %55 = arith.mulf %53, %54 : vector<256x128xf32>
    %c768_22 = arith.constant 768 : index
    %c0_23 = arith.constant 0 : index
    %56 = vector.load %arg3[%c768_22, %c0_23] : memref<1024x1xf32, #tpu.memory_space<vmem>>, vector<256x1xf32>
    %57 = vector.broadcast %56 : vector<256x1xf32> to vector<256x128xf32>
    %58 = arith.addf %55, %57 : vector<256x128xf32>
    %59 = math.tanh %58 : vector<256x128xf32>
    %c768_24 = arith.constant 768 : index
    %c0_25 = arith.constant 0 : index
    %60 = vector.load %arg4[%c768_24, %c0_25] : memref<1024x1xf32, #tpu.memory_space<vmem>>, vector<256x1xf32>
    %61 = vector.broadcast %60 : vector<256x1xf32> to vector<256x128xf32>
    %62 = arith.mulf %59, %61 : vector<256x128xf32>
    %cst_26 = arith.constant dense<0.000000e+00> : vector<128xf32>
    %63 = vector.multi_reduction <add>, %62, %cst_26 [0] : vector<256x128xf32> to vector<128xf32>
    %64 = vector.shape_cast %63 : vector<128xf32> to vector<1x128xf32>
    %65 = arith.addf %51, %64 : vector<1x128xf32>
    %66 = arith.addf %8, %65 : vector<1x128xf32>
    %67 = vector.broadcast %2 : f32 to vector<1x128xf32>
    %68 = arith.mulf %67, %66 : vector<1x128xf32>
    %69 = vector.broadcast %3 : f32 to vector<1x128xf32>
    %70 = arith.addf %68, %69 : vector<1x128xf32>
    %c0_27 = arith.constant 0 : index
    %c0_28 = arith.constant 0 : index
    %71 = vector.load %arg6[%c0_27, %c0_28] : memref<1x128xf32, #tpu.memory_space<vmem>>, vector<1x128xf32>
    tpu.vector_store %arg6[%c0_27, %c0_28], %70 {strides = array<i32>} : memref<1x128xf32, #tpu.memory_space<vmem>>, vector<1x128xf32>,
    return
  }
  func.func @transform_0(%arg0: i32, %arg1: memref<4xf32, #tpu.memory_space<smem>>) -> (i32, i32) {
    %c0_i32 = arith.constant 0 : i32
    %c0_i32_0 = arith.constant 0 : i32
    %c0_i32_1 = arith.constant 0 : i32
    return %c0_i32, %c0_i32_0 : i32, i32
  }
  func.func @transform_1(%arg0: i32, %arg1: memref<4xf32, #tpu.memory_space<smem>>) -> (i32, i32) {
    %c0_i32 = arith.constant 0 : i32
    %c0_i32_0 = arith.constant 0 : i32
    %c0_i32_1 = arith.constant 0 : i32
    return %c0_i32, %c0_i32_0 : i32, i32
  }
  func.func @transform_2(%arg0: i32, %arg1: memref<4xf32, #tpu.memory_space<smem>>) -> (i32, i32) {
    %c0_i32 = arith.constant 0 : i32
    %c0_i32_0 = arith.constant 0 : i32
    %c0_i32_1 = arith.constant 0 : i32
    return %c0_i32, %c0_i32_0 : i32, i32
  }
  func.func @transform_3(%arg0: i32, %arg1: memref<4xf32, #tpu.memory_space<smem>>) -> (i32, i32) {
    %c0_i32 = arith.constant 0 : i32
    %c0_i32_0 = arith.constant 0 : i32
    return %c0_i32, %arg0 : i32, i32
  }
  func.func @transform_4(%arg0: i32, %arg1: memref<4xf32, #tpu.memory_space<smem>>) -> (i32, i32) {
    %c0_i32 = arith.constant 0 : i32
    %c0_i32_0 = arith.constant 0 : i32
    return %c0_i32, %arg0 : i32, i32
  }
}

</mosaic_0001>

<bundles_post_ra>
// kernel: tpu_custom_call.1
= control target key start
LH: loop header
LB: loop body
LE: loop exit
PB: predicated region body
PF: predicated region fallthrough
CT: control target
= control target key end

     0   :  { %s5649_s0 = inlined_call_operand.vmem [shape: f32[4], index: 0, kind: input, shape index: {}]   ;;  %s5650_s1 = inlined_call_operand.vmem [shape: f32[1024,1], index: 1, kind: input, shape index: {}]   ;;  %s5651_s2 = inlined_call_operand.vmem [shape: f32[1024,1], index: 2, kind: input, shape index: {}]   ;;  %s5652_s3 = inlined_call_operand.vmem [shape: f32[1024,1], index: 3, kind: input, shape index: {}]   ;;  %s5653_s4 = inlined_call_operand.vmem [shape: f32[1,128], index: 4, kind: input, shape index: {}]   ;;  %s5654_s5 = inlined_call_operand.hbm [shape: f32[1,128], index: 5, kind: output, shape index: {}]  }
   0x1   :  { %s10_s20 = sshll.u32 %s5649_s0, 4  ;;  %s11_s20 = int_to_ptr.vmem [resolvable:$true] %s10_s20 }
   0x2   :  { %s3292_s21 = scalar_lea.vmem %s11_s20, 16  ;;  %p3297_p1 = scmp.lt.s32.totalorder %s11_s20, %s11_s20 }
   0x3   :  { %p3293_p0 = scmp.ne.s32.totalorder %s11_s20, %s3292_s21  ;;  %p3298_p2 = scmp.lt.s32.totalorder %s3292_s21, %s3292_s21 }
   0x5   :  { %p3299_p3 = por %p3298_p2, %p3297_p1 }
   0x7   :  { %p3300_p4 = pnand %p3299_p3, %p3293_p0 }
   0x9   :  { %3303 = shalt.err (!%p3300_p4)  }
   0xa   :  { %s3330_s22 = smov [#allocation3]  }
   0xb   :  { %13 = dma.vmem_to_smem %s11_s20, 16, %s3330_s22, [#allocation2] }
   0xc   :  { %3326 = dma.done.wait [#allocation2], 16 }
   0xd   :  { %3327 = vsyncadd [#allocation2], 4294967280 }
   0xe   :  { %15 = sfence }
   0xf   :  { %v36_v0 = vld [vmem:[%s5650_s1 + $0x10] sm:$0xff]  ;;  %v34_v1 = vld [vmem:[%s5650_s1] sm:$0xff]  ;;  %v3331_v2 = vmov 0   ;;  %v37_v3 = vld [vmem:[%s5650_s1 + $0x18] sm:$0xff] }
  0x10   :  { %3035 = vset.pattern.permute.xlu1 %v3331_v2  ;;  %3034 = vset.pattern.permute.xlu0 %v3331_v2  ;;  %v35_v4 = vld [vmem:[%s5650_s1 + $0x8] sm:$0xff]  ;;  %v38_v6 = vld [vmem:[%s5650_s1 + $0x20] sm:$0xff]  ;;  %v41_v7 = vld [vmem:[%s5650_s1 + $0x38] sm:$0xff] }
  0x11   :  { %84 = vperm.xlu1 %3035, %v36_v0   ;;  %74 = vperm.xlu0 %3034, %v34_v1   ;;  %v39_v5 = vld [vmem:[%s5650_s1 + $0x28] sm:$0xff]  ;;  %v40_v8 = vld [vmem:[%s5650_s1 + $0x30] sm:$0xff]  ;;  %v42_v10 = vld [vmem:[%s5650_s1 + $0x40] sm:$0xff] }
  0x12   :  { %v43_v9 = vld [vmem:[%s5650_s1 + $0x48] sm:$0xff]  ;;  %v45_v11 = vld [vmem:[%s5650_s1 + $0x58] sm:$0xff]  ;;  %v44_v12 = vld [vmem:[%s5650_s1 + $0x50] sm:$0xff] }
  0x13   :  { %v47_v13 = vld [vmem:[%s5650_s1 + $0x68] sm:$0xff]  ;;  %v46_v14 = vld [vmem:[%s5650_s1 + $0x60] sm:$0xff] }
  0x15   :  { %89 = vperm.xlu1 %3035, %v37_v3   ;;  %79 = vperm.xlu0 %3034, %v35_v4  }
  0x19   :  { %99 = vperm.xlu1 %3035, %v39_v5   ;;  %94 = vperm.xlu0 %3034, %v38_v6  }
  0x1d   :  { %109 = vperm.xlu1 %3035, %v41_v7   ;;  %104 = vperm.xlu0 %3034, %v40_v8  }
  0x21   :  { %119 = vperm.xlu1 %3035, %v43_v9   ;;  %114 = vperm.xlu0 %3034, %v42_v10  }
  0x25   :  { %129 = vperm.xlu1 %3035, %v45_v11   ;;  %124 = vperm.xlu0 %3034, %v44_v12  }
  0x29   :  { %139 = vperm.xlu1 %3035, %v47_v13   ;;  %134 = vperm.xlu0 %3034, %v46_v14  }
  0x2a   :  { %16 = vsyncpa [#allocation5], 0  ;;  %v49_v15 = vld [vmem:[%s5650_s1 + $0x78] sm:$0xff]  ;;  %v48_v16 = vld [vmem:[%s5650_s1 + $0x70] sm:$0xff]  ;;  %s25_s28 = sld [smem:[#allocation3]]  ;;  %s3028_s8 = sld [smem:[#allocation3 + $0x1]] }
  0x2b   :  { %v51_v17 = vld [vmem:[%s5650_s1 + $0x88] sm:$0xff]  ;;  %v50_v18 = vld [vmem:[%s5650_s1 + $0x80] sm:$0xff]  ;;  %v53_v19 = vld [vmem:[%s5650_s1 + $0x98] sm:$0xff]  ;;  %s3332_s29 = smov [#allocation4]  }
  0x2c   :  { %v52_v20 = vld [vmem:[%s5650_s1 + $0x90] sm:$0xff]  ;;  %v55_v21 = vld [vmem:[%s5650_s1 + $0xa8] sm:$0xff]  ;;  %v54_v22 = vld [vmem:[%s5650_s1 + $0xa0] sm:$0xff]  ;;  %s3020_s30 = sshll.u32 %s3332_s29, 4  ;;  %s3021_s30 = int_to_ptr.vmem [resolvable:$true] %s3020_s30 }
  0x2d   :  { %149 = vperm.xlu1 %3035, %v49_v15   ;;  %144 = vperm.xlu0 %3034, %v48_v16   ;;  %v57_v23 = vld [vmem:[%s5650_s1 + $0xb8] sm:$0xff]  ;;  %v56_v24 = vld [vmem:[%s5650_s1 + $0xb0] sm:$0xff]  ;;  %v59_v25 = vld [vmem:[%s5650_s1 + $0xc8] sm:$0xff]  ;;  %s3304_s6 = scalar_lea.vmem %s3021_s30, 16  ;;  %s3308_s7 = scalar_lea.vmem %s3021_s30, 32 }
  0x2e   :  { %v58_v26 = vld [vmem:[%s5650_s1 + $0xc0] sm:$0xff]  ;;  %v61_v27 = vld [vmem:[%s5650_s1 + $0xd8] sm:$0xff]  ;;  %v60_v28 = vld [vmem:[%s5650_s1 + $0xd0] sm:$0xff]  ;;  %p3305_p5 = scmp.ne.s32.totalorder %s3021_s30, %s3304_s6  ;;  %p3309_p6 = scmp.lt.s32.totalorder %s3021_s30, %s3021_s30 }
  0x2f   :  { %v63_v29 = vld [vmem:[%s5650_s1 + $0xe8] sm:$0xff]  ;;  %v62_v30 = vld [vmem:[%s5650_s1 + $0xe0] sm:$0xff]  ;;  %v65_v31 = vld [vmem:[%s5650_s1 + $0xf8] sm:$0xff]  ;;  %p3310_p7 = scmp.lt.s32.totalorder %s3308_s7, %s3304_s6 }
  0x30   :  { %v64_v32 = vld [vmem:[%s5650_s1 + $0xf0] sm:$0xff]  ;;  %v265_v33 = vld [vmem:[%s5651_s2 + $0x8] sm:$0xff]  ;;  %v264_v34 = vld [vmem:[%s5651_s2] sm:$0xff] }
  0x31   :  { %159 = vperm.xlu1 %3035, %v51_v17   ;;  %154 = vperm.xlu0 %3034, %v50_v18   ;;  %v267_v35 = vld [vmem:[%s5651_s2 + $0x18] sm:$0xff]  ;;  %v266_v36 = vld [vmem:[%s5651_s2 + $0x10] sm:$0xff]  ;;  %v269_v37 = vld [vmem:[%s5651_s2 + $0x28] sm:$0xff]  ;;  %p3311_p8 = por %p3310_p7, %p3309_p6 }
  0x32   :  { %v268_v38 = vld [vmem:[%s5651_s2 + $0x20] sm:$0xff]  ;;  %v271_v39 = vld [vmem:[%s5651_s2 + $0x38] sm:$0xff]  ;;  %v270_v40 = vld [vmem:[%s5651_s2 + $0x30] sm:$0xff] }
  0x33   :  { %v273_v41 = vld [vmem:[%s5651_s2 + $0x48] sm:$0xff]  ;;  %v272_v42 = vld [vmem:[%s5651_s2 + $0x40] sm:$0xff]  ;;  %v275_v43 = vld [vmem:[%s5651_s2 + $0x58] sm:$0xff]  ;;  %p3312_p9 = pnand %p3311_p8, %p3305_p5 }
  0x34   :  { %v274_v44 = vld [vmem:[%s5651_s2 + $0x50] sm:$0xff]  ;;  %v277_v45 = vld [vmem:[%s5651_s2 + $0x68] sm:$0xff]  ;;  %v276_v46 = vld [vmem:[%s5651_s2 + $0x60] sm:$0xff] }
  0x35   :  { %169 = vperm.xlu1 %3035, %v53_v19   ;;  %164 = vperm.xlu0 %3034, %v52_v20   ;;  %v279_v47 = vld [vmem:[%s5651_s2 + $0x78] sm:$0xff]  ;;  %v278_v48 = vld [vmem:[%s5651_s2 + $0x70] sm:$0xff]  ;;  %v281_v49 = vld [vmem:[%s5651_s2 + $0x88] sm:$0xff] }
  0x36   :  { %v280_v50 = vld [vmem:[%s5651_s2 + $0x80] sm:$0xff]  ;;  %v283_v51 = vld [vmem:[%s5651_s2 + $0x98] sm:$0xff]  ;;  %v282_v52 = vld [vmem:[%s5651_s2 + $0x90] sm:$0xff] }
  0x37   :  { %v285_v53 = vld [vmem:[%s5651_s2 + $0xa8] sm:$0xff]  ;;  %v284_v54 = vld [vmem:[%s5651_s2 + $0xa0] sm:$0xff]  ;;  %v287_v55 = vld [vmem:[%s5651_s2 + $0xb8] sm:$0xff] }
  0x38   :  { %v286_v56 = vld [vmem:[%s5651_s2 + $0xb0] sm:$0xff]  ;;  %v289_v57 = vld [vmem:[%s5651_s2 + $0xc8] sm:$0xff]  ;;  %v288_v58 = vld [vmem:[%s5651_s2 + $0xc0] sm:$0xff] }
  0x39   :  { %179 = vperm.xlu1 %3035, %v55_v21   ;;  %174 = vperm.xlu0 %3034, %v54_v22   ;;  %v291_v59 = vld [vmem:[%s5651_s2 + $0xd8] sm:$0xff]  ;;  %v290_v60 = vld [vmem:[%s5651_s2 + $0xd0] sm:$0xff]  ;;  %v293_v61 = vld [vmem:[%s5651_s2 + $0xe8] sm:$0xff] }
  0x3a   :  { %v292_v62 = vld [vmem:[%s5651_s2 + $0xe0] sm:$0xff]  ;;  %v295_v63 = vld [vmem:[%s5651_s2 + $0xf8] sm:$0xff]  ;;  %v294_v0 = vld [vmem:[%s5651_s2 + $0xf0] sm:$0xff] }
  0x3b   :  { %v521_v1 = vld [vmem:[%s5652_s3 + $0x8] sm:$0xff]  ;;  %v520_v2 = vld [vmem:[%s5652_s3] sm:$0xff]  ;;  %v523_v5 = vld [vmem:[%s5652_s3 + $0x18] sm:$0xff] }
  0x3c   :  { %v522_v6 = vld [vmem:[%s5652_s3 + $0x10] sm:$0xff]  ;;  %v525_v9 = vld [vmem:[%s5652_s3 + $0x28] sm:$0xff]  ;;  %v524_v10 = vld [vmem:[%s5652_s3 + $0x20] sm:$0xff] }
  0x3d   :  { %189 = vperm.xlu1 %3035, %v57_v23   ;;  %184 = vperm.xlu0 %3034, %v56_v24   ;;  %v527_v13 = vld [vmem:[%s5652_s3 + $0x38] sm:$0xff]  ;;  %v526_v14 = vld [vmem:[%s5652_s3 + $0x30] sm:$0xff]  ;;  %v529_v17 = vld [vmem:[%s5652_s3 + $0x48] sm:$0xff] }
  0x3e   :  { %v528_v18 = vld [vmem:[%s5652_s3 + $0x40] sm:$0xff]  ;;  %v531_v21 = vld [vmem:[%s5652_s3 + $0x58] sm:$0xff]  ;;  %v530_v22 = vld [vmem:[%s5652_s3 + $0x50] sm:$0xff] }
  0x41   :  { %199 = vperm.xlu1 %3035, %v59_v25   ;;  %194 = vperm.xlu0 %3034, %v58_v26   ;;  %v533_v25 = vld [vmem:[%s5652_s3 + $0x68] sm:$0xff]  ;;  %v532_v26 = vld [vmem:[%s5652_s3 + $0x60] sm:$0xff] }
  0x45   :  { %209 = vperm.xlu1 %3035, %v61_v27   ;;  %204 = vperm.xlu0 %3034, %v60_v28  }
  0x49   :  { %219 = vperm.xlu1 %3035, %v63_v29   ;;  %214 = vperm.xlu0 %3034, %v62_v30   ;;  %v535_v29 = vld [vmem:[%s5652_s3 + $0x78] sm:$0xff]  ;;  %v534_v30 = vld [vmem:[%s5652_s3 + $0x70] sm:$0xff] }
  0x4d   :  { %229 = vperm.xlu1 %3035, %v65_v31   ;;  %224 = vperm.xlu0 %3034, %v64_v32  }
  0x51   :  { %303 = vperm.xlu1 %3035, %v265_v33   ;;  %298 = vperm.xlu0 %3034, %v264_v34   ;;  %v537_v33 = vld [vmem:[%s5652_s3 + $0x88] sm:$0xff]  ;;  %v536_v34 = vld [vmem:[%s5652_s3 + $0x80] sm:$0xff] }
  0x55   :  { %313 = vperm.xlu1 %3035, %v267_v35   ;;  %308 = vperm.xlu0 %3034, %v266_v36  }
  0x59   :  { %323 = vperm.xlu1 %3035, %v269_v37   ;;  %318 = vperm.xlu0 %3034, %v268_v38   ;;  %v539_v37 = vld [vmem:[%s5652_s3 + $0x98] sm:$0xff]  ;;  %v538_v38 = vld [vmem:[%s5652_s3 + $0x90] sm:$0xff] }
  0x5d   :  { %333 = vperm.xlu1 %3035, %v271_v39   ;;  %328 = vperm.xlu0 %3034, %v270_v40  }
  0x61   :  { %343 = vperm.xlu1 %3035, %v273_v41   ;;  %338 = vperm.xlu0 %3034, %v272_v42   ;;  %v541_v41 = vld [vmem:[%s5652_s3 + $0xa8] sm:$0xff]  ;;  %v540_v42 = vld [vmem:[%s5652_s3 + $0xa0] sm:$0xff] }
  0x65   :  { %353 = vperm.xlu1 %3035, %v275_v43   ;;  %348 = vperm.xlu0 %3034, %v274_v44  }
  0x69   :  { %363 = vperm.xlu1 %3035, %v277_v45   ;;  %358 = vperm.xlu0 %3034, %v276_v46   ;;  %v543_v45 = vld [vmem:[%s5652_s3 + $0xb8] sm:$0xff]  ;;  %v542_v46 = vld [vmem:[%s5652_s3 + $0xb0] sm:$0xff] }
  0x6d   :  { %373 = vperm.xlu1 %3035, %v279_v47   ;;  %368 = vperm.xlu0 %3034, %v278_v48  }
  0x71   :  { %383 = vperm.xlu1 %3035, %v281_v49   ;;  %378 = vperm.xlu0 %3034, %v280_v50   ;;  %v545_v49 = vld [vmem:[%s5652_s3 + $0xc8] sm:$0xff]  ;;  %v544_v50 = vld [vmem:[%s5652_s3 + $0xc0] sm:$0xff] }
  0x75   :  { %393 = vperm.xlu1 %3035, %v283_v51   ;;  %388 = vperm.xlu0 %3034, %v282_v52  }
  0x79   :  { %403 = vperm.xlu1 %3035, %v285_v53   ;;  %398 = vperm.xlu0 %3034, %v284_v54   ;;  %v547_v53 = vld [vmem:[%s5652_s3 + $0xd8] sm:$0xff]  ;;  %v546_v54 = vld [vmem:[%s5652_s3 + $0xd0] sm:$0xff] }
  0x7d   :  { %413 = vperm.xlu1 %3035, %v287_v55   ;;  %408 = vperm.xlu0 %3034, %v286_v56  }
  0x81   :  { %423 = vperm.xlu1 %3035, %v289_v57   ;;  %418 = vperm.xlu0 %3034, %v288_v58   ;;  %v549_v57 = vld [vmem:[%s5652_s3 + $0xe8] sm:$0xff]  ;;  %v548_v58 = vld [vmem:[%s5652_s3 + $0xe0] sm:$0xff] }
  0x85   :  { %433 = vperm.xlu1 %3035, %v291_v59   ;;  %428 = vperm.xlu0 %3034, %v290_v60  }
  0x89   :  { %443 = vperm.xlu1 %3035, %v293_v61   ;;  %438 = vperm.xlu0 %3034, %v292_v62   ;;  %v551_v61 = vld [vmem:[%s5652_s3 + $0xf8] sm:$0xff]  ;;  %v550_v62 = vld [vmem:[%s5652_s3 + $0xf0] sm:$0xff] }
  0x8d   :  { %453 = vperm.xlu1 %3035, %v295_v63   ;;  %448 = vperm.xlu0 %3034, %v294_v0  }
  0x90   :  { %v3564_v3 = vpop.permute.xlu1 %84  ;;  %v3566_v4 = vpop.permute.xlu0 %74 }
  0x91   :  { %5657 = vst [vmem:[#allocation8_spill] sm:$0xff] %v3564_v3  ;;  %5658 = vst [vmem:[#allocation9_spill] sm:$0xff] %v3566_v4  ;;  %559 = vperm.xlu1 %3035, %v521_v1   ;;  %554 = vperm.xlu0 %3034, %v520_v2   ;;  %v783_v1 = vld [vmem:[%s5650_s1 + $0x108] sm:$0xff]  ;;  %v782_v2 = vld [vmem:[%s5650_s1 + $0x100] sm:$0xff] }
  0x92   :  { %v2287_v3 = vld [vmem:[%s5650_s1 + $0x3a8] sm:$0xff] }
  0x94   :  { %v3574_v7 = vpop.permute.xlu1 %89  ;;  %v3576_v8 = vpop.permute.xlu0 %79 }
  0x95   :  { %5659 = vst [vmem:[#allocation10_spill] sm:$0xff] %v3574_v7  ;;  %5660 = vst [vmem:[#allocation11_spill] sm:$0xff] %v3576_v8  ;;  %569 = vperm.xlu1 %3035, %v523_v5   ;;  %564 = vperm.xlu0 %3034, %v522_v6  }
  0x98   :  { %v3584_v11 = vpop.permute.xlu1 %99  ;;  %v3586_v12 = vpop.permute.xlu0 %94 }
  0x99   :  { %5661 = vst [vmem:[#allocation12_spill] sm:$0xff] %v3584_v11  ;;  %5662 = vst [vmem:[#allocation13_spill] sm:$0xff] %v3586_v12  ;;  %579 = vperm.xlu1 %3035, %v525_v9   ;;  %574 = vperm.xlu0 %3034, %v524_v10   ;;  %v785_v9 = vld [vmem:[%s5650_s1 + $0x118] sm:$0xff]  ;;  %v784_v10 = vld [vmem:[%s5650_s1 + $0x110] sm:$0xff] }
  0x9a   :  { %v2284_v12 = vld [vmem:[%s5650_s1 + $0x390] sm:$0xff] }
  0x9c   :  { %v3594_v15 = vpop.permute.xlu1 %109  ;;  %v3596_v16 = vpop.permute.xlu0 %104 }
  0x9d   :  { %5663 = vst [vmem:[#allocation14_spill] sm:$0xff] %v3594_v15  ;;  %5664 = vst [vmem:[#allocation15_spill] sm:$0xff] %v3596_v16  ;;  %589 = vperm.xlu1 %3035, %v527_v13   ;;  %584 = vperm.xlu0 %3034, %v526_v14   ;;  %v2267_v15 = vld [vmem:[%s5650_s1 + $0x308] sm:$0xff] }
  0x9e   :  { %v2275_v16 = vld [vmem:[%s5650_s1 + $0x348] sm:$0xff] }
  0xa0   :  { %v3604_v19 = vpop.permute.xlu1 %119  ;;  %v3606_v20 = vpop.permute.xlu0 %114 }
  0xa1   :  { %5665 = vst [vmem:[#allocation16_spill] sm:$0xff] %v3604_v19  ;;  %5666 = vst [vmem:[#allocation17_spill] sm:$0xff] %v3606_v20  ;;  %599 = vperm.xlu1 %3035, %v529_v17   ;;  %594 = vperm.xlu0 %3034, %v528_v18   ;;  %v787_v17 = vld [vmem:[%s5650_s1 + $0x128] sm:$0xff]  ;;  %v786_v18 = vld [vmem:[%s5650_s1 + $0x120] sm:$0xff] }
  0xa2   :  { %v2035_v20 = vld [vmem:[%s5652_s3 + $0x2f8] sm:$0xff] }
  0xa4   :  { %v3614_v23 = vpop.permute.xlu1 %129  ;;  %v3616_v24 = vpop.permute.xlu0 %124 }
  0xa5   :  { %5667 = vst [vmem:[#allocation18_spill] sm:$0xff] %v3614_v23  ;;  %5668 = vst [vmem:[#allocation19_spill] sm:$0xff] %v3616_v24  ;;  %609 = vperm.xlu1 %3035, %v531_v21   ;;  %604 = vperm.xlu0 %3034, %v530_v22  }
  0xa8   :  { %v3624_v27 = vpop.permute.xlu1 %139  ;;  %v3626_v28 = vpop.permute.xlu0 %134 }
  0xa9   :  { %5669 = vst [vmem:[#allocation20_spill] sm:$0xff] %v3624_v27  ;;  %5670 = vst [vmem:[#allocation21_spill] sm:$0xff] %v3626_v28  ;;  %619 = vperm.xlu1 %3035, %v533_v25   ;;  %614 = vperm.xlu0 %3034, %v532_v26   ;;  %v789_v25 = vld [vmem:[%s5650_s1 + $0x138] sm:$0xff]  ;;  %v788_v26 = vld [vmem:[%s5650_s1 + $0x130] sm:$0xff] }
  0xac   :  { %v3634_v31 = vpop.permute.xlu1 %149  ;;  %v3636_v32 = vpop.permute.xlu0 %144 }
  0xad   :  { %5671 = vst [vmem:[#allocation22_spill] sm:$0xff] %v3634_v31  ;;  %5672 = vst [vmem:[#allocation23_spill] sm:$0xff] %v3636_v32  ;;  %629 = vperm.xlu1 %3035, %v535_v29   ;;  %624 = vperm.xlu0 %3034, %v534_v30  }
  0xb0   :  { %v3644_v35 = vpop.permute.xlu1 %159  ;;  %v3646_v36 = vpop.permute.xlu0 %154 }
  0xb1   :  { %5673 = vst [vmem:[#allocation24_spill] sm:$0xff] %v3644_v35  ;;  %5674 = vst [vmem:[#allocation25_spill] sm:$0xff] %v3646_v36  ;;  %639 = vperm.xlu1 %3035, %v537_v33   ;;  %634 = vperm.xlu0 %3034, %v536_v34   ;;  %v791_v33 = vld [vmem:[%s5650_s1 + $0x148] sm:$0xff]  ;;  %v790_v34 = vld [vmem:[%s5650_s1 + $0x140] sm:$0xff] }
  0xb4   :  { %v3654_v39 = vpop.permute.xlu1 %169  ;;  %v3656_v40 = vpop.permute.xlu0 %164 }
  0xb5   :  { %5675 = vst [vmem:[#allocation26_spill] sm:$0xff] %v3654_v39  ;;  %5676 = vst [vmem:[#allocation27_spill] sm:$0xff] %v3656_v40  ;;  %649 = vperm.xlu1 %3035, %v539_v37   ;;  %644 = vperm.xlu0 %3034, %v538_v38  }
  0xb8   :  { %v3664_v43 = vpop.permute.xlu1 %179  ;;  %v3666_v44 = vpop.permute.xlu0 %174 }
  0xb9   :  { %5677 = vst [vmem:[#allocation28_spill] sm:$0xff] %v3664_v43  ;;  %5678 = vst [vmem:[#allocation29_spill] sm:$0xff] %v3666_v44  ;;  %659 = vperm.xlu1 %3035, %v541_v41   ;;  %654 = vperm.xlu0 %3034, %v540_v42   ;;  %v793_v41 = vld [vmem:[%s5650_s1 + $0x158] sm:$0xff]  ;;  %v792_v42 = vld [vmem:[%s5650_s1 + $0x150] sm:$0xff] }
  0xba   :  { %v1271_v43 = vld [vmem:[%s5652_s3 + $0x148] sm:$0xff] }
  0xbc   :  { %v3674_v47 = vpop.permute.xlu1 %189  ;;  %v3676_v48 = vpop.permute.xlu0 %184 }
  0xbd   :  { %5679 = vst [vmem:[#allocation30_spill] sm:$0xff] %v3674_v47  ;;  %5680 = vst [vmem:[#allocation31_spill] sm:$0xff] %v3676_v48  ;;  %669 = vperm.xlu1 %3035, %v543_v45   ;;  %664 = vperm.xlu0 %3034, %v542_v46   ;;  %v1021_v48 = vld [vmem:[%s5651_s2 + $0x178] sm:$0xff] }
  0xc0   :  { %v3684_v51 = vpop.permute.xlu1 %199  ;;  %v3686_v52 = vpop.permute.xlu0 %194 }
  0xc1   :  { %5681 = vst [vmem:[#allocation32_spill] sm:$0xff] %v3684_v51  ;;  %5682 = vst [vmem:[#allocation33_spill] sm:$0xff] %v3686_v52  ;;  %679 = vperm.xlu1 %3035, %v545_v49   ;;  %674 = vperm.xlu0 %3034, %v544_v50   ;;  %v795_v49 = vld [vmem:[%s5650_s1 + $0x168] sm:$0xff]  ;;  %v794_v50 = vld [vmem:[%s5650_s1 + $0x160] sm:$0xff] }
  0xc2   :  { %v1017_v52 = vld [vmem:[%s5651_s2 + $0x158] sm:$0xff]  ;;  %v1019_v51 = vld [vmem:[%s5651_s2 + $0x168] sm:$0xff] }
  0xc4   :  { %v3694_v55 = vpop.permute.xlu1 %209  ;;  %v3696_v56 = vpop.permute.xlu0 %204 }
  0xc5   :  { %5683 = vst [vmem:[#allocation34_spill] sm:$0xff] %v3694_v55  ;;  %5684 = vst [vmem:[#allocation35_spill] sm:$0xff] %v3696_v56  ;;  %689 = vperm.xlu1 %3035, %v547_v53   ;;  %684 = vperm.xlu0 %3034, %v546_v54   ;;  %v1013_v56 = vld [vmem:[%s5651_s2 + $0x138] sm:$0xff] }
  0xc8   :  { %v3704_v59 = vpop.permute.xlu1 %219  ;;  %v3706_v60 = vpop.permute.xlu0 %214 }
  0xc9   :  { %5685 = vst [vmem:[#allocation36_spill] sm:$0xff] %v3704_v59  ;;  %5686 = vst [vmem:[#allocation37_spill] sm:$0xff] %v3706_v60  ;;  %699 = vperm.xlu1 %3035, %v549_v57   ;;  %694 = vperm.xlu0 %3034, %v548_v58   ;;  %v797_v57 = vld [vmem:[%s5650_s1 + $0x178] sm:$0xff]  ;;  %v796_v58 = vld [vmem:[%s5650_s1 + $0x170] sm:$0xff] }
  0xca   :  { %v813_v60 = vld [vmem:[%s5650_s1 + $0x1f8] sm:$0xff]  ;;  %v1011_v59 = vld [vmem:[%s5651_s2 + $0x128] sm:$0xff] }
  0xcc   :  { %v3714_v63 = vpop.permute.xlu1 %229  ;;  %v3716_v0 = vpop.permute.xlu0 %224 }
  0xcd   :  { %5687 = vst [vmem:[#allocation38_spill] sm:$0xff] %v3714_v63  ;;  %5688 = vst [vmem:[#allocation39_spill] sm:$0xff] %v3716_v0  ;;  %709 = vperm.xlu1 %3035, %v551_v61   ;;  %704 = vperm.xlu0 %3034, %v550_v62   ;;  %v811_v63 = vld [vmem:[%s5650_s1 + $0x1e8] sm:$0xff] }
  0xd0   :  { %v3724_v5 = vpop.permute.xlu1 %303  ;;  %v3726_v6 = vpop.permute.xlu0 %298 }
  0xd1   :  { %5689 = vst [vmem:[#allocation40_spill] sm:$0xff] %v3724_v5  ;;  %5690 = vst [vmem:[#allocation41_spill] sm:$0xff] %v3726_v6  ;;  %821 = vperm.xlu1 %3035, %v783_v1   ;;  %816 = vperm.xlu0 %3034, %v782_v2   ;;  %v799_v1 = vld [vmem:[%s5650_s1 + $0x188] sm:$0xff]  ;;  %v798_v2 = vld [vmem:[%s5650_s1 + $0x180] sm:$0xff] }
  0xd2   :  { %v2286_v5 = vld [vmem:[%s5650_s1 + $0x3a0] sm:$0xff] }
  0xd4   :  { %v3734_v13 = vpop.permute.xlu1 %313  ;;  %v3736_v14 = vpop.permute.xlu0 %308 }
  0xd5   :  { %5691 = vst [vmem:[#allocation42_spill] sm:$0xff] %v3734_v13  ;;  %5692 = vst [vmem:[#allocation43_spill] sm:$0xff] %v3736_v14  ;;  %831 = vperm.xlu1 %3035, %v785_v9   ;;  %826 = vperm.xlu0 %3034, %v784_v10   ;;  %v2285_v13 = vld [vmem:[%s5650_s1 + $0x398] sm:$0xff] }
  0xd8   :  { %v3744_v21 = vpop.permute.xlu1 %323  ;;  %v3746_v22 = vpop.permute.xlu0 %318 }
  0xd9   :  { %5693 = vst [vmem:[#allocation44_spill] sm:$0xff] %v3744_v21  ;;  %5694 = vst [vmem:[#allocation45_spill] sm:$0xff] %v3746_v22  ;;  %841 = vperm.xlu1 %3035, %v787_v17   ;;  %836 = vperm.xlu0 %3034, %v786_v18   ;;  %v801_v17 = vld [vmem:[%s5650_s1 + $0x198] sm:$0xff]  ;;  %v800_v18 = vld [vmem:[%s5650_s1 + $0x190] sm:$0xff] }
  0xdc   :  { %v3754_v29 = vpop.permute.xlu1 %333  ;;  %v3756_v30 = vpop.permute.xlu0 %328 }
  0xdd   :  { %5695 = vst [vmem:[#allocation46_spill] sm:$0xff] %v3754_v29  ;;  %5696 = vst [vmem:[#allocation47_spill] sm:$0xff] %v3756_v30  ;;  %851 = vperm.xlu1 %3035, %v789_v25   ;;  %846 = vperm.xlu0 %3034, %v788_v26   ;;  %v2271_v30 = vld [vmem:[%s5650_s1 + $0x328] sm:$0xff] }
  0xe0   :  { %v3764_v37 = vpop.permute.xlu1 %343  ;;  %v3766_v38 = vpop.permute.xlu0 %338 }
  0xe1   :  { %5697 = vst [vmem:[#allocation48_spill] sm:$0xff] %v3764_v37  ;;  %5698 = vst [vmem:[#allocation49_spill] sm:$0xff] %v3766_v38  ;;  %861 = vperm.xlu1 %3035, %v791_v33   ;;  %856 = vperm.xlu0 %3034, %v790_v34   ;;  %v803_v33 = vld [vmem:[%s5650_s1 + $0x1a8] sm:$0xff]  ;;  %v802_v34 = vld [vmem:[%s5650_s1 + $0x1a0] sm:$0xff] }
  0xe2   :  { %v2021_v37 = vld [vmem:[%s5652_s3 + $0x288] sm:$0xff]  ;;  %v2031_v38 = vld [vmem:[%s5652_s3 + $0x2d8] sm:$0xff] }
  0xe4   :  { %v3774_v45 = vpop.permute.xlu1 %353  ;;  %v3776_v46 = vpop.permute.xlu0 %348 }
  0xe5   :  { %5699 = vst [vmem:[#allocation50_spill] sm:$0xff] %v3774_v45  ;;  %5700 = vst [vmem:[#allocation51_spill] sm:$0xff] %v3776_v46  ;;  %871 = vperm.xlu1 %3035, %v793_v41   ;;  %866 = vperm.xlu0 %3034, %v792_v42   ;;  %v2009_v45 = vld [vmem:[%s5652_s3 + $0x228] sm:$0xff] }
  0xe8   :  { %v3784_v53 = vpop.permute.xlu1 %363  ;;  %v3786_v54 = vpop.permute.xlu0 %358 }
  0xe9   :  { %5701 = vst [vmem:[#allocation52_spill] sm:$0xff] %v3784_v53  ;;  %5702 = vst [vmem:[#allocation53_spill] sm:$0xff] %v3786_v54  ;;  %881 = vperm.xlu1 %3035, %v795_v49   ;;  %876 = vperm.xlu0 %3034, %v794_v50   ;;  %v805_v49 = vld [vmem:[%s5650_s1 + $0x1b8] sm:$0xff]  ;;  %v804_v50 = vld [vmem:[%s5650_s1 + $0x1b0] sm:$0xff] }
  0xea   :  { %v1535_v53 = vld [vmem:[%s5650_s1 + $0x258] sm:$0xff] }
  0xeb   :  { %v1755_v54 = vld [vmem:[%s5651_s2 + $0x238] sm:$0xff] }
  0xec   :  { %v3794_v61 = vpop.permute.xlu1 %373  ;;  %v3796_v62 = vpop.permute.xlu0 %368 }
  0xed   :  { %5703 = vst [vmem:[#allocation54_spill] sm:$0xff] %v3794_v61  ;;  %5704 = vst [vmem:[#allocation55_spill] sm:$0xff] %v3796_v62  ;;  %891 = vperm.xlu1 %3035, %v797_v57   ;;  %886 = vperm.xlu0 %3034, %v796_v58  }
  0xf0   :  { %v3804_v9 = vpop.permute.xlu1 %383  ;;  %v3806_v10 = vpop.permute.xlu0 %378 }
  0xf1   :  { %5705 = vst [vmem:[#allocation56_spill] sm:$0xff] %v3804_v9  ;;  %5706 = vst [vmem:[#allocation57_spill] sm:$0xff] %v3806_v10  ;;  %901 = vperm.xlu1 %3035, %v799_v1   ;;  %896 = vperm.xlu0 %3034, %v798_v2   ;;  %v807_v1 = vld [vmem:[%s5650_s1 + $0x1c8] sm:$0xff]  ;;  %v806_v2 = vld [vmem:[%s5650_s1 + $0x1c0] sm:$0xff] }
  0xf2   :  { %v1273_v9 = vld [vmem:[%s5652_s3 + $0x158] sm:$0xff]  ;;  %v1275_v10 = vld [vmem:[%s5652_s3 + $0x168] sm:$0xff] }
  0xf4   :  { %v3814_v25 = vpop.permute.xlu1 %393  ;;  %v3816_v26 = vpop.permute.xlu0 %388 }
  0xf5   :  { %5707 = vst [vmem:[#allocation58_spill] sm:$0xff] %v3814_v25  ;;  %5708 = vst [vmem:[#allocation59_spill] sm:$0xff] %v3816_v26  ;;  %911 = vperm.xlu1 %3035, %v801_v17   ;;  %906 = vperm.xlu0 %3034, %v800_v18   ;;  %v1267_v26 = vld [vmem:[%s5652_s3 + $0x128] sm:$0xff]  ;;  %v1269_v25 = vld [vmem:[%s5652_s3 + $0x138] sm:$0xff] }
  0xf8   :  { %v3824_v41 = vpop.permute.xlu1 %403  ;;  %v3826_v42 = vpop.permute.xlu0 %398 }
  0xf9   :  { %5709 = vst [vmem:[#allocation60_spill] sm:$0xff] %v3824_v41  ;;  %5710 = vst [vmem:[#allocation61_spill] sm:$0xff] %v3826_v42  ;;  %921 = vperm.xlu1 %3035, %v803_v33   ;;  %916 = vperm.xlu0 %3034, %v802_v34   ;;  %v809_v33 = vld [vmem:[%s5650_s1 + $0x1d8] sm:$0xff]  ;;  %v808_v34 = vld [vmem:[%s5650_s1 + $0x1d0] sm:$0xff] }
  0xfa   :  { %v1023_v41 = vld [vmem:[%s5651_s2 + $0x188] sm:$0xff] }
  0xfc   :  { %v3834_v57 = vpop.permute.xlu1 %413  ;;  %v3836_v58 = vpop.permute.xlu0 %408 }
  0xfd   :  { %5711 = vst [vmem:[#allocation62_spill] sm:$0xff] %v3834_v57  ;;  %5712 = vst [vmem:[#allocation63_spill] sm:$0xff] %v3836_v58  ;;  %931 = vperm.xlu1 %3035, %v805_v49   ;;  %926 = vperm.xlu0 %3034, %v804_v50  }
 0x100   :  { %v3844_v17 = vpop.permute.xlu1 %423  ;;  %v3846_v18 = vpop.permute.xlu0 %418 }
 0x101   :  { %5713 = vst [vmem:[#allocation64_spill] sm:$0xff] %v3844_v17  ;;  %5714 = vst [vmem:[#allocation65_spill] sm:$0xff] %v3846_v18  ;;  %941 = vperm.xlu1 %3035, %v807_v1   ;;  %936 = vperm.xlu0 %3034, %v806_v2   ;;  %v810_v1 = vld [vmem:[%s5650_s1 + $0x1e0] sm:$0xff]  ;;  %v1015_v17 = vld [vmem:[%s5651_s2 + $0x148] sm:$0xff] }
 0x104   :  { %v3854_v49 = vpop.permute.xlu1 %433  ;;  %v3856_v50 = vpop.permute.xlu0 %428 }
 0x105   :  { %5715 = vst [vmem:[#allocation66_spill] sm:$0xff] %v3854_v49  ;;  %5716 = vst [vmem:[#allocation67_spill] sm:$0xff] %v3856_v50  ;;  %951 = vperm.xlu1 %3035, %v809_v33   ;;  %946 = vperm.xlu0 %3034, %v808_v34   ;;  %v812_v33 = vld [vmem:[%s5650_s1 + $0x1f0] sm:$0xff] }
 0x108   :  { %v3864_v2 = vpop.permute.xlu1 %443  ;;  %v3866_v0 = vpop.permute.xlu0 %438 }
 0x109   :  { %5717 = vst [vmem:[#allocation68_spill] sm:$0xff] %v3864_v2  ;;  %5718 = vst [vmem:[#allocation69_spill] sm:$0xff] %v3866_v0  ;;  %961 = vperm.xlu1 %3035, %v811_v63   ;;  %956 = vperm.xlu0 %3034, %v810_v1   ;;  %v1007_v0 = vld [vmem:[%s5651_s2 + $0x108] sm:$0xff]  ;;  %v1006_v63 = vld [vmem:[%s5651_s2 + $0x100] sm:$0xff] }
 0x10c   :  { %v3874_v34 = vpop.permute.xlu1 %453  ;;  %v3876_v50 = vpop.permute.xlu0 %448 }
 0x10d   :  { %5719 = vst [vmem:[#allocation70_spill] sm:$0xff] %v3874_v34  ;;  %5720 = vst [vmem:[#allocation71_spill] sm:$0xff] %v3876_v50  ;;  %971 = vperm.xlu1 %3035, %v813_v60   ;;  %966 = vperm.xlu0 %3034, %v812_v33   ;;  %v1009_v34 = vld [vmem:[%s5651_s2 + $0x118] sm:$0xff]  ;;  %v1008_v60 = vld [vmem:[%s5651_s2 + $0x110] sm:$0xff] }
 0x110   :  { %v3884_v1 = vpop.permute.xlu1 %559  ;;  %v3886_v2 = vpop.permute.xlu0 %554 }
 0x111   :  { %5721 = vst [vmem:[#allocation72_spill] sm:$0xff] %v3884_v1  ;;  %5722 = vst [vmem:[#allocation73_spill] sm:$0xff] %v3886_v2  ;;  %1045 = vperm.xlu1 %3035, %v1007_v0   ;;  %1040 = vperm.xlu0 %3034, %v1006_v63   ;;  %v1010_v0 = vld [vmem:[%s5651_s2 + $0x120] sm:$0xff]  ;;  %v2277_v1 = vld [vmem:[%s5650_s1 + $0x358] sm:$0xff] }
 0x114   :  { %v3894_v33 = vpop.permute.xlu1 %569  ;;  %v3896_v50 = vpop.permute.xlu0 %564 }
 0x115   :  { %5723 = vst [vmem:[#allocation74_spill] sm:$0xff] %v3894_v33  ;;  %5724 = vst [vmem:[#allocation75_spill] sm:$0xff] %v3896_v50  ;;  %1055 = vperm.xlu1 %3035, %v1009_v34   ;;  %1050 = vperm.xlu0 %3034, %v1008_v60   ;;  %v1012_v34 = vld [vmem:[%s5651_s2 + $0x130] sm:$0xff]  ;;  %v2273_v50 = vld [vmem:[%s5650_s1 + $0x338] sm:$0xff] }
 0x118   :  { %v3904_v63 = vpop.permute.xlu1 %579  ;;  %v3906_v49 = vpop.permute.xlu0 %574 }
 0x119   :  { %5725 = vst [vmem:[#allocation76_spill] sm:$0xff] %v3904_v63  ;;  %5726 = vst [vmem:[#allocation77_spill] sm:$0xff] %v3906_v49  ;;  %1065 = vperm.xlu1 %3035, %v1011_v59   ;;  %1060 = vperm.xlu0 %3034, %v1010_v0   ;;  %v1014_v59 = vld [vmem:[%s5651_s2 + $0x140] sm:$0xff]  ;;  %v2023_v63 = vld [vmem:[%s5652_s3 + $0x298] sm:$0xff] }
 0x11a   :  { %v2033_v49 = vld [vmem:[%s5652_s3 + $0x2e8] sm:$0xff] }
 0x11c   :  { %v3914_v60 = vpop.permute.xlu1 %589  ;;  %v3916_v18 = vpop.permute.xlu0 %584 }
 0x11d   :  { %5727 = vst [vmem:[#allocation78_spill] sm:$0xff] %v3914_v60  ;;  %5728 = vst [vmem:[#allocation79_spill] sm:$0xff] %v3916_v18  ;;  %1075 = vperm.xlu1 %3035, %v1013_v56   ;;  %1070 = vperm.xlu0 %3034, %v1012_v34   ;;  %v1016_v56 = vld [vmem:[%s5651_s2 + $0x150] sm:$0xff]  ;;  %v2011_v60 = vld [vmem:[%s5652_s3 + $0x238] sm:$0xff] }
 0x120   :  { %v3924_v0 = vpop.permute.xlu1 %599  ;;  %v3926_v55 = vpop.permute.xlu0 %594 }
 0x121   :  { %5729 = vst [vmem:[#allocation80_spill] sm:$0xff] %v3924_v0  ;;  %5730 = vst [vmem:[#allocation81_spill] sm:$0xff] %v3926_v55  ;;  %1085 = vperm.xlu1 %3035, %v1015_v17   ;;  %1080 = vperm.xlu0 %3034, %v1014_v59   ;;  %v1018_v17 = vld [vmem:[%s5651_s2 + $0x160] sm:$0xff]  ;;  %v1537_v0 = vld [vmem:[%s5650_s1 + $0x268] sm:$0xff] }
 0x124   :  { %v3934_v34 = vpop.permute.xlu1 %609  ;;  %v3936_v58 = vpop.permute.xlu0 %604 }
 0x125   :  { %5731 = vst [vmem:[#allocation82_spill] sm:$0xff] %v3934_v34  ;;  %5732 = vst [vmem:[#allocation83_spill] sm:$0xff] %v3936_v58  ;;  %1095 = vperm.xlu1 %3035, %v1017_v52   ;;  %1090 = vperm.xlu0 %3034, %v1016_v56   ;;  %v1020_v52 = vld [vmem:[%s5651_s2 + $0x170] sm:$0xff]  ;;  %v1529_v34 = vld [vmem:[%s5650_s1 + $0x228] sm:$0xff] }
 0x128   :  { %v3944_v59 = vpop.permute.xlu1 %619  ;;  %v3946_v57 = vpop.permute.xlu0 %614 }
 0x129   :  { %5733 = vst [vmem:[#allocation84_spill] sm:$0xff] %v3944_v59  ;;  %5734 = vst [vmem:[#allocation85_spill] sm:$0xff] %v3946_v57  ;;  %1105 = vperm.xlu1 %3035, %v1019_v51   ;;  %1100 = vperm.xlu0 %3034, %v1018_v17   ;;  %v1022_v51 = vld [vmem:[%s5651_s2 + $0x180] sm:$0xff]  ;;  %v1277_v57 = vld [vmem:[%s5652_s3 + $0x178] sm:$0xff] }
 0x12c   :  { %v3954_v56 = vpop.permute.xlu1 %629  ;;  %v3956_v42 = vpop.permute.xlu0 %624 }
 0x12d   :  { %5735 = vst [vmem:[#allocation86_spill] sm:$0xff] %v3954_v56  ;;  %5736 = vst [vmem:[#allocation87_spill] sm:$0xff] %v3956_v42  ;;  %1115 = vperm.xlu1 %3035, %v1021_v48   ;;  %1110 = vperm.xlu0 %3034, %v1020_v52   ;;  %v1025_v56 = vld [vmem:[%s5651_s2 + $0x198] sm:$0xff]  ;;  %v1024_v48 = vld [vmem:[%s5651_s2 + $0x190] sm:$0xff] }
 0x130   :  { %v3964_v17 = vpop.permute.xlu1 %639  ;;  %v3966_v59 = vpop.permute.xlu0 %634 }
 0x131   :  { %5737 = vst [vmem:[#allocation88_spill] sm:$0xff] %v3964_v17  ;;  %5738 = vst [vmem:[#allocation89_spill] sm:$0xff] %v3966_v59  ;;  %1125 = vperm.xlu1 %3035, %v1023_v41   ;;  %1120 = vperm.xlu0 %3034, %v1022_v51   ;;  %v1027_v17 = vld [vmem:[%s5651_s2 + $0x1a8] sm:$0xff]  ;;  %v1026_v41 = vld [vmem:[%s5651_s2 + $0x1a0] sm:$0xff] }
 0x134   :  { %v3974_v52 = vpop.permute.xlu1 %649  ;;  %v3976_v42 = vpop.permute.xlu0 %644 }
 0x135   :  { %5739 = vst [vmem:[#allocation90_spill] sm:$0xff] %v3974_v52  ;;  %5740 = vst [vmem:[#allocation91_spill] sm:$0xff] %v3976_v42  ;;  %1135 = vperm.xlu1 %3035, %v1025_v56   ;;  %1130 = vperm.xlu0 %3034, %v1024_v48   ;;  %v1029_v52 = vld [vmem:[%s5651_s2 + $0x1b8] sm:$0xff]  ;;  %v1028_v56 = vld [vmem:[%s5651_s2 + $0x1b0] sm:$0xff] }
 0x138   :  { %v3984_v51 = vpop.permute.xlu1 %659  ;;  %v3986_v59 = vpop.permute.xlu0 %654 }
 0x139   :  { %5741 = vst [vmem:[#allocation92_spill] sm:$0xff] %v3984_v51  ;;  %5742 = vst [vmem:[#allocation93_spill] sm:$0xff] %v3986_v59  ;;  %1145 = vperm.xlu1 %3035, %v1027_v17   ;;  %1140 = vperm.xlu0 %3034, %v1026_v41   ;;  %v1031_v51 = vld [vmem:[%s5651_s2 + $0x1c8] sm:$0xff]  ;;  %v1030_v17 = vld [vmem:[%s5651_s2 + $0x1c0] sm:$0xff] }
 0x13c   :  { %v3994_v48 = vpop.permute.xlu1 %669  ;;  %v3996_v42 = vpop.permute.xlu0 %664 }
 0x13d   :  { %5743 = vst [vmem:[#allocation94_spill] sm:$0xff] %v3994_v48  ;;  %5744 = vst [vmem:[#allocation95_spill] sm:$0xff] %v3996_v42  ;;  %1155 = vperm.xlu1 %3035, %v1029_v52   ;;  %1150 = vperm.xlu0 %3034, %v1028_v56   ;;  %v1033_v42 = vld [vmem:[%s5651_s2 + $0x1d8] sm:$0xff]  ;;  %v1032_v52 = vld [vmem:[%s5651_s2 + $0x1d0] sm:$0xff] }
 0x140   :  { %v4004_v41 = vpop.permute.xlu1 %679  ;;  %v4006_v59 = vpop.permute.xlu0 %674 }
 0x141   :  { %5745 = vst [vmem:[#allocation96_spill] sm:$0xff] %v4004_v41  ;;  %5746 = vst [vmem:[#allocation97_spill] sm:$0xff] %v4006_v59  ;;  %1165 = vperm.xlu1 %3035, %v1031_v51   ;;  %1160 = vperm.xlu0 %3034, %v1030_v17   ;;  %v1035_v41 = vld [vmem:[%s5651_s2 + $0x1e8] sm:$0xff]  ;;  %v1034_v51 = vld [vmem:[%s5651_s2 + $0x1e0] sm:$0xff] }
 0x144   :  { %v4014_v56 = vpop.permute.xlu1 %689  ;;  %v4016_v48 = vpop.permute.xlu0 %684 }
 0x145   :  { %5747 = vst [vmem:[#allocation98_spill] sm:$0xff] %v4014_v56  ;;  %5748 = vst [vmem:[#allocation99_spill] sm:$0xff] %v4016_v48  ;;  %1175 = vperm.xlu1 %3035, %v1033_v42   ;;  %1170 = vperm.xlu0 %3034, %v1032_v52   ;;  %v1037_v56 = vld [vmem:[%s5651_s2 + $0x1f8] sm:$0xff]  ;;  %v1036_v42 = vld [vmem:[%s5651_s2 + $0x1f0] sm:$0xff] }
 0x148   :  { %v4024_v17 = vpop.permute.xlu1 %699  ;;  %v4026_v59 = vpop.permute.xlu0 %694 }
 0x149   :  { %5749 = vst [vmem:[#allocation100_spill] sm:$0xff] %v4024_v17  ;;  %5750 = vst [vmem:[#allocation101_spill] sm:$0xff] %v4026_v59  ;;  %1185 = vperm.xlu1 %3035, %v1035_v41   ;;  %1180 = vperm.xlu0 %3034, %v1034_v51   ;;  %v1263_v17 = vld [vmem:[%s5652_s3 + $0x108] sm:$0xff]  ;;  %v1262_v41 = vld [vmem:[%s5652_s3 + $0x100] sm:$0xff] }
 0x14c   :  { %v4034_v52 = vpop.permute.xlu1 %709  ;;  %v4036_v48 = vpop.permute.xlu0 %704 }
 0x14d   :  { %5751 = vst [vmem:[#allocation102_spill] sm:$0xff] %v4034_v52  ;;  %5752 = vst [vmem:[#allocation103_spill] sm:$0xff] %v4036_v48  ;;  %1195 = vperm.xlu1 %3035, %v1037_v56   ;;  %1190 = vperm.xlu0 %3034, %v1036_v42   ;;  %v1265_v52 = vld [vmem:[%s5652_s3 + $0x118] sm:$0xff]  ;;  %v1264_v56 = vld [vmem:[%s5652_s3 + $0x110] sm:$0xff] }
 0x150   :  { %v4044_v51 = vpop.permute.xlu1 %821  ;;  %v4046_v59 = vpop.permute.xlu0 %816 }
 0x151   :  { %5753 = vst [vmem:[#allocation104_spill] sm:$0xff] %v4044_v51  ;;  %5754 = vst [vmem:[#allocation105_spill] sm:$0xff] %v4046_v59  ;;  %1301 = vperm.xlu1 %3035, %v1263_v17   ;;  %1296 = vperm.xlu0 %3034, %v1262_v41   ;;  %v1266_v17 = vld [vmem:[%s5652_s3 + $0x120] sm:$0xff]  ;;  %v67_v51 = vlaneseq }
 0x153   :  { %v68_v6 = vshrl.u32 %v67_v51, 7 }
 0x154   :  { %v4054_v42 = vpop.permute.xlu1 %831  ;;  %v4056_v48 = vpop.permute.xlu0 %826 }
 0x155   :  { %5755 = vst [vmem:[#allocation106_spill] sm:$0xff] %v4054_v42  ;;  %5756 = vst [vmem:[#allocation107_spill] sm:$0xff] %v4056_v48  ;;  %1311 = vperm.xlu1 %3035, %v1265_v52   ;;  %1306 = vperm.xlu0 %3034, %v1264_v56   ;;  %v1268_v52 = vld [vmem:[%s5652_s3 + $0x130] sm:$0xff] }
 0x158   :  { %v4064_v41 = vpop.permute.xlu1 %841  ;;  %v4066_v47 = vpop.permute.xlu0 %836 }
 0x159   :  { %5757 = vst [vmem:[#allocation108_spill] sm:$0xff] %v4064_v41  ;;  %5758 = vst [vmem:[#allocation109_spill] sm:$0xff] %v4066_v47  ;;  %1321 = vperm.xlu1 %3035, %v1267_v26   ;;  %1316 = vperm.xlu0 %3034, %v1266_v17   ;;  %v1270_v26 = vld [vmem:[%s5652_s3 + $0x140] sm:$0xff] }
 0x15c   :  { %v4074_v56 = vpop.permute.xlu1 %851  ;;  %v4076_v44 = vpop.permute.xlu0 %846 }
 0x15d   :  { %5759 = vst [vmem:[#allocation110_spill] sm:$0xff] %v4074_v56  ;;  %5760 = vst [vmem:[#allocation111_spill] sm:$0xff] %v4076_v44  ;;  %1331 = vperm.xlu1 %3035, %v1269_v25   ;;  %1326 = vperm.xlu0 %3034, %v1268_v52   ;;  %v1272_v25 = vld [vmem:[%s5652_s3 + $0x150] sm:$0xff]  ;;  %v2019_v56 = vld [vmem:[%s5652_s3 + $0x278] sm:$0xff] }
 0x160   :  { %v4084_v17 = vpop.permute.xlu1 %861  ;;  %v4086_v40 = vpop.permute.xlu0 %856 }
 0x161   :  { %5761 = vst [vmem:[#allocation112_spill] sm:$0xff] %v4084_v17  ;;  %5762 = vst [vmem:[#allocation113_spill] sm:$0xff] %v4086_v40  ;;  %1341 = vperm.xlu1 %3035, %v1271_v43   ;;  %1336 = vperm.xlu0 %3034, %v1270_v26   ;;  %v1274_v43 = vld [vmem:[%s5652_s3 + $0x160] sm:$0xff] }
 0x164   :  { %v4094_v52 = vpop.permute.xlu1 %871  ;;  %v4096_v39 = vpop.permute.xlu0 %866 }
 0x165   :  { %5763 = vst [vmem:[#allocation114_spill] sm:$0xff] %v4094_v52  ;;  %5764 = vst [vmem:[#allocation115_spill] sm:$0xff] %v4096_v39  ;;  %1351 = vperm.xlu1 %3035, %v1273_v9   ;;  %1346 = vperm.xlu0 %3034, %v1272_v25   ;;  %v1276_v9 = vld [vmem:[%s5652_s3 + $0x170] sm:$0xff]  ;;  %v1533_v52 = vld [vmem:[%s5650_s1 + $0x248] sm:$0xff] }
 0x168   :  { %v4104_v26 = vpop.permute.xlu1 %881  ;;  %v4106_v35 = vpop.permute.xlu0 %876 }
 0x169   :  { %5765 = vst [vmem:[#allocation116_spill] sm:$0xff] %v4104_v26  ;;  %5766 = vst [vmem:[#allocation117_spill] sm:$0xff] %v4106_v35  ;;  %1361 = vperm.xlu1 %3035, %v1275_v10   ;;  %1356 = vperm.xlu0 %3034, %v1274_v43   ;;  %v1279_v26 = vld [vmem:[%s5652_s3 + $0x188] sm:$0xff]  ;;  %v1278_v10 = vld [vmem:[%s5652_s3 + $0x180] sm:$0xff] }
 0x16a   :  { %v1531_v35 = vld [vmem:[%s5650_s1 + $0x238] sm:$0xff] }
 0x16c   :  { %v4114_v25 = vpop.permute.xlu1 %891  ;;  %v4116_v61 = vpop.permute.xlu0 %886 }
 0x16d   :  { %5767 = vst [vmem:[#allocation118_spill] sm:$0xff] %v4114_v25  ;;  %5768 = vst [vmem:[#allocation119_spill] sm:$0xff] %v4116_v61  ;;  %1371 = vperm.xlu1 %3035, %v1277_v57   ;;  %1366 = vperm.xlu0 %3034, %v1276_v9   ;;  %v1281_v25 = vld [vmem:[%s5652_s3 + $0x198] sm:$0xff]  ;;  %v1280_v57 = vld [vmem:[%s5652_s3 + $0x190] sm:$0xff] }
 0x170   :  { %v4124_v43 = vpop.permute.xlu1 %901  ;;  %v4126_v36 = vpop.permute.xlu0 %896 }
 0x171   :  { %5769 = vst [vmem:[#allocation120_spill] sm:$0xff] %v4124_v43  ;;  %5770 = vst [vmem:[#allocation121_spill] sm:$0xff] %v4126_v36  ;;  %1381 = vperm.xlu1 %3035, %v1279_v26   ;;  %1376 = vperm.xlu0 %3034, %v1278_v10   ;;  %v1283_v43 = vld [vmem:[%s5652_s3 + $0x1a8] sm:$0xff]  ;;  %v1282_v26 = vld [vmem:[%s5652_s3 + $0x1a0] sm:$0xff] }
 0x174   :  { %v4134_v9 = vpop.permute.xlu1 %911  ;;  %v4136_v61 = vpop.permute.xlu0 %906 }
 0x175   :  { %5771 = vst [vmem:[#allocation122_spill] sm:$0xff] %v4134_v9  ;;  %5772 = vst [vmem:[#allocation123_spill] sm:$0xff] %v4136_v61  ;;  %1391 = vperm.xlu1 %3035, %v1281_v25   ;;  %1386 = vperm.xlu0 %3034, %v1280_v57   ;;  %v1285_v9 = vld [vmem:[%s5652_s3 + $0x1b8] sm:$0xff]  ;;  %v1284_v25 = vld [vmem:[%s5652_s3 + $0x1b0] sm:$0xff] }
 0x178   :  { %v4144_v10 = vpop.permute.xlu1 %921  ;;  %v4146_v36 = vpop.permute.xlu0 %916 }
 0x179   :  { %5773 = vst [vmem:[#allocation124_spill] sm:$0xff] %v4144_v10  ;;  %5774 = vst [vmem:[#allocation125_spill] sm:$0xff] %v4146_v36  ;;  %1401 = vperm.xlu1 %3035, %v1283_v43   ;;  %1396 = vperm.xlu0 %3034, %v1282_v26   ;;  %v1287_v10 = vld [vmem:[%s5652_s3 + $0x1c8] sm:$0xff]  ;;  %v1286_v43 = vld [vmem:[%s5652_s3 + $0x1c0] sm:$0xff] }
 0x17c   :  { %v4154_v57 = vpop.permute.xlu1 %931  ;;  %v4156_v61 = vpop.permute.xlu0 %926 }
 0x17d   :  { %5775 = vst [vmem:[#allocation126_spill] sm:$0xff] %v4154_v57  ;;  %5776 = vst [vmem:[#allocation127_spill] sm:$0xff] %v4156_v61  ;;  %1411 = vperm.xlu1 %3035, %v1285_v9   ;;  %1406 = vperm.xlu0 %3034, %v1284_v25   ;;  %v1289_v57 = vld [vmem:[%s5652_s3 + $0x1d8] sm:$0xff]  ;;  %v1288_v9 = vld [vmem:[%s5652_s3 + $0x1d0] sm:$0xff] }
 0x180   :  { %v4164_v26 = vpop.permute.xlu1 %941  ;;  %v4166_v36 = vpop.permute.xlu0 %936 }
 0x181   :  { %5777 = vst [vmem:[#allocation128_spill] sm:$0xff] %v4164_v26  ;;  %5778 = vst [vmem:[#allocation129_spill] sm:$0xff] %v4166_v36  ;;  %1421 = vperm.xlu1 %3035, %v1287_v10   ;;  %1416 = vperm.xlu0 %3034, %v1286_v43   ;;  %v1291_v26 = vld [vmem:[%s5652_s3 + $0x1e8] sm:$0xff]  ;;  %v1290_v10 = vld [vmem:[%s5652_s3 + $0x1e0] sm:$0xff] }
 0x184   :  { %v4174_v25 = vpop.permute.xlu1 %951  ;;  %v4176_v61 = vpop.permute.xlu0 %946 }
 0x185   :  { %5779 = vst [vmem:[#allocation130_spill] sm:$0xff] %v4174_v25  ;;  %5780 = vst [vmem:[#allocation131_spill] sm:$0xff] %v4176_v61  ;;  %1431 = vperm.xlu1 %3035, %v1289_v57   ;;  %1426 = vperm.xlu0 %3034, %v1288_v9   ;;  %v1293_v25 = vld [vmem:[%s5652_s3 + $0x1f8] sm:$0xff]  ;;  %v1292_v57 = vld [vmem:[%s5652_s3 + $0x1f0] sm:$0xff] }
 0x188   :  { %v4184_v43 = vpop.permute.xlu1 %961  ;;  %v4186_v36 = vpop.permute.xlu0 %956 }
 0x189   :  { %5781 = vst [vmem:[#allocation132_spill] sm:$0xff] %v4184_v43  ;;  %5782 = vst [vmem:[#allocation133_spill] sm:$0xff] %v4186_v36  ;;  %1441 = vperm.xlu1 %3035, %v1291_v26   ;;  %1436 = vperm.xlu0 %3034, %v1290_v10   ;;  %v1525_v43 = vld [vmem:[%s5650_s1 + $0x208] sm:$0xff]  ;;  %v1524_v26 = vld [vmem:[%s5650_s1 + $0x200] sm:$0xff] }
 0x18c   :  { %v4194_v9 = vpop.permute.xlu1 %971  ;;  %v4196_v61 = vpop.permute.xlu0 %966 }
 0x18d   :  { %5783 = vst [vmem:[#allocation134_spill] sm:$0xff] %v4194_v9  ;;  %5784 = vst [vmem:[#allocation135_spill] sm:$0xff] %v4196_v61  ;;  %1451 = vperm.xlu1 %3035, %v1293_v25   ;;  %1446 = vperm.xlu0 %3034, %v1292_v57   ;;  %v1527_v9 = vld [vmem:[%s5650_s1 + $0x218] sm:$0xff]  ;;  %v1526_v25 = vld [vmem:[%s5650_s1 + $0x210] sm:$0xff] }
 0x190   :  { %v4204_v10 = vpop.permute.xlu1 %1045  ;;  %v4206_v36 = vpop.permute.xlu0 %1040 }
 0x191   :  { %5785 = vst [vmem:[#allocation136_spill] sm:$0xff] %v4204_v10  ;;  %5786 = vst [vmem:[#allocation137_spill] sm:$0xff] %v4206_v36  ;;  %1563 = vperm.xlu1 %3035, %v1525_v43   ;;  %1558 = vperm.xlu0 %3034, %v1524_v26   ;;  %v1528_v43 = vld [vmem:[%s5650_s1 + $0x220] sm:$0xff] }
 0x194   :  { %v4214_v57 = vpop.permute.xlu1 %1055  ;;  %v4216_v61 = vpop.permute.xlu0 %1050 }
 0x195   :  { %5787 = vst [vmem:[#allocation138_spill] sm:$0xff] %v4214_v57  ;;  %5788 = vst [vmem:[#allocation139_spill] sm:$0xff] %v4216_v61  ;;  %1573 = vperm.xlu1 %3035, %v1527_v9   ;;  %1568 = vperm.xlu0 %3034, %v1526_v25   ;;  %v1530_v9 = vld [vmem:[%s5650_s1 + $0x230] sm:$0xff]  ;;  %v2269_v57 = vld [vmem:[%s5650_s1 + $0x318] sm:$0xff] }
 0x196   :  { %v2279_v61 = vld [vmem:[%s5650_s1 + $0x368] sm:$0xff] }
 0x198   :  { %v4224_v26 = vpop.permute.xlu1 %1065  ;;  %v4226_v31 = vpop.permute.xlu0 %1060 }
 0x199   :  { %5789 = vst [vmem:[#allocation140_spill] sm:$0xff] %v4224_v26  ;;  %5790 = vst [vmem:[#allocation141_spill] sm:$0xff] %v4226_v31  ;;  %1583 = vperm.xlu1 %3035, %v1529_v34   ;;  %1578 = vperm.xlu0 %3034, %v1528_v43   ;;  %v1532_v34 = vld [vmem:[%s5650_s1 + $0x240] sm:$0xff]  ;;  %v2027_v26 = vld [vmem:[%s5652_s3 + $0x2b8] sm:$0xff] }
 0x19c   :  { %v4234_v25 = vpop.permute.xlu1 %1075  ;;  %v4236_v62 = vpop.permute.xlu0 %1070 }
 0x19d   :  { %5791 = vst [vmem:[#allocation142_spill] sm:$0xff] %v4234_v25  ;;  %5792 = vst [vmem:[#allocation143_spill] sm:$0xff] %v4236_v62  ;;  %1593 = vperm.xlu1 %3035, %v1531_v35   ;;  %1588 = vperm.xlu0 %3034, %v1530_v9   ;;  %v1534_v35 = vld [vmem:[%s5650_s1 + $0x250] sm:$0xff]  ;;  %v2015_v25 = vld [vmem:[%s5652_s3 + $0x258] sm:$0xff] }
 0x19e   :  { %v2025_v62 = vld [vmem:[%s5652_s3 + $0x2a8] sm:$0xff] }
 0x1a0   :  { %v4244_v43 = vpop.permute.xlu1 %1085  ;;  %v4246_v58 = vpop.permute.xlu0 %1080 }
 0x1a1   :  { %5793 = vst [vmem:[#allocation144_spill] sm:$0xff] %v4244_v43  ;;  %5794 = vst [vmem:[#allocation145_spill] sm:$0xff] %v4246_v58  ;;  %1603 = vperm.xlu1 %3035, %v1533_v52   ;;  %1598 = vperm.xlu0 %3034, %v1532_v34   ;;  %v1536_v52 = vld [vmem:[%s5650_s1 + $0x260] sm:$0xff]  ;;  %v1753_v43 = vld [vmem:[%s5651_s2 + $0x228] sm:$0xff] }
 0x1a2   :  { %v2013_v58 = vld [vmem:[%s5652_s3 + $0x248] sm:$0xff] }
 0x1a4   :  { %v4254_v9 = vpop.permute.xlu1 %1095  ;;  %v4256_v32 = vpop.permute.xlu0 %1090 }
 0x1a5   :  { %5795 = vst [vmem:[#allocation146_spill] sm:$0xff] %v4254_v9  ;;  %5796 = vst [vmem:[#allocation147_spill] sm:$0xff] %v4256_v32  ;;  %1613 = vperm.xlu1 %3035, %v1535_v53   ;;  %1608 = vperm.xlu0 %3034, %v1534_v35   ;;  %v1539_v9 = vld [vmem:[%s5650_s1 + $0x278] sm:$0xff]  ;;  %v1538_v53 = vld [vmem:[%s5650_s1 + $0x270] sm:$0xff] }
 0x1a8   :  { %v4264_v34 = vpop.permute.xlu1 %1105  ;;  %v4266_v27 = vpop.permute.xlu0 %1100 }
 0x1a9   :  { %5797 = vst [vmem:[#allocation148_spill] sm:$0xff] %v4264_v34  ;;  %5798 = vst [vmem:[#allocation149_spill] sm:$0xff] %v4266_v27  ;;  %1623 = vperm.xlu1 %3035, %v1537_v0   ;;  %1618 = vperm.xlu0 %3034, %v1536_v52   ;;  %v1541_v34 = vld [vmem:[%s5650_s1 + $0x288] sm:$0xff]  ;;  %v1540_v0 = vld [vmem:[%s5650_s1 + $0x280] sm:$0xff] }
 0x1ac   :  { %v4274_v35 = vpop.permute.xlu1 %1115  ;;  %v4276_v32 = vpop.permute.xlu0 %1110 }
 0x1ad   :  { %5799 = vst [vmem:[#allocation150_spill] sm:$0xff] %v4274_v35  ;;  %5800 = vst [vmem:[#allocation151_spill] sm:$0xff] %v4276_v32  ;;  %1633 = vperm.xlu1 %3035, %v1539_v9   ;;  %1628 = vperm.xlu0 %3034, %v1538_v53   ;;  %v1543_v35 = vld [vmem:[%s5650_s1 + $0x298] sm:$0xff]  ;;  %v1542_v9 = vld [vmem:[%s5650_s1 + $0x290] sm:$0xff] }
 0x1b0   :  { %v4284_v52 = vpop.permute.xlu1 %1125  ;;  %v4286_v27 = vpop.permute.xlu0 %1120 }
 0x1b1   :  { %5801 = vst [vmem:[#allocation152_spill] sm:$0xff] %v4284_v52  ;;  %5802 = vst [vmem:[#allocation153_spill] sm:$0xff] %v4286_v27  ;;  %1643 = vperm.xlu1 %3035, %v1541_v34   ;;  %1638 = vperm.xlu0 %3034, %v1540_v0   ;;  %v1545_v52 = vld [vmem:[%s5650_s1 + $0x2a8] sm:$0xff]  ;;  %v1544_v34 = vld [vmem:[%s5650_s1 + $0x2a0] sm:$0xff] }
 0x1b4   :  { %v4294_v53 = vpop.permute.xlu1 %1135  ;;  %v4296_v32 = vpop.permute.xlu0 %1130 }
 0x1b5   :  { %5803 = vst [vmem:[#allocation154_spill] sm:$0xff] %v4294_v53  ;;  %5804 = vst [vmem:[#allocation155_spill] sm:$0xff] %v4296_v32  ;;  %1653 = vperm.xlu1 %3035, %v1543_v35   ;;  %1648 = vperm.xlu0 %3034, %v1542_v9   ;;  %v1547_v53 = vld [vmem:[%s5650_s1 + $0x2b8] sm:$0xff]  ;;  %v1546_v35 = vld [vmem:[%s5650_s1 + $0x2b0] sm:$0xff] }
 0x1b8   :  { %v4304_v0 = vpop.permute.xlu1 %1145  ;;  %v4306_v27 = vpop.permute.xlu0 %1140 }
 0x1b9   :  { %5805 = vst [vmem:[#allocation156_spill] sm:$0xff] %v4304_v0  ;;  %5806 = vst [vmem:[#allocation157_spill] sm:$0xff] %v4306_v27  ;;  %1663 = vperm.xlu1 %3035, %v1545_v52   ;;  %1658 = vperm.xlu0 %3034, %v1544_v34   ;;  %v1549_v0 = vld [vmem:[%s5650_s1 + $0x2c8] sm:$0xff]  ;;  %v1548_v52 = vld [vmem:[%s5650_s1 + $0x2c0] sm:$0xff] }
 0x1bc   :  { %v4314_v9 = vpop.permute.xlu1 %1155  ;;  %v4316_v32 = vpop.permute.xlu0 %1150 }
 0x1bd   :  { %5807 = vst [vmem:[#allocation158_spill] sm:$0xff] %v4314_v9  ;;  %5808 = vst [vmem:[#allocation159_spill] sm:$0xff] %v4316_v32  ;;  %1673 = vperm.xlu1 %3035, %v1547_v53   ;;  %1668 = vperm.xlu0 %3034, %v1546_v35   ;;  %v1551_v9 = vld [vmem:[%s5650_s1 + $0x2d8] sm:$0xff]  ;;  %v1550_v53 = vld [vmem:[%s5650_s1 + $0x2d0] sm:$0xff] }
 0x1c0   :  { %v4324_v34 = vpop.permute.xlu1 %1165  ;;  %v4326_v27 = vpop.permute.xlu0 %1160 }
 0x1c1   :  { %5809 = vst [vmem:[#allocation160_spill] sm:$0xff] %v4324_v34  ;;  %5810 = vst [vmem:[#allocation161_spill] sm:$0xff] %v4326_v27  ;;  %1683 = vperm.xlu1 %3035, %v1549_v0   ;;  %1678 = vperm.xlu0 %3034, %v1548_v52   ;;  %v1553_v34 = vld [vmem:[%s5650_s1 + $0x2e8] sm:$0xff]  ;;  %v1552_v0 = vld [vmem:[%s5650_s1 + $0x2e0] sm:$0xff] }
 0x1c4   :  { %v4334_v35 = vpop.permute.xlu1 %1175  ;;  %v4336_v32 = vpop.permute.xlu0 %1170 }
 0x1c5   :  { %5811 = vst [vmem:[#allocation162_spill] sm:$0xff] %v4334_v35  ;;  %5812 = vst [vmem:[#allocation163_spill] sm:$0xff] %v4336_v32  ;;  %1693 = vperm.xlu1 %3035, %v1551_v9   ;;  %1688 = vperm.xlu0 %3034, %v1550_v53   ;;  %v1555_v35 = vld [vmem:[%s5650_s1 + $0x2f8] sm:$0xff]  ;;  %v1554_v9 = vld [vmem:[%s5650_s1 + $0x2f0] sm:$0xff] }
 0x1c8   :  { %v4344_v52 = vpop.permute.xlu1 %1185  ;;  %v4346_v27 = vpop.permute.xlu0 %1180 }
 0x1c9   :  { %5813 = vst [vmem:[#allocation164_spill] sm:$0xff] %v4344_v52  ;;  %5814 = vst [vmem:[#allocation165_spill] sm:$0xff] %v4346_v27  ;;  %1703 = vperm.xlu1 %3035, %v1553_v34   ;;  %1698 = vperm.xlu0 %3034, %v1552_v0   ;;  %v1749_v52 = vld [vmem:[%s5651_s2 + $0x208] sm:$0xff]  ;;  %v1748_v34 = vld [vmem:[%s5651_s2 + $0x200] sm:$0xff] }
 0x1cc   :  { %v4354_v53 = vpop.permute.xlu1 %1195  ;;  %v4356_v32 = vpop.permute.xlu0 %1190 }
 0x1cd   :  { %5815 = vst [vmem:[#allocation166_spill] sm:$0xff] %v4354_v53  ;;  %5816 = vst [vmem:[#allocation167_spill] sm:$0xff] %v4356_v32  ;;  %1713 = vperm.xlu1 %3035, %v1555_v35   ;;  %1708 = vperm.xlu0 %3034, %v1554_v9   ;;  %v1751_v53 = vld [vmem:[%s5651_s2 + $0x218] sm:$0xff]  ;;  %v1750_v35 = vld [vmem:[%s5651_s2 + $0x210] sm:$0xff] }
 0x1d0   :  { %v4364_v0 = vpop.permute.xlu1 %1301  ;;  %v4366_v27 = vpop.permute.xlu0 %1296 }
 0x1d1   :  { %5817 = vst [vmem:[#allocation168_spill] sm:$0xff] %v4364_v0  ;;  %5818 = vst [vmem:[#allocation169_spill] sm:$0xff] %v4366_v27  ;;  %1787 = vperm.xlu1 %3035, %v1749_v52   ;;  %1782 = vperm.xlu0 %3034, %v1748_v34   ;;  %v1752_v52 = vld [vmem:[%s5651_s2 + $0x220] sm:$0xff]  ;;  %v2029_v27 = vld [vmem:[%s5652_s3 + $0x2c8] sm:$0xff] }
 0x1d4   :  { %v4374_v9 = vpop.permute.xlu1 %1311  ;;  %v4376_v32 = vpop.permute.xlu0 %1306 }
 0x1d5   :  { %5819 = vst [vmem:[#allocation170_spill] sm:$0xff] %v4374_v9  ;;  %5820 = vst [vmem:[#allocation171_spill] sm:$0xff] %v4376_v32  ;;  %1797 = vperm.xlu1 %3035, %v1751_v53   ;;  %1792 = vperm.xlu0 %3034, %v1750_v35   ;;  %v1754_v53 = vld [vmem:[%s5651_s2 + $0x230] sm:$0xff]  ;;  %v2017_v9 = vld [vmem:[%s5652_s3 + $0x268] sm:$0xff] }
 0x1d8   :  { %v4384_v34 = vpop.permute.xlu1 %1321  ;;  %v4386_v39 = vpop.permute.xlu0 %1316 }
 0x1d9   :  { %5821 = vst [vmem:[#allocation172_spill] sm:$0xff] %v4384_v34  ;;  %5822 = vst [vmem:[#allocation173_spill] sm:$0xff] %v4386_v39  ;;  %1807 = vperm.xlu1 %3035, %v1753_v43   ;;  %1802 = vperm.xlu0 %3034, %v1752_v52   ;;  %v1757_v34 = vld [vmem:[%s5651_s2 + $0x248] sm:$0xff]  ;;  %v1756_v43 = vld [vmem:[%s5651_s2 + $0x240] sm:$0xff] }
 0x1dc   :  { %v4394_v35 = vpop.permute.xlu1 %1331  ;;  %v4396_v17 = vpop.permute.xlu0 %1326 }
 0x1dd   :  { %5823 = vst [vmem:[#allocation174_spill] sm:$0xff] %v4394_v35  ;;  %5824 = vst [vmem:[#allocation175_spill] sm:$0xff] %v4396_v17  ;;  %1817 = vperm.xlu1 %3035, %v1755_v54   ;;  %1812 = vperm.xlu0 %3034, %v1754_v53   ;;  %v1759_v35 = vld [vmem:[%s5651_s2 + $0x258] sm:$0xff]  ;;  %v1758_v54 = vld [vmem:[%s5651_s2 + $0x250] sm:$0xff] }
 0x1e0   :  { %v4404_v52 = vpop.permute.xlu1 %1341  ;;  %v4406_v55 = vpop.permute.xlu0 %1336 }
 0x1e1   :  { %5825 = vst [vmem:[#allocation176_spill] sm:$0xff] %v4404_v52  ;;  %5826 = vst [vmem:[#allocation177_spill] sm:$0xff] %v4406_v55  ;;  %1827 = vperm.xlu1 %3035, %v1757_v34   ;;  %1822 = vperm.xlu0 %3034, %v1756_v43   ;;  %v1761_v52 = vld [vmem:[%s5651_s2 + $0x268] sm:$0xff]  ;;  %v1760_v34 = vld [vmem:[%s5651_s2 + $0x260] sm:$0xff] }
 0x1e4   :  { %v4414_v53 = vpop.permute.xlu1 %1351  ;;  %v4416_v17 = vpop.permute.xlu0 %1346 }
 0x1e5   :  { %5827 = vst [vmem:[#allocation178_spill] sm:$0xff] %v4414_v53  ;;  %5828 = vst [vmem:[#allocation179_spill] sm:$0xff] %v4416_v17  ;;  %1837 = vperm.xlu1 %3035, %v1759_v35   ;;  %1832 = vperm.xlu0 %3034, %v1758_v54   ;;  %v1763_v53 = vld [vmem:[%s5651_s2 + $0x278] sm:$0xff]  ;;  %v1762_v35 = vld [vmem:[%s5651_s2 + $0x270] sm:$0xff] }
 0x1e8   :  { %v4424_v43 = vpop.permute.xlu1 %1361  ;;  %v4426_v55 = vpop.permute.xlu0 %1356 }
 0x1e9   :  { %5829 = vst [vmem:[#allocation180_spill] sm:$0xff] %v4424_v43  ;;  %5830 = vst [vmem:[#allocation181_spill] sm:$0xff] %v4426_v55  ;;  %1847 = vperm.xlu1 %3035, %v1761_v52   ;;  %1842 = vperm.xlu0 %3034, %v1760_v34   ;;  %v1765_v43 = vld [vmem:[%s5651_s2 + $0x288] sm:$0xff]  ;;  %v1764_v52 = vld [vmem:[%s5651_s2 + $0x280] sm:$0xff] }
 0x1ec   :  { %v4434_v54 = vpop.permute.xlu1 %1371  ;;  %v4436_v17 = vpop.permute.xlu0 %1366 }
 0x1ed   :  { %5831 = vst [vmem:[#allocation182_spill] sm:$0xff] %v4434_v54  ;;  %5832 = vst [vmem:[#allocation183_spill] sm:$0xff] %v4436_v17  ;;  %1857 = vperm.xlu1 %3035, %v1763_v53   ;;  %1852 = vperm.xlu0 %3034, %v1762_v35   ;;  %v1767_v54 = vld [vmem:[%s5651_s2 + $0x298] sm:$0xff]  ;;  %v1766_v53 = vld [vmem:[%s5651_s2 + $0x290] sm:$0xff] }
 0x1f0   :  { %v4444_v34 = vpop.permute.xlu1 %1381  ;;  %v4446_v55 = vpop.permute.xlu0 %1376 }
 0x1f1   :  { %5833 = vst [vmem:[#allocation184_spill] sm:$0xff] %v4444_v34  ;;  %5834 = vst [vmem:[#allocation185_spill] sm:$0xff] %v4446_v55  ;;  %1867 = vperm.xlu1 %3035, %v1765_v43   ;;  %1862 = vperm.xlu0 %3034, %v1764_v52   ;;  %v1769_v34 = vld [vmem:[%s5651_s2 + $0x2a8] sm:$0xff]  ;;  %v1768_v43 = vld [vmem:[%s5651_s2 + $0x2a0] sm:$0xff] }
 0x1f4   :  { %v4454_v35 = vpop.permute.xlu1 %1391  ;;  %v4456_v17 = vpop.permute.xlu0 %1386 }
 0x1f5   :  { %5835 = vst [vmem:[#allocation186_spill] sm:$0xff] %v4454_v35  ;;  %5836 = vst [vmem:[#allocation187_spill] sm:$0xff] %v4456_v17  ;;  %1877 = vperm.xlu1 %3035, %v1767_v54   ;;  %1872 = vperm.xlu0 %3034, %v1766_v53   ;;  %v1771_v35 = vld [vmem:[%s5651_s2 + $0x2b8] sm:$0xff]  ;;  %v1770_v54 = vld [vmem:[%s5651_s2 + $0x2b0] sm:$0xff] }
 0x1f8   :  { %v4464_v52 = vpop.permute.xlu1 %1401  ;;  %v4466_v55 = vpop.permute.xlu0 %1396 }
 0x1f9   :  { %5837 = vst [vmem:[#allocation188_spill] sm:$0xff] %v4464_v52  ;;  %5838 = vst [vmem:[#allocation189_spill] sm:$0xff] %v4466_v55  ;;  %1887 = vperm.xlu1 %3035, %v1769_v34   ;;  %1882 = vperm.xlu0 %3034, %v1768_v43   ;;  %v1773_v52 = vld [vmem:[%s5651_s2 + $0x2c8] sm:$0xff]  ;;  %v1772_v34 = vld [vmem:[%s5651_s2 + $0x2c0] sm:$0xff] }
 0x1fc   :  { %v4474_v53 = vpop.permute.xlu1 %1411  ;;  %v4476_v17 = vpop.permute.xlu0 %1406 }
 0x1fd   :  { %5839 = vst [vmem:[#allocation190_spill] sm:$0xff] %v4474_v53  ;;  %5840 = vst [vmem:[#allocation191_spill] sm:$0xff] %v4476_v17  ;;  %1897 = vperm.xlu1 %3035, %v1771_v35   ;;  %1892 = vperm.xlu0 %3034, %v1770_v54   ;;  %v1775_v53 = vld [vmem:[%s5651_s2 + $0x2d8] sm:$0xff]  ;;  %v1774_v35 = vld [vmem:[%s5651_s2 + $0x2d0] sm:$0xff] }
 0x200   :  { %v4484_v43 = vpop.permute.xlu1 %1421  ;;  %v4486_v55 = vpop.permute.xlu0 %1416 }
 0x201   :  { %5841 = vst [vmem:[#allocation192_spill] sm:$0xff] %v4484_v43  ;;  %5842 = vst [vmem:[#allocation193_spill] sm:$0xff] %v4486_v55  ;;  %1907 = vperm.xlu1 %3035, %v1773_v52   ;;  %1902 = vperm.xlu0 %3034, %v1772_v34   ;;  %v1777_v43 = vld [vmem:[%s5651_s2 + $0x2e8] sm:$0xff]  ;;  %v1776_v52 = vld [vmem:[%s5651_s2 + $0x2e0] sm:$0xff] }
 0x204   :  { %v4494_v54 = vpop.permute.xlu1 %1431  ;;  %v4496_v17 = vpop.permute.xlu0 %1426 }
 0x205   :  { %5843 = vst [vmem:[#allocation194_spill] sm:$0xff] %v4494_v54  ;;  %5844 = vst [vmem:[#allocation195_spill] sm:$0xff] %v4496_v17  ;;  %1917 = vperm.xlu1 %3035, %v1775_v53   ;;  %1912 = vperm.xlu0 %3034, %v1774_v35   ;;  %v1779_v54 = vld [vmem:[%s5651_s2 + $0x2f8] sm:$0xff]  ;;  %v1778_v53 = vld [vmem:[%s5651_s2 + $0x2f0] sm:$0xff] }
 0x208   :  { %v4504_v34 = vpop.permute.xlu1 %1441  ;;  %v4506_v55 = vpop.permute.xlu0 %1436 }
 0x209   :  { %5845 = vst [vmem:[#allocation196_spill] sm:$0xff] %v4504_v34  ;;  %5846 = vst [vmem:[#allocation197_spill] sm:$0xff] %v4506_v55  ;;  %1927 = vperm.xlu1 %3035, %v1777_v43   ;;  %1922 = vperm.xlu0 %3034, %v1776_v52   ;;  %v2005_v34 = vld [vmem:[%s5652_s3 + $0x208] sm:$0xff]  ;;  %v2004_v43 = vld [vmem:[%s5652_s3 + $0x200] sm:$0xff] }
 0x20c   :  { %v4514_v35 = vpop.permute.xlu1 %1451  ;;  %v4516_v17 = vpop.permute.xlu0 %1446 }
 0x20d   :  { %5847 = vst [vmem:[#allocation198_spill] sm:$0xff] %v4514_v35  ;;  %5848 = vst [vmem:[#allocation199_spill] sm:$0xff] %v4516_v17  ;;  %1937 = vperm.xlu1 %3035, %v1779_v54   ;;  %1932 = vperm.xlu0 %3034, %v1778_v53   ;;  %v2007_v35 = vld [vmem:[%s5652_s3 + $0x218] sm:$0xff]  ;;  %v2006_v54 = vld [vmem:[%s5652_s3 + $0x210] sm:$0xff] }
 0x210   :  { %v4524_v52 = vpop.permute.xlu1 %1563  ;;  %v4526_v55 = vpop.permute.xlu0 %1558 }
 0x211   :  { %2043 = vperm.xlu1 %3035, %v2005_v34   ;;  %2038 = vperm.xlu0 %3034, %v2004_v43   ;;  %v2008_v34 = vld [vmem:[%s5652_s3 + $0x220] sm:$0xff] }
 0x214   :  { %v4534_v53 = vpop.permute.xlu1 %1573  ;;  %v4536_v17 = vpop.permute.xlu0 %1568 }
 0x215   :  { %2053 = vperm.xlu1 %3035, %v2007_v35   ;;  %2048 = vperm.xlu0 %3034, %v2006_v54   ;;  %v2010_v35 = vld [vmem:[%s5652_s3 + $0x230] sm:$0xff] }
 0x218   :  { %v4544_v43 = vpop.permute.xlu1 %1583  ;;  %v4546_v28 = vpop.permute.xlu0 %1578 }
 0x219   :  { %2063 = vperm.xlu1 %3035, %v2009_v45   ;;  %2058 = vperm.xlu0 %3034, %v2008_v34   ;;  %v2012_v45 = vld [vmem:[%s5652_s3 + $0x240] sm:$0xff] }
 0x21c   :  { %v4554_v54 = vpop.permute.xlu1 %1593  ;;  %v4556_v23 = vpop.permute.xlu0 %1588 }
 0x21d   :  { %2073 = vperm.xlu1 %3035, %v2011_v60   ;;  %2068 = vperm.xlu0 %3034, %v2010_v35   ;;  %v2014_v60 = vld [vmem:[%s5652_s3 + $0x250] sm:$0xff] }
 0x220   :  { %v4564_v34 = vpop.permute.xlu1 %1603  ;;  %v4566_v39 = vpop.permute.xlu0 %1598 }
 0x221   :  { %2083 = vperm.xlu1 %3035, %v2013_v58   ;;  %2078 = vperm.xlu0 %3034, %v2012_v45   ;;  %v2016_v58 = vld [vmem:[%s5652_s3 + $0x260] sm:$0xff] }
 0x224   :  { %v4574_v35 = vpop.permute.xlu1 %1613  ;;  %v4576_v40 = vpop.permute.xlu0 %1608 }
 0x225   :  { %2093 = vperm.xlu1 %3035, %v2015_v25   ;;  %2088 = vperm.xlu0 %3034, %v2014_v60   ;;  %v2018_v25 = vld [vmem:[%s5652_s3 + $0x270] sm:$0xff] }
 0x228   :  { %v4584_v45 = vpop.permute.xlu1 %1623  ;;  %v4586_v46 = vpop.permute.xlu0 %1618 }
 0x229   :  { %2103 = vperm.xlu1 %3035, %v2017_v9   ;;  %2098 = vperm.xlu0 %3034, %v2016_v58   ;;  %v2020_v9 = vld [vmem:[%s5652_s3 + $0x280] sm:$0xff] }
 0x22c   :  { %v4594_v60 = vpop.permute.xlu1 %1633  ;;  %v4596_v18 = vpop.permute.xlu0 %1628 }
 0x22d   :  { %2113 = vperm.xlu1 %3035, %v2019_v56   ;;  %2108 = vperm.xlu0 %3034, %v2018_v25   ;;  %v2022_v56 = vld [vmem:[%s5652_s3 + $0x290] sm:$0xff] }
 0x230   :  { %v4604_v58 = vpop.permute.xlu1 %1643  ;;  %v4606_v24 = vpop.permute.xlu0 %1638 }
 0x231   :  { %2123 = vperm.xlu1 %3035, %v2021_v37   ;;  %2118 = vperm.xlu0 %3034, %v2020_v9   ;;  %v2024_v37 = vld [vmem:[%s5652_s3 + $0x2a0] sm:$0xff] }
 0x234   :  { %v4614_v25 = vpop.permute.xlu1 %1653  ;;  %v4616_v19 = vpop.permute.xlu0 %1648 }
 0x235   :  { %2133 = vperm.xlu1 %3035, %v2023_v63   ;;  %2128 = vperm.xlu0 %3034, %v2022_v56   ;;  %v2026_v63 = vld [vmem:[%s5652_s3 + $0x2b0] sm:$0xff] }
 0x238   :  { %v4624_v9 = vpop.permute.xlu1 %1663  ;;  %v4626_v32 = vpop.permute.xlu0 %1658 }
 0x239   :  { %2143 = vperm.xlu1 %3035, %v2025_v62   ;;  %2138 = vperm.xlu0 %3034, %v2024_v37   ;;  %v2028_v62 = vld [vmem:[%s5652_s3 + $0x2c0] sm:$0xff] }
 0x23c   :  { %v4634_v56 = vpop.permute.xlu1 %1673  ;;  %v4636_v44 = vpop.permute.xlu0 %1668 }
 0x23d   :  { %2153 = vperm.xlu1 %3035, %v2027_v26   ;;  %2148 = vperm.xlu0 %3034, %v2026_v63   ;;  %v2030_v26 = vld [vmem:[%s5652_s3 + $0x2d0] sm:$0xff] }
 0x240   :  { %v4644_v37 = vpop.permute.xlu1 %1683  ;;  %v4646_v0 = vpop.permute.xlu0 %1678 }
 0x241   :  { %2163 = vperm.xlu1 %3035, %v2029_v27   ;;  %2158 = vperm.xlu0 %3034, %v2028_v62   ;;  %v2032_v27 = vld [vmem:[%s5652_s3 + $0x2e0] sm:$0xff] }
 0x244   :  { %v4654_v63 = vpop.permute.xlu1 %1693  ;;  %v4656_v41 = vpop.permute.xlu0 %1688 }
 0x245   :  { %2173 = vperm.xlu1 %3035, %v2031_v38   ;;  %2168 = vperm.xlu0 %3034, %v2030_v26   ;;  %v2034_v38 = vld [vmem:[%s5652_s3 + $0x2f0] sm:$0xff] }
 0x248   :  { %v4664_v62 = vpop.permute.xlu1 %1703  ;;  %v4666_v29 = vpop.permute.xlu0 %1698 }
 0x249   :  { %5849 = vst [vmem:[#allocation200_spill] sm:$0xff] %v4664_v62  ;;  %5850 = vst [vmem:[#allocation201_spill] sm:$0xff] %v4666_v29  ;;  %2183 = vperm.xlu1 %3035, %v2033_v49   ;;  %2178 = vperm.xlu0 %3034, %v2032_v27   ;;  %v2266_v49 = vld [vmem:[%s5650_s1 + $0x300] sm:$0xff] }
 0x24c   :  { %v4674_v26 = vpop.permute.xlu1 %1713  ;;  %v4676_v33 = vpop.permute.xlu0 %1708 }
 0x24d   :  { %5851 = vst [vmem:[#allocation202_spill] sm:$0xff] %v4674_v26  ;;  %5852 = vst [vmem:[#allocation203_spill] sm:$0xff] %v4676_v33  ;;  %2193 = vperm.xlu1 %3035, %v2035_v20   ;;  %2188 = vperm.xlu0 %3034, %v2034_v38   ;;  %v2268_v20 = vld [vmem:[%s5650_s1 + $0x310] sm:$0xff]  ;;  %v69_v26 = vsub.s32 0, %v68_v6 }
 0x250   :  { %v4684_v27 = vpop.permute.xlu1 %1787  ;;  %v4686_v31 = vpop.permute.xlu0 %1782 }
 0x251   :  { %2305 = vperm.xlu1 %3035, %v2267_v15   ;;  %2300 = vperm.xlu0 %3034, %v2266_v49   ;;  %v2270_v15 = vld [vmem:[%s5650_s1 + $0x320] sm:$0xff] }
 0x254   :  { %v4694_v38 = vpop.permute.xlu1 %1797  ;;  %v4696_v47 = vpop.permute.xlu0 %1792 }
 0x255   :  { %2315 = vperm.xlu1 %3035, %v2269_v57   ;;  %2310 = vperm.xlu0 %3034, %v2268_v20   ;;  %v2272_v57 = vld [vmem:[%s5650_s1 + $0x330] sm:$0xff] }
 0x258   :  { %v4704_v49 = vpop.permute.xlu1 %1807  ;;  %v4706_v42 = vpop.permute.xlu0 %1802 }
 0x259   :  { %2325 = vperm.xlu1 %3035, %v2271_v30   ;;  %2320 = vperm.xlu0 %3034, %v2270_v15   ;;  %v2274_v30 = vld [vmem:[%s5650_s1 + $0x340] sm:$0xff] }
 0x25c   :  { %v4714_v20 = vpop.permute.xlu1 %1817  ;;  %v4716_v21 = vpop.permute.xlu0 %1812 }
 0x25d   :  { %2335 = vperm.xlu1 %3035, %v2273_v50   ;;  %2330 = vperm.xlu0 %3034, %v2272_v57   ;;  %v2276_v50 = vld [vmem:[%s5650_s1 + $0x350] sm:$0xff] }
 0x260   :  { %v4724_v15 = vpop.permute.xlu1 %1827  ;;  %v4726_v2 = vpop.permute.xlu0 %1822 }
 0x261   :  { %2345 = vperm.xlu1 %3035, %v2275_v16   ;;  %2340 = vperm.xlu0 %3034, %v2274_v30   ;;  %v2278_v16 = vld [vmem:[%s5650_s1 + $0x360] sm:$0xff] }
 0x264   :  { %v4734_v57 = vpop.permute.xlu1 %1837  ;;  %v4736_v11 = vpop.permute.xlu0 %1832 }
 0x265   :  { %2355 = vperm.xlu1 %3035, %v2277_v1   ;;  %2350 = vperm.xlu0 %3034, %v2276_v50   ;;  %v2281_v1 = vld [vmem:[%s5650_s1 + $0x378] sm:$0xff]  ;;  %v2280_v50 = vld [vmem:[%s5650_s1 + $0x370] sm:$0xff] }
 0x268   :  { %v4744_v30 = vpop.permute.xlu1 %1847  ;;  %v4746_v36 = vpop.permute.xlu0 %1842 }
 0x269   :  { %2365 = vperm.xlu1 %3035, %v2279_v61   ;;  %2360 = vperm.xlu0 %3034, %v2278_v16   ;;  %v2283_v61 = vld [vmem:[%s5650_s1 + $0x388] sm:$0xff]  ;;  %v2282_v16 = vld [vmem:[%s5650_s1 + $0x380] sm:$0xff] }
 0x26c   :  { %v4754_v48 = vpop.permute.xlu1 %1857  ;;  %v4756_v10 = vpop.permute.xlu0 %1852 }
 0x26d   :  { %2375 = vperm.xlu1 %3035, %v2281_v1   ;;  %2370 = vperm.xlu0 %3034, %v2280_v50   ;;  %v29_v1 = vld [vmem:[%s5653_s4] sm:$0x1]  ;;  %v30_v50 = vstv %s25_s28  ;;  %s3030_s28 = sld [smem:[#allocation3 + $0x3]] }
 0x270   :  { %v4764_v59 = vpop.permute.xlu1 %1867  ;;  %v4766_v22 = vpop.permute.xlu0 %1862 }
 0x271   :  { %2385 = vperm.xlu1 %3035, %v2283_v61   ;;  %2380 = vperm.xlu0 %3034, %v2282_v16   ;;  %v31_v61 = vmul.f32 %v30_v50, %v29_v1  ;;  %v32_v16 = vstv %s3028_s8 }
 0x273   :  { %v4791_v33 = vadd.f32 %v32_v16, %v31_v61 }
 0x274   :  { %v4777_v7 = vpop.permute.xlu1 %1877  ;;  %v4779_v14 = vpop.permute.xlu0 %1872 }
 0x275   :  { %2395 = vperm.xlu1 %3035, %v2285_v13   ;;  %2390 = vperm.xlu0 %3034, %v2284_v12   ;;  %5853 = vst [vmem:[#allocation204_spill] sm:$0xff] %v4791_v33  ;;  %v2289_v12 = vld [vmem:[%s5650_s1 + $0x3b8] sm:$0xff]  ;;  %v2288_v13 = vld [vmem:[%s5650_s1 + $0x3b0] sm:$0xff]  ;;  %v4804_v50 = vrot.slane %v4791_v33, %v69_v26 }
 0x276   :  { %v2293_v33 = vld [vmem:[%s5650_s1 + $0x3d8] sm:$0xff] }
 0x277   :  { %v1717_v6 = vmul.f32 %v4524_v52, %v4804_v50  ;;  %v1716_v61 = vmul.f32 %v4526_v55, %v4804_v50  ;;  %v2292_v52 = vld [vmem:[%s5650_s1 + $0x3d0] sm:$0xff]  ;;  %v1718_v55 = vmul.f32 %v4536_v17, %v4804_v50  ;;  %v2294_v17 = vld [vmem:[%s5650_s1 + $0x3e0] sm:$0xff] }
 0x278   :  { %v4787_v4 = vpop.permute.xlu1 %1887  ;;  %v4789_v8 = vpop.permute.xlu0 %1882 }
 0x279   :  { %2405 = vperm.xlu1 %3035, %v2287_v3   ;;  %2400 = vperm.xlu0 %3034, %v2286_v5   ;;  %v2291_v3 = vld [vmem:[%s5650_s1 + $0x3c8] sm:$0xff]  ;;  %v2290_v5 = vld [vmem:[%s5650_s1 + $0x3c0] sm:$0xff] }
 0x27c   :  { %v4799_v51 = vpop.permute.xlu1 %1897  ;;  %v4801_v1 = vpop.permute.xlu0 %1892 }
 0x27d   :  { %2415 = vperm.xlu1 %3035, %v2289_v12   ;;  %2410 = vperm.xlu0 %3034, %v2288_v13   ;;  %v1941_v12 = vadd.f32 %v4684_v27, %v1717_v6  ;;  %v1940_v13 = vadd.f32 %v4686_v31, %v1716_v61  ;;  %v1719_v31 = vmul.f32 %v4534_v53, %v4804_v50 }
 0x27e   :  { %v1942_v27 = vadd.f32 %v4696_v47, %v1718_v55  ;;  %v1721_v47 = vmul.f32 %v4544_v43, %v4804_v50 }
 0x27f   :  { %3036 = vtanh.f32 %v1941_v12  ;;  %v2297_v12 = vld [vmem:[%s5650_s1 + $0x3f8] sm:$0xff] }
 0x280   :  { %v4816_v16 = vpop.permute.xlu1 %1907  ;;  %v4818_v26 = vpop.permute.xlu0 %1902  ;;  %3038 = vtanh.f32 %v1940_v13  ;;  %v1945_v13 = vadd.f32 %v4704_v49, %v1721_v47  ;;  %v1725_v47 = vmul.f32 %v4564_v34, %v4804_v50 }
 0x281   :  { %2425 = vperm.xlu1 %3035, %v2291_v3   ;;  %2420 = vperm.xlu0 %3034, %v2290_v5   ;;  %v2295_v3 = vld [vmem:[%s5650_s1 + $0x3e8] sm:$0xff]  ;;  %v1720_v5 = vmul.f32 %v4546_v28, %v4804_v50  ;;  %3040 = vtanh.f32 %v1942_v27  ;;  %v2296_v28 = vld [vmem:[%s5650_s1 + $0x3f0] sm:$0xff] }
 0x283   :  { %v1944_v53 = vadd.f32 %v4706_v42, %v1720_v5  ;;  %v1723_v42 = vmul.f32 %v4554_v54, %v4804_v50 }
 0x284   :  { %v4830_v62 = vpop.permute.xlu1 %1917  ;;  %v4832_v29 = vpop.permute.xlu0 %1912 }
 0x285   :  { %2435 = vperm.xlu1 %3035, %v2293_v33   ;;  %2430 = vperm.xlu0 %3034, %v2292_v52   ;;  %v1943_v33 = vadd.f32 %v4694_v38, %v1719_v31  ;;  %v1722_v38 = vmul.f32 %v4556_v23, %v4804_v50  ;;  %v2491_v31 = vld [vmem:[%s5651_s2 + $0x308] sm:$0xff]  ;;  %v2490_v23 = vld [vmem:[%s5651_s2 + $0x300] sm:$0xff] }
 0x287   :  { %3042 = vtanh.f32 %v1943_v33  ;;  %v1946_v55 = vadd.f32 %v4716_v21, %v1722_v38  ;;  %v1949_v38 = vadd.f32 %v4724_v15, %v1725_v47  ;;  %v2494_v15 = vld [vmem:[%s5651_s2 + $0x320] sm:$0xff]  ;;  %v1729_v47 = vmul.f32 %v4584_v45, %v4804_v50 }
 0x288   :  { %v4846_v6 = vpop.permute.xlu1 %1927  ;;  %v4848_v61 = vpop.permute.xlu0 %1922  ;;  %3044 = vtanh.f32 %v1944_v53 }
 0x289   :  { %2445 = vperm.xlu1 %3035, %v2295_v3   ;;  %2440 = vperm.xlu0 %3034, %v2294_v17   ;;  %v3037_v49 = vpop.eup %3036  ;;  %v1724_v3 = vmul.f32 %v4566_v39, %v4804_v50  ;;  %3046 = vtanh.f32 %v1945_v13  ;;  %v1947_v17 = vadd.f32 %v4714_v20, %v1723_v42  ;;  %v2492_v39 = vld [vmem:[%s5651_s2 + $0x310] sm:$0xff]  ;;  %v1953_v45 = vadd.f32 %v4744_v30, %v1729_v47  ;;  %v2498_v30 = vld [vmem:[%s5651_s2 + $0x340] sm:$0xff] }
 0x28a   :  { %v3039_v27 = vpop.eup %3038  ;;  %3048 = vtanh.f32 %v1946_v55 }
 0x28b   :  { %v1948_v53 = vadd.f32 %v4726_v2, %v1724_v3  ;;  %v3041_v20 = vpop.eup %3040  ;;  %3050 = vtanh.f32 %v1947_v17  ;;  %v1728_v17 = vmul.f32 %v4586_v46, %v4804_v50  ;;  %v2497_v46 = vld [vmem:[%s5651_s2 + $0x338] sm:$0xff] }
 0x28c   :  { %v4862_v52 = vpop.permute.xlu1 %1937  ;;  %v4864_v43 = vpop.permute.xlu0 %1932 }
 0x28d   :  { %2455 = vperm.xlu1 %3035, %v2297_v12   ;;  %2450 = vperm.xlu0 %3034, %v2296_v28   ;;  %v2493_v12 = vld [vmem:[%s5651_s2 + $0x318] sm:$0xff]  ;;  %v1726_v28 = vmul.f32 %v4576_v40, %v4804_v50  ;;  %3052 = vtanh.f32 %v1948_v53  ;;  %v2495_v40 = vld [vmem:[%s5651_s2 + $0x328] sm:$0xff]  ;;  %v1952_v53 = vadd.f32 %v4746_v36, %v1728_v17 }
 0x28e   :  { %3054 = vtanh.f32 %v1949_v38 }
 0x290   :  { %v2044_v54 = vpop.permute.xlu1 %2043  ;;  %v2039_v5 = vpop.permute.xlu0 %2038 }
 0x291   :  { %v2197_v33 = vmul.f32 %v3037_v49, %v2044_v54  ;;  %v2196_v21 = vmul.f32 %v3039_v27, %v2039_v5  ;;  %2529 = vperm.xlu1 %3035, %v2491_v31   ;;  %2524 = vperm.xlu0 %3034, %v2490_v23   ;;  %v3043_v2 = vpop.eup %3042  ;;  %v1727_v31 = vmul.f32 %v4574_v35, %v4804_v50 }
 0x292   :  { %v1950_v23 = vadd.f32 %v4736_v11, %v1726_v28  ;;  %v3045_v3 = vpop.eup %3044  ;;  %v1730_v28 = vmul.f32 %v4596_v18, %v4804_v50  ;;  %v2499_v18 = vld [vmem:[%s5651_s2 + $0x348] sm:$0xff] }
 0x293   :  { %v2228_v42 = vadd.f32 %v2197_v33, %v2196_v21  ;;  %v1951_v35 = vadd.f32 %v4734_v57, %v1727_v31  ;;  %v3047_v21 = vpop.eup %3046  ;;  %v2496_v57 = vld [vmem:[%s5651_s2 + $0x330] sm:$0xff] }
 0x294   :  { %v2054_v13 = vpop.permute.xlu1 %2053  ;;  %v2049_v34 = vpop.permute.xlu0 %2048  ;;  %3056 = vtanh.f32 %v1950_v23 }
 0x295   :  { %v2198_v55 = vmul.f32 %v3041_v20, %v2049_v34  ;;  %2539 = vperm.xlu1 %3035, %v2493_v12   ;;  %2534 = vperm.xlu0 %3034, %v2492_v39   ;;  %v2199_v49 = vmul.f32 %v3043_v2, %v2054_v13  ;;  %v3049_v20 = vpop.eup %3048  ;;  %3058 = vtanh.f32 %v1951_v35  ;;  %v1954_v2 = vadd.f32 %v4756_v10, %v1730_v28 }
 0x296   :  { %3060 = vtanh.f32 %v1952_v53  ;;  %v1733_v35 = vmul.f32 %v4604_v58, %v4804_v50 }
 0x297   :  { %v2229_v27 = vadd.f32 %v2228_v42, %v2198_v55  ;;  %v3051_v42 = vpop.eup %3050  ;;  %v1731_v55 = vmul.f32 %v4594_v60, %v4804_v50  ;;  %3062 = vtanh.f32 %v1953_v45 }
 0x298   :  { %v2064_v54 = vpop.permute.xlu1 %2063  ;;  %v2059_v5 = vpop.permute.xlu0 %2058  ;;  %3064 = vtanh.f32 %v1954_v2  ;;  %v1957_v58 = vadd.f32 %v4764_v59, %v1733_v35  ;;  %v2502_v59 = vld [vmem:[%s5651_s2 + $0x360] sm:$0xff] }
 0x299   :  { %v2200_v11 = vmul.f32 %v3045_v3, %v2059_v5  ;;  %v2230_v33 = vadd.f32 %v2229_v27, %v2199_v49  ;;  %2549 = vperm.xlu1 %3035, %v2495_v40   ;;  %2544 = vperm.xlu0 %3034, %v2494_v15   ;;  %v2201_v12 = vmul.f32 %v3047_v21, %v2064_v54  ;;  %v3053_v40 = vpop.eup %3052 }
 0x29a   :  { %v1732_v15 = vmul.f32 %v4606_v24, %v4804_v50  ;;  %v1955_v60 = vadd.f32 %v4754_v48, %v1731_v55  ;;  %v3055_v17 = vpop.eup %3054  ;;  %v2501_v24 = vld [vmem:[%s5651_s2 + $0x358] sm:$0xff]  ;;  %v2500_v48 = vld [vmem:[%s5651_s2 + $0x350] sm:$0xff]  ;;  %v1734_v21 = vmul.f32 %v4616_v19, %v4804_v50  ;;  %v2503_v19 = vld [vmem:[%s5651_s2 + $0x368] sm:$0xff]  ;;  %v1737_v55 = vmul.f32 %v4624_v9, %v4804_v50 }
 0x29b   :  { %v2231_v39 = vadd.f32 %v2230_v33, %v2200_v11 }
 0x29c   :  { %v2074_v38 = vpop.permute.xlu1 %2073  ;;  %v2069_v13 = vpop.permute.xlu0 %2068  ;;  %v1956_v54 = vadd.f32 %v4766_v22, %v1732_v15  ;;  %3066 = vtanh.f32 %v1955_v60  ;;  %v1961_v9 = vadd.f32 %v4787_v4, %v1737_v55  ;;  %v2506_v4 = vld [vmem:[%s5651_s2 + $0x380] sm:$0xff] }
 0x29d   :  { %v2202_v36 = vmul.f32 %v3049_v20, %v2069_v13  ;;  %v2232_v34 = vadd.f32 %v2231_v39, %v2201_v12  ;;  %2559 = vperm.xlu1 %3035, %v2497_v46   ;;  %2554 = vperm.xlu0 %3034, %v2496_v57   ;;  %v2203_v31 = vmul.f32 %v3051_v42, %v2074_v38 }
 0x29e   :  { %v3057_v33 = vpop.eup %3056  ;;  %v1735_v12 = vmul.f32 %v4614_v25, %v4804_v50  ;;  %3068 = vtanh.f32 %v1956_v54  ;;  %v1958_v39 = vadd.f32 %v4779_v14, %v1734_v21  ;;  %v1736_v38 = vmul.f32 %v4626_v32, %v4804_v50  ;;  %v2505_v32 = vld [vmem:[%s5651_s2 + $0x378] sm:$0xff] }
 0x29f   :  { %v2233_v23 = vadd.f32 %v2232_v34, %v2202_v36  ;;  %v3059_v57 = vpop.eup %3058  ;;  %3070 = vtanh.f32 %v1957_v58  ;;  %v1740_v54 = vmul.f32 %v4646_v0, %v4804_v50  ;;  %v2509_v0 = vld [vmem:[%s5651_s2 + $0x398] sm:$0xff] }
 0x2a0   :  { %v2084_v49 = vpop.permute.xlu1 %2083  ;;  %v2079_v27 = vpop.permute.xlu0 %2078  ;;  %v1959_v25 = vadd.f32 %v4777_v7, %v1735_v12  ;;  %3072 = vtanh.f32 %v1958_v39  ;;  %v1960_v2 = vadd.f32 %v4789_v8, %v1736_v38  ;;  %v2504_v7 = vld [vmem:[%s5651_s2 + $0x370] sm:$0xff] }
 0x2a1   :  { %v2204_v10 = vmul.f32 %v3053_v40, %v2079_v27  ;;  %v2234_v3 = vadd.f32 %v2233_v23, %v2203_v31  ;;  %2569 = vperm.xlu1 %3035, %v2499_v18   ;;  %2564 = vperm.xlu0 %3034, %v2498_v30   ;;  %v2205_v5 = vmul.f32 %v3055_v17, %v2084_v49  ;;  %v3061_v45 = vpop.eup %3060  ;;  %v5854_v38 = vld [vmem:[#allocation201_spill] sm:$0xff] }
 0x2a2   :  { %v3063_v42 = vpop.eup %3062  ;;  %v1738_v23 = vmul.f32 %v4636_v44, %v4804_v50  ;;  %3074 = vtanh.f32 %v1959_v25  ;;  %v1739_v27 = vmul.f32 %v4634_v56, %v4804_v50  ;;  %v2507_v44 = vld [vmem:[%s5651_s2 + $0x388] sm:$0xff]  ;;  %v1964_v21 = vadd.f32 %v4818_v26, %v1740_v54 }
 0x2a3   :  { %v2235_v11 = vadd.f32 %v2234_v3, %v2204_v10  ;;  %v3065_v31 = vpop.eup %3064  ;;  %3076 = vtanh.f32 %v1960_v2  ;;  %v1744_v25 = vmul.f32 %v5854_v38, %v4804_v50 }
 0x2a4   :  { %v2094_v47 = vpop.permute.xlu1 %2093  ;;  %v2089_v53 = vpop.permute.xlu0 %2088  ;;  %v1962_v10 = vadd.f32 %v4801_v1, %v1738_v23  ;;  %3078 = vtanh.f32 %v1961_v9  ;;  %v1963_v56 = vadd.f32 %v4799_v51, %v1739_v27  ;;  %v2508_v51 = vld [vmem:[%s5651_s2 + $0x390] sm:$0xff] }
 0x2a5   :  { %v2206_v22 = vmul.f32 %v3057_v33, %v2089_v53  ;;  %v2236_v46 = vadd.f32 %v2235_v11, %v2205_v5  ;;  %2579 = vperm.xlu1 %3035, %v2501_v24   ;;  %2574 = vperm.xlu0 %3034, %v2500_v48   ;;  %v2207_v20 = vmul.f32 %v3059_v57, %v2094_v47 }
 0x2a6   :  { %v3067_v49 = vpop.eup %3066  ;;  %v1741_v33 = vmul.f32 %v4644_v37, %v4804_v50  ;;  %3080 = vtanh.f32 %v1962_v10  ;;  %v1968_v2 = vadd.f32 %v4848_v61, %v1744_v25 }
 0x2a7   :  { %v2237_v28 = vadd.f32 %v2236_v46, %v2206_v22  ;;  %v1742_v22 = vmul.f32 %v4656_v41, %v4804_v50  ;;  %3082 = vtanh.f32 %v1963_v56  ;;  %v2511_v41 = vld [vmem:[%s5651_s2 + $0x3a8] sm:$0xff] }
 0x2a8   :  { %v2104_v13 = vpop.permute.xlu1 %2103  ;;  %v2099_v36 = vpop.permute.xlu0 %2098  ;;  %v1965_v37 = vadd.f32 %v4816_v16, %v1741_v33  ;;  %3084 = vtanh.f32 %v1964_v21  ;;  %v2510_v16 = vld [vmem:[%s5651_s2 + $0x3a0] sm:$0xff] }
 0x2a9   :  { %v2208_v14 = vmul.f32 %v3061_v45, %v2099_v36  ;;  %v2238_v34 = vadd.f32 %v2237_v28, %v2207_v20  ;;  %2589 = vperm.xlu1 %3035, %v2503_v19   ;;  %2584 = vperm.xlu0 %3034, %v2502_v59   ;;  %v2209_v18 = vmul.f32 %v3063_v42, %v2104_v13  ;;  %v3069_v35 = vpop.eup %3068  ;;  %v5855_v42 = vld [vmem:[#allocation200_spill] sm:$0xff] }
 0x2aa   :  { %v3071_v11 = vpop.eup %3070  ;;  %v1743_v19 = vmul.f32 %v4654_v63, %v4804_v50  ;;  %v1966_v59 = vadd.f32 %v4832_v29, %v1742_v22  ;;  %3086 = vtanh.f32 %v1965_v37  ;;  %v1745_v55 = vmul.f32 %v5855_v42, %v4804_v50  ;;  %v2747_v22 = vld [vmem:[%s5652_s3 + $0x308] sm:$0xff] }
 0x2ab   :  { %v2239_v30 = vadd.f32 %v2238_v34, %v2208_v14  ;;  %v3073_v53 = vpop.eup %3072 }
 0x2ac   :  { %v2114_v40 = vpop.permute.xlu1 %2113  ;;  %v2109_v15 = vpop.permute.xlu0 %2108  ;;  %v1967_v63 = vadd.f32 %v4830_v62, %v1743_v19  ;;  %3088 = vtanh.f32 %v1966_v59  ;;  %v2512_v62 = vld [vmem:[%s5651_s2 + $0x3b0] sm:$0xff]  ;;  %v1969_v9 = vadd.f32 %v4846_v6, %v1745_v55  ;;  %v2514_v6 = vld [vmem:[%s5651_s2 + $0x3c0] sm:$0xff] }
 0x2ad   :  { %v2210_v8 = vmul.f32 %v3065_v31, %v2109_v15  ;;  %v2240_v60 = vadd.f32 %v2239_v30, %v2209_v18  ;;  %2599 = vperm.xlu1 %3035, %v2505_v32   ;;  %2594 = vperm.xlu0 %3034, %v2504_v7   ;;  %v2211_v3 = vmul.f32 %v3067_v49, %v2114_v40  ;;  %v3075_v39 = vpop.eup %3074  ;;  %v2513_v32 = vld [vmem:[%s5651_s2 + $0x3b8] sm:$0xff] }
 0x2ae   :  { %v3077_v45 = vpop.eup %3076  ;;  %v5856_v31 = vld [vmem:[#allocation203_spill] sm:$0xff]  ;;  %3090 = vtanh.f32 %v1967_v63  ;;  %v5857_v49 = vld [vmem:[#allocation202_spill] sm:$0xff] }
 0x2af   :  { %v2241_v17 = vadd.f32 %v2240_v60, %v2210_v8  ;;  %v3079_v34 = vpop.eup %3078  ;;  %v1746_v23 = vmul.f32 %v5856_v31, %v4804_v50  ;;  %v1747_v27 = vmul.f32 %v5857_v49, %v4804_v50  ;;  %3092 = vtanh.f32 %v1968_v2  ;;  %v2756_v31 = vld [vmem:[%s5652_s3 + $0x350] sm:$0xff] }
 0x2b0   :  { %v2124_v24 = vpop.permute.xlu1 %2123  ;;  %v2119_v48 = vpop.permute.xlu0 %2118  ;;  %3094 = vtanh.f32 %v1969_v9  ;;  %v2760_v49 = vld [vmem:[%s5652_s3 + $0x370] sm:$0xff] }
 0x2b1   :  { %v2212_v1 = vmul.f32 %v3069_v35, %v2119_v48  ;;  %v2242_v5 = vadd.f32 %v2241_v17, %v2211_v3  ;;  %2609 = vperm.xlu1 %3035, %v2507_v44   ;;  %2604 = vperm.xlu0 %3034, %v2506_v4   ;;  %v2213_v58 = vmul.f32 %v3071_v11, %v2124_v24  ;;  %v3081_v30 = vpop.eup %3080  ;;  %v2515_v44 = vld [vmem:[%s5651_s2 + $0x3c8] sm:$0xff] }
 0x2b2   :  { %v3083_v60 = vpop.eup %3082  ;;  %v1970_v10 = vadd.f32 %v4864_v43, %v1746_v23  ;;  %v1971_v35 = vadd.f32 %v4862_v52, %v1747_v27  ;;  %v2755_v23 = vld [vmem:[%s5652_s3 + $0x348] sm:$0xff] }
 0x2b3   :  { %v2243_v47 = vadd.f32 %v2242_v5, %v2212_v1  ;;  %v3085_v17 = vpop.eup %3084  ;;  %v2746_v1 = vld [vmem:[%s5652_s3 + $0x300] sm:$0xff]  ;;  %v2516_v5 = vld [vmem:[%s5651_s2 + $0x3d0] sm:$0xff]  ;;  %v2759_v27 = vld [vmem:[%s5652_s3 + $0x368] sm:$0xff] }
 0x2b4   :  { %v2134_v46 = vpop.permute.xlu1 %2133  ;;  %v2129_v57 = vpop.permute.xlu0 %2128  ;;  %3096 = vtanh.f32 %v1970_v10 }
 0x2b5   :  { %v2214_v26 = vmul.f32 %v3073_v53, %v2129_v57  ;;  %v2244_v12 = vadd.f32 %v2243_v47, %v2213_v58  ;;  %2619 = vperm.xlu1 %3035, %v2509_v0   ;;  %2614 = vperm.xlu0 %3034, %v2508_v51   ;;  %v2215_v20 = vmul.f32 %v3075_v39, %v2134_v46  ;;  %v3087_v43 = vpop.eup %3086  ;;  %3098 = vtanh.f32 %v1971_v35  ;;  %v2748_v53 = vld [vmem:[%s5652_s3 + $0x310] sm:$0xff] }
 0x2b6   :  { %v3089_v21 = vpop.eup %3088  ;;  %v2764_v35 = vld [vmem:[%s5652_s3 + $0x390] sm:$0xff] }
 0x2b7   :  { %v2245_v28 = vadd.f32 %v2244_v12, %v2214_v26 }
 0x2b8   :  { %v2144_v13 = vpop.permute.xlu1 %2143  ;;  %v2139_v36 = vpop.permute.xlu0 %2138 }
 0x2b9   :  { %v2216_v29 = vmul.f32 %v3077_v45, %v2139_v36  ;;  %v2246_v14 = vadd.f32 %v2245_v28, %v2215_v20  ;;  %2629 = vperm.xlu1 %3035, %v2511_v41   ;;  %2624 = vperm.xlu0 %3034, %v2510_v16   ;;  %v2217_v7 = vmul.f32 %v3079_v34, %v2144_v13  ;;  %v3091_v47 = vpop.eup %3090  ;;  %v2750_v41 = vld [vmem:[%s5652_s3 + $0x320] sm:$0xff]  ;;  %v2749_v16 = vld [vmem:[%s5652_s3 + $0x318] sm:$0xff] }
 0x2ba   :  { %v3093_v57 = vpop.eup %3092 }
 0x2bb   :  { %v2247_v18 = vadd.f32 %v2246_v14, %v2216_v29  ;;  %v3095_v59 = vpop.eup %3094  ;;  %v2752_v29 = vld [vmem:[%s5652_s3 + $0x330] sm:$0xff]  ;;  %v2751_v14 = vld [vmem:[%s5652_s3 + $0x328] sm:$0xff] }
 0x2bc   :  { %v2154_v40 = vpop.permute.xlu1 %2153  ;;  %v2149_v15 = vpop.permute.xlu0 %2148 }
 0x2bd   :  { %v2218_v61 = vmul.f32 %v3081_v30, %v2149_v15  ;;  %v2248_v8 = vadd.f32 %v2247_v18, %v2217_v7  ;;  %2639 = vperm.xlu1 %3035, %v2513_v32   ;;  %2634 = vperm.xlu0 %3034, %v2512_v62   ;;  %v2219_v4 = vmul.f32 %v3083_v60, %v2154_v40  ;;  %v2754_v62 = vld [vmem:[%s5652_s3 + $0x340] sm:$0xff]  ;;  %v2753_v7 = vld [vmem:[%s5652_s3 + $0x338] sm:$0xff] }
 0x2be   :  { %v3097_v45 = vpop.eup %3096  ;;  %v2758_v15 = vld [vmem:[%s5652_s3 + $0x360] sm:$0xff] }
 0x2bf   :  { %v2249_v3 = vadd.f32 %v2248_v8, %v2218_v61  ;;  %v3099_v36 = vpop.eup %3098  ;;  %v2757_v61 = vld [vmem:[%s5652_s3 + $0x358] sm:$0xff] }
 0x2c0   :  { %v2164_v54 = vpop.permute.xlu1 %2163  ;;  %v2159_v56 = vpop.permute.xlu0 %2158 }
 0x2c1   :  { %v2220_v24 = vmul.f32 %v3085_v17, %v2159_v56  ;;  %v2250_v48 = vadd.f32 %v2249_v3, %v2219_v4  ;;  %2649 = vperm.xlu1 %3035, %v2515_v44   ;;  %2644 = vperm.xlu0 %3034, %v2514_v6   ;;  %v2221_v11 = vmul.f32 %v3087_v43, %v2164_v54  ;;  %v2762_v6 = vld [vmem:[%s5652_s3 + $0x380] sm:$0xff]  ;;  %v2761_v4 = vld [vmem:[%s5652_s3 + $0x378] sm:$0xff]  ;;  %v2763_v54 = vld [vmem:[%s5652_s3 + $0x388] sm:$0xff] }
 0x2c2   :  { %v5859_v56 = vld [vmem:[#allocation11_spill] sm:$0xff] }
 0x2c3   :  { %v2251_v33 = vadd.f32 %v2250_v48, %v2220_v24  ;;  %v233_v24 = vmul.f32 %v5859_v56, %v4804_v50 }
 0x2c4   :  { %v2174_v52 = vpop.permute.xlu1 %2173  ;;  %v2169_v0 = vpop.permute.xlu0 %2168 }
 0x2c5   :  { %v2222_v51 = vmul.f32 %v3089_v21, %v2169_v0  ;;  %v2252_v58 = vadd.f32 %v2251_v33, %v2221_v11  ;;  %2780 = vperm.xlu1 %3035, %v2746_v1   ;;  %2654 = vperm.xlu0 %3034, %v2516_v5   ;;  %v2223_v37 = vmul.f32 %v3091_v47, %v2174_v52  ;;  %v5860_v1 = vld [vmem:[#allocation9_spill] sm:$0xff]  ;;  %v5861_v11 = vld [vmem:[#allocation40_spill] sm:$0xff]  ;;  %v2765_v52 = vld [vmem:[%s5652_s3 + $0x398] sm:$0xff] }
 0x2c6   :  { %v232_v5 = vmul.f32 %v5860_v1, %v4804_v50  ;;  %v457_v33 = vadd.f32 %v5861_v11, %v233_v24  ;;  %v2766_v21 = vld [vmem:[%s5652_s3 + $0x3a0] sm:$0xff] }
 0x2c7   :  { %v2253_v46 = vadd.f32 %v2252_v58, %v2222_v51  ;;  %v5862_v0 = vld [vmem:[#allocation8_spill] sm:$0xff]  ;;  %v5863_v58 = vld [vmem:[#allocation41_spill] sm:$0xff] }
 0x2c8   :  { %v2184_v26 = vpop.permute.xlu1 %2183  ;;  %v2179_v12 = vpop.permute.xlu0 %2178  ;;  %v234_v51 = vmul.f32 %v5862_v0, %v4804_v50  ;;  %v456_v47 = vadd.f32 %v5863_v58, %v232_v5  ;;  %3100 = vtanh.f32 %v457_v33  ;;  %v5878_v1 = vld [vmem:[#allocation12_spill] sm:$0xff] }
 0x2c9   :  { %v2224_v39 = vmul.f32 %v3093_v57, %v2179_v12  ;;  %v2254_v19 = vadd.f32 %v2253_v46, %v2223_v37  ;;  %2790 = vperm.xlu1 %3035, %v2748_v53   ;;  %2785 = vperm.xlu0 %3034, %v2747_v22   ;;  %v2225_v20 = vmul.f32 %v3095_v59, %v2184_v26  ;;  %v5864_v37 = vld [vmem:[#allocation43_spill] sm:$0xff]  ;;  %v2767_v57 = vld [vmem:[%s5652_s3 + $0x3a8] sm:$0xff] }
 0x2ca   :  { %v458_v46 = vadd.f32 %v5864_v37, %v234_v51  ;;  %v2517_v26 = vld [vmem:[%s5651_s2 + $0x3d8] sm:$0xff]  ;;  %3102 = vtanh.f32 %v456_v47  ;;  %v237_v5 = vmul.f32 %v5878_v1, %v4804_v50  ;;  %v5879_v11 = vld [vmem:[#allocation72_spill] sm:$0xff]  ;;  %v2520_v51 = vld [vmem:[%s5651_s2 + $0x3f0] sm:$0xff] }
 0x2cb   :  { %v2255_v28 = vadd.f32 %v2254_v19, %v2224_v39  ;;  %v5865_v19 = vld [vmem:[#allocation10_spill] sm:$0xff]  ;;  %v2770_v0 = vld [vmem:[%s5652_s3 + $0x3c0] sm:$0xff] }
 0x2cc   :  { %v2194_v38 = vpop.permute.xlu1 %2193  ;;  %v2189_v25 = vpop.permute.xlu0 %2188  ;;  %v235_v59 = vmul.f32 %v5865_v19, %v4804_v50  ;;  %3104 = vtanh.f32 %v458_v46  ;;  %v5881_v47 = vld [vmem:[#allocation15_spill] sm:$0xff]  ;;  %v5882_v46 = vld [vmem:[#allocation44_spill] sm:$0xff]  ;;  %v2772_v1 = vld [vmem:[%s5652_s3 + $0x3d0] sm:$0xff] }
 0x2cd   :  { %v2226_v63 = vmul.f32 %v3097_v45, %v2189_v25  ;;  %v2256_v13 = vadd.f32 %v2255_v28, %v2225_v20  ;;  %2800 = vperm.xlu1 %3035, %v2750_v41   ;;  %2795 = vperm.xlu0 %3034, %v2749_v16   ;;  %v2227_v34 = vmul.f32 %v3099_v36, %v2194_v38  ;;  %v5866_v41 = vld [vmem:[#allocation13_spill] sm:$0xff]  ;;  %v2518_v28 = vld [vmem:[%s5651_s2 + $0x3e0] sm:$0xff]  ;;  %v5867_v45 = vld [vmem:[#allocation42_spill] sm:$0xff] }
 0x2ce   :  { %v236_v16 = vmul.f32 %v5866_v41, %v4804_v50  ;;  %v2768_v20 = vld [vmem:[%s5652_s3 + $0x3b0] sm:$0xff]  ;;  %v459_v38 = vadd.f32 %v5867_v45, %v235_v59  ;;  %v5868_v25 = vld [vmem:[#allocation104_spill] sm:$0xff]  ;;  %v238_v37 = vmul.f32 %v5881_v47, %v4804_v50 }
 0x2cf   :  { %v2257_v42 = vadd.f32 %v2256_v13, %v2226_v63  ;;  %v975_v63 = vmul.f32 %v5868_v25, %v4804_v50  ;;  %v5869_v13 = vld [vmem:[#allocation45_spill] sm:$0xff]  ;;  %v5884_v59 = vld [vmem:[#allocation106_spill] sm:$0xff] }
 0x2d0   :  { %v5044_v55 = vpop.permute.xlu1 %2305  ;;  %v5046_v2 = vpop.permute.xlu0 %2300  ;;  %v460_v36 = vadd.f32 %v5869_v13, %v236_v16  ;;  %3106 = vtanh.f32 %v459_v38  ;;  %v977_v41 = vmul.f32 %v5884_v59, %v4804_v50  ;;  %v5888_v25 = vld [vmem:[#allocation109_spill] sm:$0xff]  ;;  %v5889_v13 = vld [vmem:[#allocation138_spill] sm:$0xff] }
 0x2d1   :  { %v5048_v32 = vadd.f32 %v2257_v42, %v2227_v34  ;;  %2810 = vperm.xlu1 %3035, %v2752_v29   ;;  %2805 = vperm.xlu0 %3034, %v2751_v14   ;;  %v5870_v29 = vld [vmem:[#allocation105_spill] sm:$0xff] }
 0x2d2   :  { %v974_v14 = vmul.f32 %v5870_v29, %v4804_v50  ;;  %3108 = vtanh.f32 %v460_v36  ;;  %v1201_v36 = vadd.f32 %v5889_v13, %v977_v41  ;;  %v2771_v29 = vld [vmem:[%s5652_s3 + $0x3c8] sm:$0xff] }
 0x2d3   :  { %5858 = vst [vmem:[#allocation201_spill] sm:$0xff] %v5048_v32  ;;  %v5902_v41 = vld [vmem:[#allocation168_spill] sm:$0xff] }
 0x2d4   :  { %v5056_v18 = vpop.permute.xlu1 %2315  ;;  %v5058_v30 = vpop.permute.xlu0 %2310 }
 0x2d5   :  { %2820 = vperm.xlu1 %3035, %v2754_v62   ;;  %2815 = vperm.xlu0 %3034, %v2753_v7   ;;  %v5872_v62 = vld [vmem:[#allocation136_spill] sm:$0xff] }
 0x2d6   :  { %v1199_v7 = vadd.f32 %v5872_v62, %v975_v63  ;;  %v978_v63 = vmul.f32 %v5888_v25, %v4804_v50 }
 0x2d8   :  { %v5066_v9 = vpop.permute.xlu1 %2325  ;;  %v5068_v40 = vpop.permute.xlu0 %2320  ;;  %3110 = vtanh.f32 %v1199_v7  ;;  %v5890_v7 = vld [vmem:[#allocation141_spill] sm:$0xff] }
 0x2d9   :  { %2830 = vperm.xlu1 %3035, %v2756_v31   ;;  %2825 = vperm.xlu0 %3034, %v2755_v23   ;;  %v5873_v31 = vld [vmem:[#allocation107_spill] sm:$0xff] }
 0x2da   :  { %v976_v23 = vmul.f32 %v5873_v31, %v4804_v50  ;;  %v1202_v31 = vadd.f32 %v5890_v7, %v978_v63  ;;  %v5904_v63 = vld [vmem:[#allocation111_spill] sm:$0xff] }
 0x2db   :  { %v980_v13 = vmul.f32 %v5904_v63, %v4804_v50  ;;  %v5906_v7 = vld [vmem:[#allocation171_spill] sm:$0xff] }
 0x2dc   :  { %v5076_v8 = vpop.permute.xlu1 %2335  ;;  %v5078_v60 = vpop.permute.xlu0 %2330 }
 0x2dd   :  { %2840 = vperm.xlu1 %3035, %v2758_v15   ;;  %2835 = vperm.xlu0 %3034, %v2757_v61   ;;  %v5874_v15 = vld [vmem:[#allocation137_spill] sm:$0xff] }
 0x2de   :  { %v1198_v61 = vadd.f32 %v5874_v15, %v974_v14  ;;  %v2521_v14 = vld [vmem:[%s5651_s2 + $0x3f8] sm:$0xff] }
 0x2e0   :  { %v5086_v10 = vpop.permute.xlu1 %2345  ;;  %v5088_v44 = vpop.permute.xlu0 %2340  ;;  %3112 = vtanh.f32 %v1198_v61 }
 0x2e1   :  { %2850 = vperm.xlu1 %3035, %v2760_v49   ;;  %2845 = vperm.xlu0 %3034, %v2759_v27   ;;  %v2769_v49 = vld [vmem:[%s5652_s3 + $0x3b8] sm:$0xff]  ;;  %v2519_v27 = vld [vmem:[%s5651_s2 + $0x3e8] sm:$0xff] }
 0x2e4   :  { %v5096_v3 = vpop.permute.xlu1 %2355  ;;  %v5098_v17 = vpop.permute.xlu0 %2350 }
 0x2e5   :  { %2860 = vperm.xlu1 %3035, %v2762_v6   ;;  %2855 = vperm.xlu0 %3034, %v2761_v4   ;;  %v3101_v6 = vpop.eup %3100  ;;  %v5875_v4 = vld [vmem:[#allocation139_spill] sm:$0xff] }
 0x2e6   :  { %v3103_v24 = vpop.eup %3102  ;;  %v713_v33 = vmul.f32 %v3101_v6, %v5879_v11  ;;  %v5895_v11 = vld [vmem:[#allocation17_spill] sm:$0xff] }
 0x2e7   :  { %v3105_v58 = vpop.eup %3104 }
 0x2e8   :  { %v5108_v48 = vpop.permute.xlu1 %2365  ;;  %v5110_v43 = vpop.permute.xlu0 %2360 }
 0x2e9   :  { %2870 = vperm.xlu1 %3035, %v2764_v35   ;;  %2865 = vperm.xlu0 %3034, %v2763_v54   ;;  %v1200_v35 = vadd.f32 %v5875_v4, %v976_v23  ;;  %v3107_v61 = vpop.eup %3106  ;;  %v5894_v4 = vld [vmem:[#allocation74_spill] sm:$0xff] }
 0x2ea   :  { %v3109_v6 = vpop.eup %3108 }
 0x2eb   :  { %3114 = vtanh.f32 %v1200_v35  ;;  %v715_v35 = vmul.f32 %v3107_v61, %v5894_v4 }
 0x2ec   :  { %v5124_v53 = vpop.permute.xlu1 %2375  ;;  %v5126_v22 = vpop.permute.xlu0 %2370 }
 0x2ed   :  { %2880 = vperm.xlu1 %3035, %v2766_v21   ;;  %2875 = vperm.xlu0 %3034, %v2765_v52   ;;  %v5880_v21 = vld [vmem:[#allocation73_spill] sm:$0xff] }
 0x2ee   :  { %v712_v52 = vmul.f32 %v3103_v24, %v5880_v21  ;;  %v2773_v24 = vld [vmem:[%s5652_s3 + $0x3d8] sm:$0xff] }
 0x2ef   :  { %v5896_v21 = vld [vmem:[#allocation46_spill] sm:$0xff] }
 0x2f0   :  { %v5135_v12 = vpop.permute.xlu1 %2385  ;;  %v5137_v39 = vpop.permute.xlu0 %2380  ;;  %v744_v38 = vadd.f32 %v713_v33, %v712_v52  ;;  %v240_v33 = vmul.f32 %v5895_v11, %v4804_v50  ;;  %v5911_v11 = vld [vmem:[#allocation76_spill] sm:$0xff] }
 0x2f1   :  { %2885 = vperm.xlu1 %3035, %v2767_v57   ;;  %2659 = vperm.xlu0 %3034, %v2517_v26   ;;  %v461_v57 = vadd.f32 %v5882_v46, %v237_v5  ;;  %v5883_v26 = vld [vmem:[#allocation75_spill] sm:$0xff]  ;;  %v3111_v5 = vpop.eup %3110 }
 0x2f2   :  { %v714_v19 = vmul.f32 %v3105_v58, %v5883_v26 }
 0x2f3   :  { %3116 = vtanh.f32 %v461_v57 }
 0x2f4   :  { %v5155_v34 = vpop.permute.xlu1 %2395  ;;  %v5157_v42 = vpop.permute.xlu0 %2390  ;;  %v745_v62 = vadd.f32 %v744_v38, %v714_v19  ;;  %v5901_v19 = vld [vmem:[#allocation49_spill] sm:$0xff] }
 0x2f5   :  { %5871 = vst [vmem:[#allocation200_spill] sm:$0xff] %v5155_v34  ;;  %2890 = vperm.xlu1 %3035, %v2768_v20   ;;  %2664 = vperm.xlu0 %3034, %v2518_v28   ;;  %v5887_v28 = vld [vmem:[#allocation47_spill] sm:$0xff]  ;;  %v464_v59 = vadd.f32 %v5901_v19, %v240_v33  ;;  %v5991_v34 = vld [vmem:[#allocation89_spill] sm:$0xff] }
 0x2f6   :  { %v462_v45 = vadd.f32 %v5887_v28, %v238_v37  ;;  %v746_v47 = vadd.f32 %v745_v62, %v715_v35  ;;  %v5898_v37 = vld [vmem:[#allocation108_spill] sm:$0xff]  ;;  %v1455_v28 = vmul.f32 %v3111_v5, %v5902_v41 }
 0x2f7   :  { %v979_v46 = vmul.f32 %v5898_v37, %v4804_v50  ;;  %v2774_v62 = vld [vmem:[%s5652_s3 + $0x3e0] sm:$0xff] }
 0x2f8   :  { %v5170_v54 = vpop.permute.xlu1 %2405  ;;  %v5172_v56 = vpop.permute.xlu0 %2400  ;;  %3118 = vtanh.f32 %v462_v45  ;;  %v5903_v45 = vld [vmem:[#allocation169_spill] sm:$0xff] }
 0x2f9   :  { %5876 = vst [vmem:[#allocation203_spill] sm:$0xff] %v5170_v54  ;;  %5877 = vst [vmem:[#allocation202_spill] sm:$0xff] %v5172_v56  ;;  %2895 = vperm.xlu1 %3035, %v2769_v49   ;;  %2669 = vperm.xlu0 %3034, %v2519_v27   ;;  %v5893_v49 = vld [vmem:[#allocation14_spill] sm:$0xff]  ;;  %3120 = vtanh.f32 %v1201_v36  ;;  %v5905_v36 = vld [vmem:[#allocation140_spill] sm:$0xff] }
 0x2fa   :  { %v239_v27 = vmul.f32 %v5893_v49, %v4804_v50  ;;  %3122 = vtanh.f32 %v1202_v31  ;;  %v5907_v49 = vld [vmem:[#allocation143_spill] sm:$0xff] }
 0x2fc   :  { %v5190_v16 = vpop.permute.xlu1 %2415  ;;  %v5192_v20 = vpop.permute.xlu0 %2410  ;;  %v463_v52 = vadd.f32 %v5896_v21, %v239_v27  ;;  %v1204_v27 = vadd.f32 %v5907_v49, %v980_v13  ;;  %v2777_v21 = vld [vmem:[%s5652_s3 + $0x3f8] sm:$0xff] }
 0x2fd   :  { %5885 = vst [vmem:[#allocation11_spill] sm:$0xff] %v5190_v16  ;;  %5886 = vst [vmem:[#allocation9_spill] sm:$0xff] %v5192_v20  ;;  %2900 = vperm.xlu1 %3035, %v2770_v0   ;;  %2674 = vperm.xlu0 %3034, %v2520_v51   ;;  %v3113_v0 = vpop.eup %3112  ;;  %v5897_v51 = vld [vmem:[#allocation77_spill] sm:$0xff]  ;;  %v5917_v13 = vld [vmem:[#allocation51_spill] sm:$0xff] }
 0x2fe   :  { %v716_v58 = vmul.f32 %v3109_v6, %v5897_v51  ;;  %v1454_v38 = vmul.f32 %v3113_v0, %v5903_v45  ;;  %v3115_v25 = vpop.eup %3114  ;;  %3124 = vtanh.f32 %v463_v52  ;;  %v2776_v52 = vld [vmem:[%s5652_s3 + $0x3f0] sm:$0xff]  ;;  %v5912_v51 = vld [vmem:[#allocation19_spill] sm:$0xff] }
 0x2ff   :  { %v1456_v31 = vmul.f32 %v3115_v25, %v5906_v7  ;;  %v3117_v35 = vpop.eup %3116  ;;  %3126 = vtanh.f32 %v464_v59  ;;  %v5914_v59 = vld [vmem:[#allocation79_spill] sm:$0xff]  ;;  %v5915_v45 = vld [vmem:[#allocation110_spill] sm:$0xff]  ;;  %v5971_v16 = vld [vmem:[#allocation61_spill] sm:$0xff] }
 0x300   :  { %v5205_v23 = vpop.permute.xlu1 %2425  ;;  %v5207_v15 = vpop.permute.xlu0 %2420  ;;  %v747_v61 = vadd.f32 %v746_v47, %v716_v58  ;;  %v1486_v5 = vadd.f32 %v1455_v28, %v1454_v38  ;;  %v717_v33 = vmul.f32 %v3117_v35, %v5911_v11  ;;  %v242_v58 = vmul.f32 %v5912_v51, %v4804_v50  ;;  %v5913_v47 = vld [vmem:[#allocation48_spill] sm:$0xff]  ;;  %v5921_v49 = vld [vmem:[#allocation142_spill] sm:$0xff]  ;;  %v5923_v11 = vld [vmem:[#allocation145_spill] sm:$0xff] }
 0x301   :  { %5891 = vst [vmem:[#allocation40_spill] sm:$0xff] %v5205_v23  ;;  %5892 = vst [vmem:[#allocation8_spill] sm:$0xff] %v5207_v15  ;;  %2905 = vperm.xlu1 %3035, %v2771_v29   ;;  %2679 = vperm.xlu0 %3034, %v2521_v14   ;;  %v1203_v29 = vadd.f32 %v5905_v36, %v979_v46  ;;  %v2775_v14 = vld [vmem:[%s5652_s3 + $0x3e8] sm:$0xff]  ;;  %v981_v38 = vmul.f32 %v5915_v45, %v4804_v50  ;;  %s3029_s3 = sld [smem:[#allocation3 + $0x2]] }
 0x302   :  { %v3119_v0 = vpop.eup %3118  ;;  %v1487_v46 = vadd.f32 %v1486_v5, %v1456_v31  ;;  %v748_v28 = vadd.f32 %v747_v61, %v717_v33  ;;  %v466_v36 = vadd.f32 %v5917_v13, %v242_v58  ;;  %v5920_v31 = vld [vmem:[#allocation113_spill] sm:$0xff] }
 0x303   :  { %3128 = vtanh.f32 %v1203_v29  ;;  %v3121_v19 = vpop.eup %3120  ;;  %v718_v41 = vmul.f32 %v3119_v0, %v5914_v59  ;;  %v5918_v29 = vld [vmem:[#allocation170_spill] sm:$0xff]  ;;  %v982_v61 = vmul.f32 %v5920_v31, %v4804_v50  ;;  %v1205_v35 = vadd.f32 %v5921_v49, %v981_v38 }
 0x304   :  { %v5224_v57 = vpop.permute.xlu1 %2435  ;;  %v5226_v26 = vpop.permute.xlu0 %2430  ;;  %3130 = vtanh.f32 %v1204_v27  ;;  %v5922_v27 = vld [vmem:[#allocation173_spill] sm:$0xff] }
 0x305   :  { %5899 = vst [vmem:[#allocation41_spill] sm:$0xff] %v5224_v57  ;;  %5900 = vst [vmem:[#allocation43_spill] sm:$0xff] %v5226_v26  ;;  %2915 = vperm.xlu1 %3035, %v2773_v24   ;;  %2910 = vperm.xlu0 %3034, %v2772_v1   ;;  %v5910_v24 = vld [vmem:[#allocation16_spill] sm:$0xff]  ;;  %v3123_v7 = vpop.eup %3122  ;;  %v749_v5 = vadd.f32 %v748_v28, %v718_v41  ;;  %v1206_v33 = vadd.f32 %v5923_v11, %v982_v61  ;;  %v5930_v61 = vld [vmem:[#allocation53_spill] sm:$0xff] }
 0x306   :  { %v241_v1 = vmul.f32 %v5910_v24, %v4804_v50  ;;  %v1458_v24 = vmul.f32 %v3123_v7, %v5922_v27 }
 0x308   :  { %v5242_v6 = vpop.permute.xlu1 %2445  ;;  %v5244_v4 = vpop.permute.xlu0 %2440  ;;  %v465_v37 = vadd.f32 %v5913_v47, %v241_v1  ;;  %v5925_v47 = vld [vmem:[#allocation78_spill] sm:$0xff] }
 0x309   :  { %5908 = vst [vmem:[#allocation10_spill] sm:$0xff] %v5242_v6  ;;  %5909 = vst [vmem:[#allocation13_spill] sm:$0xff] %v5244_v4  ;;  %2925 = vperm.xlu1 %3035, %v2775_v14   ;;  %2920 = vperm.xlu0 %3034, %v2774_v62   ;;  %v1457_v14 = vmul.f32 %v3121_v19, %v5918_v29  ;;  %v3125_v58 = vpop.eup %3124  ;;  %v5956_v6 = vld [vmem:[#allocation176_spill] sm:$0xff]  ;;  %v5961_v4 = vld [vmem:[#allocation179_spill] sm:$0xff] }
 0x30a   :  { %3132 = vtanh.f32 %v465_v37  ;;  %v719_v19 = vmul.f32 %v3125_v58, %v5925_v47  ;;  %v3127_v59 = vpop.eup %3126  ;;  %v5926_v37 = vld [vmem:[#allocation21_spill] sm:$0xff]  ;;  %v5932_v58 = vld [vmem:[#allocation115_spill] sm:$0xff] }
 0x30b   :  { %v1488_v1 = vadd.f32 %v1487_v46, %v1457_v14  ;;  %3134 = vtanh.f32 %v466_v36  ;;  %v244_v45 = vmul.f32 %v5926_v37, %v4804_v50  ;;  %v5927_v46 = vld [vmem:[#allocation50_spill] sm:$0xff]  ;;  %v5929_v14 = vld [vmem:[#allocation112_spill] sm:$0xff] }
 0x30c   :  { %v2456_v25 = vpop.permute.xlu1 %2455  ;;  %v5261_v63 = vpop.permute.xlu0 %2450  ;;  %3136 = vtanh.f32 %v1205_v35  ;;  %v750_v29 = vadd.f32 %v749_v5, %v719_v19  ;;  %v983_v7 = vmul.f32 %v5929_v14, %v4804_v50  ;;  %v5931_v35 = vld [vmem:[#allocation172_spill] sm:$0xff]  ;;  %v5934_v5 = vld [vmem:[#allocation175_spill] sm:$0xff] }
 0x30d   :  { %5916 = vst [vmem:[#allocation42_spill] sm:$0xff] %v5261_v63  ;;  %v5266_v62 = vmul.f32 %v2456_v25, %v4804_v50  ;;  %2935 = vperm.xlu1 %3035, %v2777_v21   ;;  %2930 = vperm.xlu0 %3034, %v2776_v52   ;;  %v5924_v21 = vld [vmem:[#allocation18_spill] sm:$0xff]  ;;  %v1489_v28 = vadd.f32 %v1488_v1, %v1458_v24  ;;  %v3129_v38 = vpop.eup %3128  ;;  %v5928_v25 = vld [vmem:[#allocation81_spill] sm:$0xff]  ;;  %3138 = vtanh.f32 %v1206_v33  ;;  %v5933_v1 = vld [vmem:[#allocation144_spill] sm:$0xff] }
 0x30e   :  { %v243_v52 = vmul.f32 %v5924_v21, %v4804_v50  ;;  %v720_v13 = vmul.f32 %v3127_v59, %v5928_v25  ;;  %v468_v49 = vadd.f32 %v5930_v61, %v244_v45  ;;  %v1459_v27 = vmul.f32 %v3129_v38, %v5931_v35  ;;  %v3131_v11 = vpop.eup %3130  ;;  %v5935_v33 = vld [vmem:[#allocation147_spill] sm:$0xff]  ;;  %v5936_v38 = vld [vmem:[#allocation20_spill] sm:$0xff] }
 0x30f   :  { %5919 = vst [vmem:[#allocation104_spill] sm:$0xff] %v5266_v62  ;;  %v984_v24 = vmul.f32 %v5932_v58, %v4804_v50  ;;  %v1207_v21 = vadd.f32 %v5933_v1, %v983_v7  ;;  %v245_v25 = vmul.f32 %v5936_v38, %v4804_v50  ;;  %v5937_v14 = vld [vmem:[#allocation80_spill] sm:$0xff]  ;;  %v5941_v1 = vld [vmem:[#allocation114_spill] sm:$0xff] }
 0x310   :  { %v5273_v0 = vpop.permute.xlu1 %2529  ;;  %v5275_v51 = vpop.permute.xlu0 %2524  ;;  %v467_v41 = vadd.f32 %v5927_v46, %v243_v52  ;;  %v1460_v52 = vmul.f32 %v3131_v11, %v5934_v5  ;;  %v1490_v47 = vadd.f32 %v1489_v28, %v1459_v27  ;;  %v751_v19 = vadd.f32 %v750_v29, %v720_v13  ;;  %v5939_v28 = vld [vmem:[#allocation52_spill] sm:$0xff]  ;;  %v5940_v11 = vld [vmem:[#allocation83_spill] sm:$0xff]  ;;  %v5943_v38 = vld [vmem:[#allocation174_spill] sm:$0xff] }
 0x311   :  { %v1208_v59 = vadd.f32 %v5935_v33, %v984_v24  ;;  %v469_v13 = vadd.f32 %v5939_v28, %v245_v25  ;;  %v985_v5 = vmul.f32 %v5941_v1, %v4804_v50  ;;  %v5944_v25 = vld [vmem:[#allocation117_spill] sm:$0xff] }
 0x312   :  { %3140 = vtanh.f32 %v467_v41  ;;  %v5938_v41 = vld [vmem:[#allocation23_spill] sm:$0xff]  ;;  %v1491_v29 = vadd.f32 %v1490_v47, %v1460_v52  ;;  %v986_v52 = vmul.f32 %v5944_v25, %v4804_v50  ;;  %v5945_v47 = vld [vmem:[#allocation146_spill] sm:$0xff] }
 0x313   :  { %3142 = vtanh.f32 %v468_v49  ;;  %v246_v35 = vmul.f32 %v5938_v41, %v4804_v50  ;;  %v1209_v28 = vadd.f32 %v5945_v47, %v985_v5 }
 0x314   :  { %v5286_v31 = vpop.permute.xlu1 %2539  ;;  %v5288_v36 = vpop.permute.xlu0 %2534  ;;  %3144 = vtanh.f32 %v1207_v21  ;;  %v5942_v21 = vld [vmem:[#allocation55_spill] sm:$0xff] }
 0x315   :  { %v3133_v45 = vpop.eup %3132  ;;  %3146 = vtanh.f32 %v1208_v59  ;;  %v5947_v59 = vld [vmem:[#allocation149_spill] sm:$0xff] }
 0x316   :  { %v721_v61 = vmul.f32 %v3133_v45, %v5937_v14  ;;  %v3135_v7 = vpop.eup %3134  ;;  %v470_v45 = vadd.f32 %v5942_v21, %v246_v35  ;;  %3148 = vtanh.f32 %v469_v13  ;;  %v1210_v1 = vadd.f32 %v5947_v59, %v986_v52  ;;  %v5950_v13 = vld [vmem:[#allocation25_spill] sm:$0xff]  ;;  %v5953_v59 = vld [vmem:[#allocation116_spill] sm:$0xff] }
 0x317   :  { %v3137_v27 = vpop.eup %3136  ;;  %v722_v58 = vmul.f32 %v3135_v7, %v5940_v11  ;;  %v5952_v52 = vld [vmem:[#allocation85_spill] sm:$0xff]  ;;  %v987_v63 = vmul.f32 %v5953_v59, %v4804_v50 }
 0x318   :  { %v5297_v37 = vpop.permute.xlu1 %2549  ;;  %v5299_v46 = vpop.permute.xlu0 %2544  ;;  %v752_v24 = vadd.f32 %v751_v19, %v721_v61  ;;  %v1461_v14 = vmul.f32 %v3137_v27, %v5943_v38  ;;  %v5946_v19 = vld [vmem:[#allocation177_spill] sm:$0xff]  ;;  %v5948_v27 = vld [vmem:[#allocation22_spill] sm:$0xff]  ;;  %3150 = vtanh.f32 %v470_v45 }
 0x319   :  { %v3139_v41 = vpop.eup %3138  ;;  %v247_v21 = vmul.f32 %v5948_v27, %v4804_v50  ;;  %v5949_v38 = vld [vmem:[#allocation82_spill] sm:$0xff]  ;;  %3152 = vtanh.f32 %v1209_v28  ;;  %v5954_v28 = vld [vmem:[#allocation24_spill] sm:$0xff] }
 0x31a   :  { %v1462_v61 = vmul.f32 %v3139_v41, %v5946_v19  ;;  %v1492_v7 = vadd.f32 %v1491_v29, %v1461_v14  ;;  %v753_v11 = vadd.f32 %v752_v24, %v722_v58  ;;  %v248_v41 = vmul.f32 %v5950_v13, %v4804_v50  ;;  %v5951_v29 = vld [vmem:[#allocation54_spill] sm:$0xff] }
 0x31b   :  { %v471_v58 = vadd.f32 %v5951_v29, %v247_v21  ;;  %3154 = vtanh.f32 %v1210_v1  ;;  %v5959_v29 = vld [vmem:[#allocation148_spill] sm:$0xff] }
 0x31c   :  { %v5310_v33 = vpop.permute.xlu1 %2559  ;;  %v5312_v49 = vpop.permute.xlu0 %2554  ;;  %v1493_v24 = vadd.f32 %v1492_v7, %v1462_v61  ;;  %v5957_v7 = vld [vmem:[#allocation26_spill] sm:$0xff]  ;;  %v1211_v1 = vadd.f32 %v5959_v29, %v987_v63 }
 0x31d   :  { %v3141_v35 = vpop.eup %3140  ;;  %3156 = vtanh.f32 %v471_v58  ;;  %v5965_v58 = vld [vmem:[#allocation29_spill] sm:$0xff] }
 0x31e   :  { %v723_v25 = vmul.f32 %v3141_v35, %v5949_v38  ;;  %v3143_v5 = vpop.eup %3142  ;;  %v249_v35 = vmul.f32 %v5954_v28, %v4804_v50  ;;  %v5955_v38 = vld [vmem:[#allocation57_spill] sm:$0xff]  ;;  %v5962_v28 = vld [vmem:[#allocation27_spill] sm:$0xff] }
 0x31f   :  { %v3145_v14 = vpop.eup %3144  ;;  %v724_v47 = vmul.f32 %v3143_v5, %v5952_v52  ;;  %v472_v13 = vadd.f32 %v5955_v38, %v248_v41  ;;  %v251_v5 = vmul.f32 %v5957_v7, %v4804_v50  ;;  %v5960_v52 = vld [vmem:[#allocation56_spill] sm:$0xff]  ;;  %v250_v41 = vmul.f32 %v5962_v28, %v4804_v50 }
 0x320   :  { %v5321_v32 = vpop.permute.xlu1 %2569  ;;  %v5323_v62 = vpop.permute.xlu0 %2564  ;;  %v754_v19 = vadd.f32 %v753_v11, %v723_v25  ;;  %v1463_v21 = vmul.f32 %v3145_v14, %v5956_v6  ;;  %v5958_v11 = vld [vmem:[#allocation119_spill] sm:$0xff]  ;;  %v473_v59 = vadd.f32 %v5960_v52, %v249_v35  ;;  %v252_v35 = vmul.f32 %v5965_v58, %v4804_v50  ;;  %v5970_v28 = vld [vmem:[#allocation60_spill] sm:$0xff] }
 0x321   :  { %v3147_v61 = vpop.eup %3146  ;;  %v988_v25 = vmul.f32 %v5958_v11, %v4804_v50  ;;  %v5963_v6 = vld [vmem:[#allocation151_spill] sm:$0xff]  ;;  %v5964_v11 = vld [vmem:[#allocation28_spill] sm:$0xff]  ;;  %3158 = vtanh.f32 %v472_v13 }
 0x322   :  { %v1464_v57 = vmul.f32 %v3147_v61, %v5961_v4  ;;  %v1494_v26 = vadd.f32 %v1493_v24, %v1463_v21  ;;  %v755_v38 = vadd.f32 %v754_v19, %v724_v47  ;;  %v3149_v15 = vpop.eup %3148  ;;  %v253_v63 = vmul.f32 %v5964_v11, %v4804_v50  ;;  %v5966_v4 = vld [vmem:[#allocation58_spill] sm:$0xff]  ;;  %v5968_v47 = vld [vmem:[#allocation59_spill] sm:$0xff] }
 0x323   :  { %v1212_v14 = vadd.f32 %v5963_v6, %v988_v25  ;;  %v475_v24 = vadd.f32 %v5966_v4, %v251_v5  ;;  %v5967_v21 = vld [vmem:[#allocation30_spill] sm:$0xff]  ;;  %v474_v19 = vadd.f32 %v5968_v47, %v250_v41  ;;  %v5969_v25 = vld [vmem:[#allocation84_spill] sm:$0xff]  ;;  %3160 = vtanh.f32 %v1211_v1  ;;  %v3151_v52 = vpop.eup %3150  ;;  %v5972_v58 = vld [vmem:[#allocation87_spill] sm:$0xff] }
 0x324   :  { %v5334_v27 = vpop.permute.xlu1 %2579  ;;  %v5336_v45 = vpop.permute.xlu0 %2574  ;;  %v255_v61 = vmul.f32 %v5967_v21, %v4804_v50  ;;  %v725_v29 = vmul.f32 %v3149_v15, %v5969_v25  ;;  %3162 = vtanh.f32 %v473_v59  ;;  %v477_v6 = vadd.f32 %v5970_v28, %v253_v63  ;;  %v5973_v5 = vld [vmem:[#allocation118_spill] sm:$0xff]  ;;  %v5974_v15 = vld [vmem:[#allocation31_spill] sm:$0xff]  ;;  %v5978_v47 = vld [vmem:[#allocation121_spill] sm:$0xff] }
 0x325   :  { %v476_v11 = vadd.f32 %v5971_v16, %v252_v35  ;;  %v1495_v20 = vadd.f32 %v1494_v26, %v1464_v57  ;;  %v3153_v54 = vpop.eup %3152  ;;  %v726_v13 = vmul.f32 %v3151_v52, %v5972_v58  ;;  %v989_v4 = vmul.f32 %v5973_v5, %v4804_v50  ;;  %v5975_v59 = vld [vmem:[#allocation62_spill] sm:$0xff]  ;;  %v5977_v35 = vld [vmem:[#allocation32_spill] sm:$0xff]  ;;  %v5980_v52 = vld [vmem:[#allocation63_spill] sm:$0xff] }
 0x326   :  { %v756_v56 = vadd.f32 %v755_v38, %v725_v29  ;;  %3164 = vtanh.f32 %v1212_v14  ;;  %v254_v1 = vmul.f32 %v5974_v15, %v4804_v50  ;;  %v479_v63 = vadd.f32 %v5975_v59, %v255_v61  ;;  %v5976_v16 = vld [vmem:[#allocation178_spill] sm:$0xff]  ;;  %v3155_v26 = vpop.eup %3154  ;;  %v5981_v58 = vld [vmem:[#allocation181_spill] sm:$0xff] }
 0x327   :  { %3166 = vtanh.f32 %v475_v24  ;;  %v1465_v57 = vmul.f32 %v3153_v54, %v5976_v16  ;;  %v257_v38 = vmul.f32 %v5977_v35, %v4804_v50  ;;  %v990_v14 = vmul.f32 %v5978_v47, %v4804_v50  ;;  %v5979_v25 = vld [vmem:[#allocation150_spill] sm:$0xff]  ;;  %v5982_v61 = vld [vmem:[#allocation33_spill] sm:$0xff]  ;;  %v3157_v47 = vpop.eup %3156 }
 0x328   :  { %v5352_v23 = vpop.permute.xlu1 %2589  ;;  %v5354_v7 = vpop.permute.xlu0 %2584  ;;  %3168 = vtanh.f32 %v474_v19  ;;  %v1213_v29 = vadd.f32 %v5979_v25, %v989_v4  ;;  %v478_v28 = vadd.f32 %v5980_v52, %v254_v1  ;;  %v1466_v5 = vmul.f32 %v3155_v26, %v5981_v58  ;;  %v5983_v59 = vld [vmem:[#allocation153_spill] sm:$0xff]  ;;  %v5985_v4 = vld [vmem:[#allocation34_spill] sm:$0xff]  ;;  %v5986_v1 = vld [vmem:[#allocation64_spill] sm:$0xff] }
 0x329   :  { %3170 = vtanh.f32 %v477_v6  ;;  %v1496_v24 = vadd.f32 %v1495_v20, %v1465_v57  ;;  %v256_v15 = vmul.f32 %v5982_v61, %v4804_v50  ;;  %v757_v54 = vadd.f32 %v756_v56, %v726_v13  ;;  %v5987_v26 = vld [vmem:[#allocation65_spill] sm:$0xff]  ;;  %v5988_v57 = vld [vmem:[#allocation86_spill] sm:$0xff]  ;;  %v5989_v56 = vld [vmem:[#allocation35_spill] sm:$0xff] }
 0x32a   :  { %3172 = vtanh.f32 %v476_v11  ;;  %v1214_v16 = vadd.f32 %v5983_v59, %v990_v14  ;;  %v259_v6 = vmul.f32 %v5985_v4, %v4804_v50  ;;  %v481_v25 = vadd.f32 %v5986_v1, %v257_v38  ;;  %v5990_v14 = vld [vmem:[#allocation66_spill] sm:$0xff]  ;;  %v5995_v1 = vld [vmem:[#allocation36_spill] sm:$0xff] }
 0x32b   :  { %3174 = vtanh.f32 %v479_v63  ;;  %v480_v20 = vadd.f32 %v5987_v26, %v256_v15  ;;  %v727_v52 = vmul.f32 %v3157_v47, %v5988_v57  ;;  %v3159_v11 = vpop.eup %3158  ;;  %v258_v13 = vmul.f32 %v5989_v56, %v4804_v50  ;;  %v5992_v63 = vld [vmem:[#allocation120_spill] sm:$0xff] }
 0x32c   :  { %v5370_v21 = vpop.permute.xlu1 %2599  ;;  %v5372_v41 = vpop.permute.xlu0 %2594  ;;  %3176 = vtanh.f32 %v1213_v29  ;;  %v483_v58 = vadd.f32 %v5990_v14, %v259_v6  ;;  %v1497_v61 = vadd.f32 %v1496_v24, %v1466_v5  ;;  %v991_v38 = vmul.f32 %v5992_v63, %v4804_v50  ;;  %v5997_v5 = vld [vmem:[#allocation180_spill] sm:$0xff] }
 0x32d   :  { %3178 = vtanh.f32 %v478_v28  ;;  %v3161_v59 = vpop.eup %3160  ;;  %v758_v4 = vadd.f32 %v757_v54, %v727_v52  ;;  %v261_v26 = vmul.f32 %v5995_v1, %v4804_v50  ;;  %v5996_v28 = vld [vmem:[#allocation67_spill] sm:$0xff]  ;;  %v6001_v63 = vld [vmem:[#allocation68_spill] sm:$0xff] }
 0x32e   :  { %3180 = vtanh.f32 %v1214_v16  ;;  %v3163_v29 = vpop.eup %3162  ;;  %v482_v6 = vadd.f32 %v5996_v28, %v258_v13  ;;  %v1467_v24 = vmul.f32 %v3161_v59, %v5997_v5  ;;  %v5999_v16 = vld [vmem:[#allocation123_spill] sm:$0xff]  ;;  %v2459_v13 = vmul.f32 %v5044_v55, %v4804_v50 }
 0x32f   :  { %3182 = vtanh.f32 %v481_v25  ;;  %v992_v52 = vmul.f32 %v5999_v16, %v4804_v50  ;;  %v6003_v5 = vld [vmem:[#allocation155_spill] sm:$0xff] }
 0x330   :  { %v5388_v35 = vpop.permute.xlu1 %2609  ;;  %v5390_v19 = vpop.permute.xlu0 %2604  ;;  %3184 = vtanh.f32 %v480_v20  ;;  %v1498_v25 = vadd.f32 %v1497_v61, %v1467_v24  ;;  %v2458_v20 = vmul.f32 %v5046_v2, %v4804_v50  ;;  %v6005_v24 = vld [vmem:[#allocation88_spill] sm:$0xff] }
 0x331   :  { %5984 = vst [vmem:[#allocation45_spill] sm:$0xff] %v5388_v35  ;;  %v728_v35 = vmul.f32 %v3159_v11, %v5991_v34  ;;  %v3165_v57 = vpop.eup %3164  ;;  %v5998_v34 = vld [vmem:[#allocation37_spill] sm:$0xff]  ;;  %v6000_v11 = vld [vmem:[#allocation152_spill] sm:$0xff]  ;;  %3186 = vtanh.f32 %v483_v58  ;;  %v729_v58 = vmul.f32 %v3163_v29, %v6005_v24  ;;  %v2461_v29 = vmul.f32 %v5056_v18, %v4804_v50 }
 0x332   :  { %v260_v54 = vmul.f32 %v5998_v34, %v4804_v50  ;;  %v1215_v56 = vadd.f32 %v6000_v11, %v991_v38  ;;  %v3167_v14 = vpop.eup %3166  ;;  %v1216_v34 = vadd.f32 %v6003_v5, %v992_v52  ;;  %3188 = vtanh.f32 %v482_v6  ;;  %v6007_v6 = vld [vmem:[#allocation122_spill] sm:$0xff] }
 0x333   :  { %v3169_v59 = vpop.eup %3168  ;;  %v759_v28 = vadd.f32 %v758_v4, %v728_v35  ;;  %v2460_v35 = vmul.f32 %v5058_v30, %v4804_v50  ;;  %v2682_v2 = vadd.f32 %v5275_v51, %v2458_v20  ;;  %v6009_v20 = vld [vmem:[#allocation154_spill] sm:$0xff]  ;;  %v2685_v24 = vadd.f32 %v5286_v31, %v2461_v29  ;;  %v6014_v29 = vld [vmem:[#allocation71_spill] sm:$0xff] }
 0x334   :  { %v5403_v15 = vpop.permute.xlu1 %2619  ;;  %v5405_v47 = vpop.permute.xlu0 %2614  ;;  %3190 = vtanh.f32 %v1215_v56 }
 0x335   :  { %5993 = vst [vmem:[#allocation105_spill] sm:$0xff] %v5403_v15  ;;  %5994 = vst [vmem:[#allocation136_spill] sm:$0xff] %v5405_v47  ;;  %v485_v15 = vadd.f32 %v6001_v63, %v261_v26  ;;  %v6002_v47 = vld [vmem:[#allocation183_spill] sm:$0xff]  ;;  %v5427_v11 = vpop.eup %3170  ;;  %v2683_v26 = vadd.f32 %v5273_v0, %v2459_v13  ;;  %v993_v63 = vmul.f32 %v6007_v6, %v4804_v50  ;;  %v6013_v6 = vld [vmem:[#allocation185_spill] sm:$0xff] }
 0x336   :  { %v1468_v1 = vmul.f32 %v3165_v57, %v6002_v47  ;;  %v6004_v47 = vld [vmem:[#allocation69_spill] sm:$0xff]  ;;  %v3173_v55 = vpop.eup %3172  ;;  %v6006_v57 = vld [vmem:[#allocation91_spill] sm:$0xff]  ;;  %v760_v0 = vadd.f32 %v759_v28, %v729_v58  ;;  %v2684_v56 = vadd.f32 %v5288_v36, %v2460_v35  ;;  %v2462_v36 = vmul.f32 %v5068_v40, %v4804_v50 }
 0x337   :  { %v484_v61 = vadd.f32 %v6004_v47, %v260_v54  ;;  %v5435_v4 = vpop.eup %3174  ;;  %3192 = vtanh.f32 %v485_v15  ;;  %v730_v52 = vmul.f32 %v3169_v59, %v6006_v57  ;;  %v6008_v15 = vld [vmem:[#allocation125_spill] sm:$0xff]  ;;  %v1217_v47 = vadd.f32 %v6009_v20, %v993_v63 }
 0x338   :  { %v5423_v16 = vpop.permute.xlu1 %2629  ;;  %v5425_v38 = vpop.permute.xlu0 %2624  ;;  %v1499_v54 = vadd.f32 %v1498_v25, %v1468_v1  ;;  %3194 = vtanh.f32 %v1216_v34  ;;  %v994_v59 = vmul.f32 %v6008_v15, %v4804_v50  ;;  %v6010_v1 = vld [vmem:[#allocation182_spill] sm:$0xff]  ;;  %v6011_v34 = vld [vmem:[#allocation39_spill] sm:$0xff]  ;;  %v6012_v35 = vld [vmem:[#allocation157_spill] sm:$0xff]  ;;  %v2463_v20 = vmul.f32 %v5066_v9, %v4804_v50 }
 0x339   :  { %v3177_v5 = vpop.eup %3176  ;;  %3196 = vtanh.f32 %v2683_v26  ;;  %v262_v18 = vmul.f32 %v6011_v34, %v4804_v50  ;;  %v761_v26 = vadd.f32 %v760_v0, %v730_v52  ;;  %v2686_v40 = vadd.f32 %v5299_v46, %v2462_v36  ;;  %v6016_v46 = vld [vmem:[#allocation93_spill] sm:$0xff] }
 0x33a   :  { %v5447_v13 = vpop.eup %3178  ;;  %v1469_v25 = vmul.f32 %v3177_v5, %v6010_v1  ;;  %3198 = vtanh.f32 %v2682_v2  ;;  %v1218_v57 = vadd.f32 %v6012_v35, %v994_v59  ;;  %v6015_v1 = vld [vmem:[#allocation90_spill] sm:$0xff]  ;;  %v2464_v52 = vmul.f32 %v5078_v60, %v4804_v50 }
 0x33b   :  { %v3181_v28 = vpop.eup %3180  ;;  %3200 = vtanh.f32 %v484_v61  ;;  %v486_v61 = vadd.f32 %v6014_v29, %v262_v18  ;;  %v2687_v9 = vadd.f32 %v5297_v37, %v2463_v20 }
 0x33c   :  { %v5443_v30 = vpop.permute.xlu1 %2639  ;;  %v5445_v51 = vpop.permute.xlu0 %2634  ;;  %v1470_v63 = vmul.f32 %v3181_v28, %v6013_v6  ;;  %v1500_v15 = vadd.f32 %v1499_v54, %v1469_v25  ;;  %3202 = vtanh.f32 %v2684_v56  ;;  %v731_v54 = vmul.f32 %v3167_v14, %v6015_v1  ;;  %v6017_v25 = vld [vmem:[#allocation124_spill] sm:$0xff]  ;;  %v6022_v1 = vld [vmem:[#allocation159_spill] sm:$0xff] }
 0x33d   :  { %v5458_v58 = vpop.eup %3182  ;;  %3204 = vtanh.f32 %v1217_v47  ;;  %v732_v56 = vmul.f32 %v3173_v55, %v6016_v46  ;;  %v995_v28 = vmul.f32 %v6017_v25, %v4804_v50  ;;  %v2465_v14 = vmul.f32 %v5076_v8, %v4804_v50  ;;  %v6018_v55 = vld [vmem:[#allocation127_spill] sm:$0xff]  ;;  %v6019_v6 = vld [vmem:[#allocation156_spill] sm:$0xff] }
 0x33e   :  { %v5462_v5 = vpop.eup %3184  ;;  %3206 = vtanh.f32 %v2685_v24  ;;  %v1501_v34 = vadd.f32 %v1500_v15, %v1470_v63  ;;  %v762_v18 = vadd.f32 %v761_v26, %v731_v54  ;;  %v2688_v60 = vadd.f32 %v5312_v49, %v2464_v52  ;;  %v6020_v63 = vld [vmem:[#allocation184_spill] sm:$0xff]  ;;  %v6023_v54 = vld [vmem:[#allocation187_spill] sm:$0xff] }
 0x33f   :  { %v5472_v59 = vpop.eup %3186  ;;  %3208 = vtanh.f32 %v1218_v57  ;;  %v996_v35 = vmul.f32 %v6018_v55, %v4804_v50  ;;  %v1219_v57 = vadd.f32 %v6019_v6, %v995_v28  ;;  %v2466_v8 = vmul.f32 %v5088_v44, %v4804_v50 }
 0x340   :  { %v5467_v2 = vpop.permute.xlu1 %2649  ;;  %v5469_v31 = vpop.permute.xlu0 %2644  ;;  %3210 = vtanh.f32 %v2686_v40  ;;  %v2689_v49 = vadd.f32 %v5310_v33, %v2465_v14  ;;  %v6021_v40 = vld [vmem:[#allocation92_spill] sm:$0xff]  ;;  %v763_v28 = vadd.f32 %v762_v18, %v732_v56  ;;  %v6024_v14 = vld [vmem:[#allocation94_spill] sm:$0xff] }
 0x341   :  { %v5478_v0 = vpop.eup %3188  ;;  %3212 = vtanh.f32 %v486_v61  ;;  %v733_v29 = vmul.f32 %v5427_v11, %v6021_v40  ;;  %v1220_v61 = vadd.f32 %v6022_v1, %v996_v35  ;;  %v2690_v44 = vadd.f32 %v5323_v62, %v2466_v8  ;;  %v6025_v56 = vld [vmem:[#allocation126_spill] sm:$0xff] }
 0x342   :  { %v3191_v47 = vpop.eup %3190  ;;  %3214 = vtanh.f32 %v2687_v9  ;;  %v5508_v11 = vmul.f32 %v5435_v4, %v6024_v14  ;;  %v997_v18 = vmul.f32 %v6025_v56, %v4804_v50  ;;  %v2469_v8 = vmul.f32 %v5096_v3, %v4804_v50  ;;  %v6027_v1 = vld [vmem:[#allocation158_spill] sm:$0xff] }
 0x343   :  { %v5488_v37 = vpop.eup %3192  ;;  %v1471_v15 = vmul.f32 %v3191_v47, %v6020_v63  ;;  %v2467_v47 = vmul.f32 %v5086_v10, %v4804_v50  ;;  %3216 = vtanh.f32 %v2688_v60  ;;  %v2468_v10 = vmul.f32 %v5098_v17, %v4804_v50 }
 0x344   :  { %v2781_v36 = vpop.permute.xlu1 %2780  ;;  %v5486_v24 = vpop.permute.xlu0 %2654  ;;  %3218 = vtanh.f32 %v1219_v57  ;;  %v6026_v57 = vld [vmem:[#allocation129_spill] sm:$0xff]  ;;  %v2693_v3 = vadd.f32 %v5334_v27, %v2469_v8  ;;  %v764_v27 = vadd.f32 %v763_v28, %v733_v29  ;;  %v2472_v8 = vmul.f32 %v5126_v22, %v4804_v50  ;;  %v6033_v29 = vld [vmem:[#allocation131_spill] sm:$0xff] }
 0x345   :  { %v3195_v26 = vpop.eup %3194  ;;  %v1502_v46 = vadd.f32 %v1501_v34, %v1471_v15  ;;  %3220 = vtanh.f32 %v2689_v49  ;;  %v2691_v62 = vadd.f32 %v5321_v32, %v2467_v47  ;;  %v1221_v32 = vadd.f32 %v6027_v1, %v997_v18  ;;  %v6029_v47 = vld [vmem:[#allocation161_spill] sm:$0xff]  ;;  %v6031_v18 = vld [vmem:[#allocation95_spill] sm:$0xff] }
 0x346   :  { %v3197_v20 = vpop.eup %3196  ;;  %v1472_v52 = vmul.f32 %v3195_v26, %v6023_v54  ;;  %3222 = vtanh.f32 %v1220_v61  ;;  %v6028_v54 = vld [vmem:[#allocation186_spill] sm:$0xff]  ;;  %v1000_v28 = vmul.f32 %v6033_v29, %v4804_v50  ;;  %v2696_v1 = vadd.f32 %v5372_v41, %v2472_v8  ;;  %v6043_v29 = vld [vmem:[#allocation136_spill] sm:$0xff] }
 0x347   :  { %v3199_v25 = vpop.eup %3198  ;;  %3224 = vtanh.f32 %v2690_v44 }
 0x348   :  { %v2791_v9 = vpop.permute.xlu1 %2790  ;;  %v2786_v55 = vpop.permute.xlu0 %2785  ;;  %v2938_v35 = vmul.f32 %v3199_v25, %v2781_v36  ;;  %v1503_v63 = vadd.f32 %v1502_v46, %v1472_v52  ;;  %v998_v36 = vmul.f32 %v6026_v57, %v4804_v50  ;;  %3226 = vtanh.f32 %v2691_v62 }
 0x349   :  { %v5504_v33 = vpop.eup %3200  ;;  %v2939_v6 = vmul.f32 %v3197_v20, %v2786_v55  ;;  %v2692_v20 = vadd.f32 %v5336_v45, %v2468_v10  ;;  %v2470_v55 = vmul.f32 %v5110_v43, %v4804_v50  ;;  %v6030_v45 = vld [vmem:[#allocation189_spill] sm:$0xff]  ;;  %v734_v10 = vmul.f32 %v5447_v13, %v6031_v18 }
 0x34a   :  { %v3203_v34 = vpop.eup %3202 }
 0x34b   :  { %v3205_v60 = vpop.eup %3204  ;;  %v2940_v15 = vmul.f32 %v3203_v34, %v2791_v9  ;;  %v2970_v26 = vadd.f32 %v2939_v6, %v2938_v35  ;;  %v1222_v9 = vadd.f32 %v6029_v47, %v998_v36  ;;  %3228 = vtanh.f32 %v2692_v20 }
 0x34c   :  { %v3207_v4 = vpop.eup %3206  ;;  %v2801_v40 = vpop.permute.xlu1 %2800  ;;  %v1473_v61 = vmul.f32 %v3205_v60, %v6028_v54  ;;  %v2471_v60 = vmul.f32 %v5108_v48, %v4804_v50  ;;  %v2694_v43 = vadd.f32 %v5354_v7, %v2470_v55  ;;  %3230 = vtanh.f32 %v1221_v32  ;;  %v6036_v55 = vld [vmem:[#allocation163_spill] sm:$0xff] }
 0x34d   :  { %v2796_v17 = vpop.permute.xlu0 %2795  ;;  %v3209_v49 = vpop.eup %3208  ;;  %v2971_v46 = vadd.f32 %v2970_v26, %v2940_v15  ;;  %3232 = vtanh.f32 %v2693_v3  ;;  %v1224_v3 = vadd.f32 %v6036_v55, %v1000_v28  ;;  %v765_v18 = vadd.f32 %v764_v27, %v734_v10 }
 0x34e   :  { %v2941_v52 = vmul.f32 %v3207_v4, %v2796_v17  ;;  %v3211_v25 = vpop.eup %3210  ;;  %v1474_v14 = vmul.f32 %v3209_v49, %v6030_v45  ;;  %v1504_v35 = vadd.f32 %v1503_v63, %v1473_v61  ;;  %v6032_v63 = vld [vmem:[#allocation128_spill] sm:$0xff]  ;;  %v2695_v13 = vadd.f32 %v5352_v23, %v2471_v60 }
 0x34f   :  { %v5526_v44 = vpop.eup %3212  ;;  %v2942_v6 = vmul.f32 %v3211_v25, %v2801_v40  ;;  %v999_v36 = vmul.f32 %v6032_v63, %v4804_v50  ;;  %3234 = vtanh.f32 %v1222_v9  ;;  %v2473_v49 = vmul.f32 %v5124_v53, %v4804_v50  ;;  %v6034_v61 = vld [vmem:[#allocation160_spill] sm:$0xff]  ;;  %v6039_v63 = vld [vmem:[#allocation130_spill] sm:$0xff] }
 0x350   :  { %v2972_v34 = vadd.f32 %v2971_v46, %v2941_v52  ;;  %v3215_v56 = vpop.eup %3214  ;;  %v2811_v62 = vpop.permute.xlu1 %2810  ;;  %v1505_v20 = vadd.f32 %v1504_v35, %v1474_v14  ;;  %3236 = vtanh.f32 %v2694_v43  ;;  %v6035_v52 = vld [vmem:[#allocation188_spill] sm:$0xff]  ;;  %v2474_v45 = vmul.f32 %v5137_v39, %v4804_v50  ;;  %v6037_v14 = vld [vmem:[#allocation191_spill] sm:$0xff] }
 0x351   :  { %v2806_v15 = vpop.permute.xlu0 %2805  ;;  %v3217_v57 = vpop.eup %3216  ;;  %v1223_v23 = vadd.f32 %v6034_v61, %v999_v36  ;;  %3238 = vtanh.f32 %v2695_v13  ;;  %v2697_v53 = vadd.f32 %v5370_v21, %v2473_v49  ;;  %v2475_v60 = vmul.f32 %v5135_v12, %v4804_v50  ;;  %v6040_v12 = vld [vmem:[#allocation45_spill] sm:$0xff] }
 0x352   :  { %v2943_v26 = vmul.f32 %v3215_v56, %v2806_v15  ;;  %v2973_v4 = vadd.f32 %v2972_v34, %v2942_v6  ;;  %v3219_v48 = vpop.eup %3218  ;;  %v2944_v7 = vmul.f32 %v3217_v57, %v2811_v62  ;;  %3240 = vtanh.f32 %v2696_v1 }
 0x353   :  { %v3221_v17 = vpop.eup %3220  ;;  %v1475_v46 = vmul.f32 %v3219_v48, %v6035_v52  ;;  %v2698_v43 = vadd.f32 %v5390_v19, %v2474_v45  ;;  %3242 = vtanh.f32 %v1223_v23  ;;  %v1001_v36 = vmul.f32 %v6039_v63, %v4804_v50  ;;  %v6051_v63 = vld [vmem:[#allocation132_spill] sm:$0xff] }
 0x354   :  { %v2974_v40 = vadd.f32 %v2973_v4, %v2943_v26  ;;  %v2821_v32 = vpop.permute.xlu1 %2820  ;;  %v3223_v54 = vpop.eup %3222  ;;  %v6038_v26 = vld [vmem:[#allocation97_spill] sm:$0xff]  ;;  %v2476_v10 = vmul.f32 %v5157_v42, %v4804_v50  ;;  %3244 = vtanh.f32 %v2697_v53  ;;  %v2699_v27 = vadd.f32 %v6040_v12, %v2475_v60  ;;  %v6050_v60 = vld [vmem:[#allocation203_spill] sm:$0xff] }
 0x355   :  { %v2816_v22 = vpop.permute.xlu0 %2815  ;;  %v3225_v9 = vpop.eup %3224  ;;  %v1476_v41 = vmul.f32 %v3223_v54, %v6037_v14  ;;  %v1506_v35 = vadd.f32 %v1505_v20, %v1475_v46  ;;  %v736_v39 = vmul.f32 %v5462_v5, %v6038_v26  ;;  %3246 = vtanh.f32 %v1224_v3  ;;  %v6041_v5 = vld [vmem:[#allocation133_spill] sm:$0xff]  ;;  %v6045_v54 = vld [vmem:[#allocation190_spill] sm:$0xff] }
 0x356   :  { %v2945_v25 = vmul.f32 %v3221_v17, %v2816_v22  ;;  %v2975_v47 = vadd.f32 %v2974_v40, %v2944_v7  ;;  %v2946_v6 = vmul.f32 %v3225_v9, %v2821_v32  ;;  %v3227_v56 = vpop.eup %3226  ;;  %v1002_v7 = vmul.f32 %v6041_v5, %v4804_v50  ;;  %v6042_v40 = vld [vmem:[#allocation200_spill] sm:$0xff]  ;;  %v6044_v32 = vld [vmem:[#allocation162_spill] sm:$0xff]  ;;  %v6048_v3 = vld [vmem:[#allocation105_spill] sm:$0xff] }
 0x357   :  { %v3229_v57 = vpop.eup %3228  ;;  %v1507_v19 = vadd.f32 %v1506_v35, %v1476_v41  ;;  %v2477_v17 = vmul.f32 %v6042_v40, %v4804_v50  ;;  %3248 = vtanh.f32 %v2698_v43  ;;  %v2700_v28 = vadd.f32 %v6043_v29, %v2476_v10  ;;  %v6047_v9 = vld [vmem:[#allocation202_spill] sm:$0xff]  ;;  %v6049_v53 = vld [vmem:[#allocation193_spill] sm:$0xff] }
 0x358   :  { %v2976_v34 = vadd.f32 %v2975_v47, %v2945_v25  ;;  %v2831_v62 = vpop.permute.xlu1 %2830  ;;  %v3231_v8 = vpop.eup %3230  ;;  %v1225_v22 = vadd.f32 %v6044_v32, %v1001_v36  ;;  %v6046_v25 = vld [vmem:[#allocation165_spill] sm:$0xff]  ;;  %v2478_v55 = vmul.f32 %v6047_v9, %v4804_v50  ;;  %3250 = vtanh.f32 %v2699_v27  ;;  %v6056_v32 = vld [vmem:[#allocation135_spill] sm:$0xff] }
 0x359   :  { %v2826_v15 = vpop.permute.xlu0 %2825  ;;  %v2948_v13 = vmul.f32 %v3229_v57, %v2831_v62  ;;  %v3233_v20 = vpop.eup %3232  ;;  %v1477_v61 = vmul.f32 %v3231_v8, %v6045_v54  ;;  %v1226_v47 = vadd.f32 %v6046_v25, %v1002_v7  ;;  %v2701_v45 = vadd.f32 %v6048_v3, %v2477_v17  ;;  %v6053_v7 = vld [vmem:[#allocation164_spill] sm:$0xff]  ;;  %v6057_v54 = vld [vmem:[#allocation195_spill] sm:$0xff] }
 0x35a   :  { %v2947_v21 = vmul.f32 %v3227_v56, %v2826_v15  ;;  %v2977_v4 = vadd.f32 %v2976_v34, %v2946_v6  ;;  %v3235_v1 = vpop.eup %3234  ;;  %v766_v56 = vadd.f32 %v765_v18, %v5508_v11  ;;  %v2479_v43 = vmul.f32 %v6050_v60, %v4804_v50  ;;  %v6054_v17 = vld [vmem:[#allocation192_spill] sm:$0xff]  ;;  %v6059_v3 = vld [vmem:[#allocation167_spill] sm:$0xff]  ;;  %v6061_v60 = vld [vmem:[#allocation134_spill] sm:$0xff] }
 0x35b   :  { %v3237_v46 = vpop.eup %3236  ;;  %v1478_v14 = vmul.f32 %v3235_v1, %v6049_v53  ;;  %v1508_v41 = vadd.f32 %v1507_v19, %v1477_v61  ;;  %3252 = vtanh.f32 %v2700_v28  ;;  %v2702_v62 = vadd.f32 %v5425_v38, %v2478_v55  ;;  %v6052_v38 = vld [vmem:[#allocation9_spill] sm:$0xff] }
 0x35c   :  { %v2978_v48 = vadd.f32 %v2977_v4, %v2947_v21  ;;  %v2841_v49 = vpop.permute.xlu1 %2840  ;;  %v3239_v34 = vpop.eup %3238  ;;  %3254 = vtanh.f32 %v1225_v22  ;;  %v1003_v36 = vmul.f32 %v6051_v63, %v4804_v50  ;;  %v2703_v10 = vadd.f32 %v5423_v16, %v2479_v43 }
 0x35d   :  { %v2836_v42 = vpop.permute.xlu0 %2835  ;;  %v2950_v35 = vmul.f32 %v3237_v46, %v2841_v49  ;;  %v3241_v57 = vpop.eup %3240  ;;  %3256 = vtanh.f32 %v2701_v45  ;;  %v1509_v11 = vadd.f32 %v1508_v41, %v1478_v14  ;;  %v767_v19 = vadd.f32 %v766_v56, %v736_v39 }
 0x35e   :  { %v2949_v23 = vmul.f32 %v3233_v20, %v2836_v42  ;;  %v2979_v52 = vadd.f32 %v2978_v48, %v2948_v13  ;;  %v3243_v12 = vpop.eup %3242  ;;  %3258 = vtanh.f32 %v1226_v47  ;;  %v2480_v13 = vmul.f32 %v6052_v38, %v4804_v50  ;;  %v6055_v42 = vld [vmem:[#allocation96_spill] sm:$0xff]  ;;  %v6058_v47 = vld [vmem:[#allocation99_spill] sm:$0xff]  ;;  %v6065_v38 = vld [vmem:[#allocation38_spill] sm:$0xff] }
 0x35f   :  { %v3245_v8 = vpop.eup %3244  ;;  %3260 = vtanh.f32 %v2702_v62  ;;  %v1227_v40 = vadd.f32 %v6053_v7, %v1003_v36  ;;  %v1479_v29 = vmul.f32 %v3243_v12, %v6054_v17  ;;  %v737_v1 = vmul.f32 %v5458_v58, %v6055_v42  ;;  %v6060_v58 = vld [vmem:[#allocation11_spill] sm:$0xff]  ;;  %v6063_v12 = vld [vmem:[#allocation166_spill] sm:$0xff]  ;;  %v6067_v7 = vld [vmem:[#allocation197_spill] sm:$0xff] }
 0x360   :  { %v2980_v6 = vadd.f32 %v2979_v52, %v2949_v23  ;;  %v2851_v15 = vpop.permute.xlu1 %2850  ;;  %v3247_v5 = vpop.eup %3246  ;;  %v1004_v39 = vmul.f32 %v6056_v32, %v4804_v50  ;;  %3262 = vtanh.f32 %v2703_v10  ;;  %v2704_v22 = vadd.f32 %v5445_v51, %v2480_v13 }
 0x361   :  { %v2846_v26 = vpop.permute.xlu0 %2845  ;;  %v2952_v18 = vmul.f32 %v3241_v57, %v2851_v15  ;;  %v3249_v49 = vpop.eup %3248  ;;  %v1480_v61 = vmul.f32 %v3247_v5, %v6057_v54  ;;  %v1510_v23 = vadd.f32 %v1509_v11, %v1479_v29  ;;  %v738_v9 = vmul.f32 %v5478_v0, %v6058_v47 }
 0x362   :  { %v2951_v21 = vmul.f32 %v3239_v34, %v2846_v26  ;;  %v2981_v4 = vadd.f32 %v2980_v6, %v2950_v35  ;;  %v3251_v25 = vpop.eup %3250  ;;  %v768_v55 = vadd.f32 %v767_v19, %v737_v1  ;;  %v1228_v45 = vadd.f32 %v6059_v3, %v1004_v39  ;;  %v6069_v1 = vld [vmem:[#allocation101_spill] sm:$0xff]  ;;  %v6070_v39 = vld [vmem:[#allocation40_spill] sm:$0xff] }
 0x363   :  { %v2481_v53 = vmul.f32 %v6060_v58, %v4804_v50  ;;  %3264 = vtanh.f32 %v1227_v40  ;;  %v1005_v43 = vmul.f32 %v6061_v60, %v4804_v50  ;;  %v1511_v0 = vadd.f32 %v1510_v23, %v1480_v61  ;;  %v6075_v60 = vld [vmem:[#allocation199_spill] sm:$0xff] }
 0x364   :  { %v2982_v27 = vadd.f32 %v2981_v4, %v2951_v21  ;;  %v2861_v48 = vpop.permute.xlu1 %2860  ;;  %3266 = vtanh.f32 %v2704_v22  ;;  %v769_v21 = vadd.f32 %v768_v55, %v738_v9  ;;  %v6062_v4 = vld [vmem:[#allocation8_spill] sm:$0xff]  ;;  %v263_v13 = vmul.f32 %v6065_v38, %v4804_v50  ;;  %v6071_v55 = vld [vmem:[#allocation43_spill] sm:$0xff]  ;;  %v6079_v38 = vld [vmem:[#allocation42_spill] sm:$0xff] }
 0x365   :  { %v2856_v20 = vpop.permute.xlu0 %2855  ;;  %v2954_v52 = vmul.f32 %v3249_v49, %v2861_v48  ;;  %v3253_v6 = vpop.eup %3252  ;;  %v2705_v34 = vadd.f32 %v5443_v30, %v2481_v53  ;;  %3268 = vtanh.f32 %v1228_v45  ;;  %v2482_v57 = vmul.f32 %v6062_v4, %v4804_v50  ;;  %v6064_v30 = vld [vmem:[#allocation194_spill] sm:$0xff]  ;;  %v6072_v53 = vld [vmem:[#allocation196_spill] sm:$0xff] }
 0x366   :  { %v2953_v28 = vmul.f32 %v3245_v8, %v2856_v20  ;;  %v2983_v16 = vadd.f32 %v2982_v27, %v2952_v18  ;;  %v3255_v56 = vpop.eup %3254  ;;  %v1229_v11 = vadd.f32 %v6063_v12, %v1005_v43  ;;  %v6066_v48 = vld [vmem:[#allocation98_spill] sm:$0xff]  ;;  %v740_v32 = vmul.f32 %v5504_v33, %v6069_v1 }
 0x367   :  { %v3257_v26 = vpop.eup %3256  ;;  %v1481_v18 = vmul.f32 %v3255_v56, %v6064_v30  ;;  %v739_v20 = vmul.f32 %v5472_v59, %v6066_v48  ;;  %3270 = vtanh.f32 %v2705_v34  ;;  %v2706_v5 = vadd.f32 %v5469_v31, %v2482_v57  ;;  %v6068_v49 = vld [vmem:[#allocation70_spill] sm:$0xff]  ;;  %v6074_v34 = vld [vmem:[#allocation100_spill] sm:$0xff] }
 0x368   :  { %v2984_v46 = vadd.f32 %v2983_v16, %v2953_v28  ;;  %v2871_v14 = vpop.permute.xlu1 %2870  ;;  %v3259_v10 = vpop.eup %3258  ;;  %v487_v42 = vadd.f32 %v6068_v49, %v263_v13  ;;  %v2483_v22 = vmul.f32 %v6070_v39, %v4804_v50  ;;  %3272 = vtanh.f32 %v1229_v11 }
 0x369   :  { %v2866_v41 = vpop.permute.xlu0 %2865  ;;  %v2956_v62 = vmul.f32 %v3253_v6, %v2871_v14  ;;  %v3261_v19 = vpop.eup %3260  ;;  %v1482_v40 = vmul.f32 %v3259_v10, %v6067_v7  ;;  %v1512_v17 = vadd.f32 %v1511_v0, %v1481_v18  ;;  %v770_v59 = vadd.f32 %v769_v21, %v739_v20 }
 0x36a   :  { %v2955_v35 = vmul.f32 %v3251_v25, %v2866_v41  ;;  %v2985_v51 = vadd.f32 %v2984_v46, %v2954_v52  ;;  %v3263_v16 = vpop.eup %3262  ;;  %v2707_v52 = vadd.f32 %v5467_v2, %v2483_v22  ;;  %3274 = vtanh.f32 %v2706_v5 }
 0x36b   :  { %v1513_v25 = vadd.f32 %v1512_v17, %v1482_v40  ;;  %3276 = vtanh.f32 %v487_v42  ;;  %v2484_v33 = vmul.f32 %v6071_v55, %v4804_v50  ;;  %v771_v58 = vadd.f32 %v770_v59, %v740_v32 }
 0x36c   :  { %v2986_v15 = vadd.f32 %v2985_v51, %v2955_v35  ;;  %v2881_v63 = vpop.permute.xlu1 %2880  ;;  %v6073_v51 = vld [vmem:[#allocation41_spill] sm:$0xff]  ;;  %3278 = vtanh.f32 %v2707_v52  ;;  %v741_v56 = vmul.f32 %v5488_v37, %v6074_v34  ;;  %v2488_v13 = vmul.f32 %v6079_v38, %v4804_v50 }
 0x36d   :  { %v2876_v36 = vpop.permute.xlu0 %2875  ;;  %v2958_v29 = vmul.f32 %v3261_v19, %v2881_v63  ;;  %v3265_v46 = vpop.eup %3264  ;;  %v2485_v6 = vmul.f32 %v6073_v51, %v4804_v50  ;;  %v2708_v2 = vadd.f32 %v5486_v24, %v2484_v33  ;;  %v6078_v24 = vld [vmem:[#allocation10_spill] sm:$0xff] }
 0x36e   :  { %v2957_v27 = vmul.f32 %v3257_v26, %v2876_v36  ;;  %v2987_v8 = vadd.f32 %v2986_v15, %v2956_v62  ;;  %v3267_v9 = vpop.eup %3266  ;;  %v1483_v14 = vmul.f32 %v3265_v46, %v6072_v53  ;;  %v6076_v26 = vld [vmem:[#allocation13_spill] sm:$0xff]  ;;  %v6077_v36 = vld [vmem:[#allocation103_spill] sm:$0xff]  ;;  %v772_v12 = vadd.f32 %v771_v58, %v741_v56 }
 0x36f   :  { %v3269_v35 = vpop.eup %3268  ;;  %v2486_v21 = vmul.f32 %v6076_v26, %v4804_v50  ;;  %v742_v10 = vmul.f32 %v5526_v44, %v6077_v36  ;;  %v2487_v30 = vmul.f32 %v6078_v24, %v4804_v50  ;;  %3280 = vtanh.f32 %v2708_v2  ;;  %v6080_v44 = vld [vmem:[#allocation198_spill] sm:$0xff] }
 0x370   :  { %v2988_v28 = vadd.f32 %v2987_v8, %v2957_v27  ;;  %v2886_v54 = vpop.permute.xlu1 %2885  ;;  %v1484_v43 = vmul.f32 %v3269_v35, %v6075_v60  ;;  %v1514_v0 = vadd.f32 %v1513_v25, %v1483_v14 }
 0x371   :  { %v2660_v61 = vpop.permute.xlu0 %2659  ;;  %v2959_v23 = vmul.f32 %v3263_v16, %v2886_v54  ;;  %v3271_v15 = vpop.eup %3270  ;;  %v773_v7 = vadd.f32 %v772_v12, %v742_v10  ;;  %v6081_v16 = vld [vmem:[#allocation102_spill] sm:$0xff] }
 0x372   :  { %v2989_v31 = vadd.f32 %v2988_v28, %v2958_v29  ;;  %v2709_v4 = vadd.f32 %v2660_v61, %v2485_v6  ;;  %v3273_v18 = vpop.eup %3272  ;;  %v1515_v27 = vadd.f32 %v1514_v0, %v1484_v43  ;;  %v6082_v61 = vld [vmem:[#allocation104_spill] sm:$0xff] }
 0x373   :  { %v1485_v40 = vmul.f32 %v3273_v18, %v6080_v44 }
 0x374   :  { %v2990_v47 = vadd.f32 %v2989_v31, %v2959_v23  ;;  %v2891_v3 = vpop.permute.xlu1 %2890  ;;  %v3275_v19 = vpop.eup %3274  ;;  %3282 = vtanh.f32 %v2709_v4 }
 0x375   :  { %v2665_v45 = vpop.permute.xlu0 %2664  ;;  %v2960_v41 = vmul.f32 %v3267_v9, %v2891_v3  ;;  %v3277_v29 = vpop.eup %3276  ;;  %v1516_v42 = vadd.f32 %v1515_v27, %v1485_v40  ;;  %v6083_v9 = vld [vmem:[#allocation201_spill] sm:$0xff] }
 0x376   :  { %v2710_v37 = vadd.f32 %v2665_v45, %v2486_v21  ;;  %v743_v49 = vmul.f32 %v3277_v29, %v6081_v16  ;;  %v3279_v32 = vpop.eup %3278  ;;  %v2259_v55 = vrot.slane %v6083_v9, 4  ;;  %v3009_v16 = vstv %s3029_s3 }
 0x377   :  { %v2991_v62 = vadd.f32 %v2990_v47, %v2960_v41  ;;  %v1517_v23 = vrot.slane %v1516_v42, 4 }
 0x378   :  { %v2896_v57 = vpop.permute.xlu1 %2895  ;;  %3284 = vtanh.f32 %v2710_v37  ;;  %v774_v50 = vadd.f32 %v773_v7, %v743_v49  ;;  %v2260_v6 = vadd.f32 %v2259_v55, %v6083_v9  ;;  %v6084_v49 = vld [vmem:[#allocation204_spill] sm:$0xff] }
 0x379   :  { %v2670_v63 = vpop.permute.xlu0 %2669  ;;  %v2961_v11 = vmul.f32 %v3271_v15, %v2896_v57  ;;  %v3281_v52 = vpop.eup %3280  ;;  %v1518_v45 = vadd.f32 %v1517_v23, %v1516_v42 }
 0x37a   :  { %v2711_v48 = vadd.f32 %v2670_v63, %v2487_v30  ;;  %v775_v47 = vrot.slane %v774_v50, 4  ;;  %v2261_v57 = vrot.slane %v2260_v6, 2 }
 0x37b   :  { %v2992_v8 = vadd.f32 %v2991_v62, %v2961_v11  ;;  %v1519_v60 = vrot.slane %v1518_v45, 2 }
 0x37c   :  { %v2901_v20 = vpop.permute.xlu1 %2900  ;;  %3286 = vtanh.f32 %v2711_v48  ;;  %v776_v51 = vadd.f32 %v775_v47, %v774_v50  ;;  %v2262_v30 = vadd.f32 %v2261_v57, %v2260_v6 }
 0x37d   :  { %v2675_v5 = vpop.permute.xlu0 %2674  ;;  %v2962_v17 = vmul.f32 %v3275_v19, %v2901_v20  ;;  %v1520_v12 = vadd.f32 %v1519_v60, %v1518_v45 }
 0x37e   :  { %v2712_v28 = vadd.f32 %v2675_v5, %v2488_v13  ;;  %v3283_v3 = vpop.eup %3282  ;;  %v777_v4 = vrot.slane %v776_v51, 2  ;;  %v2263_v19 = vrot.slane %v2262_v30, 1 }
 0x37f   :  { %v2993_v1 = vadd.f32 %v2992_v8, %v2962_v17  ;;  %v1521_v18 = vrot.slane %v1520_v12, 1 }
 0x380   :  { %v2906_v39 = vpop.permute.xlu1 %2905  ;;  %3288 = vtanh.f32 %v2712_v28  ;;  %v778_v24 = vadd.f32 %v777_v4, %v776_v51  ;;  %v2264_v5 = vadd.f32 %v2263_v19, %v2262_v30 }
 0x381   :  { %v2680_v22 = vpop.permute.xlu0 %2679  ;;  %v2963_v54 = vmul.f32 %v3279_v32, %v2906_v39  ;;  %v1522_v13 = vadd.f32 %v1521_v18, %v1520_v12 }
 0x382   :  { %v2713_v59 = vadd.f32 %v2680_v22, %v6082_v61  ;;  %v3285_v14 = vpop.eup %3284  ;;  %v779_v8 = vrot.slane %v778_v24, 1 }
 0x383   :  { %v2994_v31 = vadd.f32 %v2993_v1, %v2963_v54  ;;  %v3011_v1 = vstv %s3030_s28 }
 0x384   :  { %3290 = vtanh.f32 %v2713_v59  ;;  %v2916_v46 = vpop.permute.xlu1 %2915  ;;  %v780_v20 = vadd.f32 %v779_v8, %v778_v24 }
 0x385   :  { %v2911_v25 = vpop.permute.xlu0 %2910  ;;  %v2965_v58 = vmul.f32 %v3283_v3, %v2916_v46 }
 0x386   :  { %v2964_v33 = vmul.f32 %v3281_v52, %v2911_v25  ;;  %v3287_v56 = vpop.eup %3286  ;;  %v1523_v40 = vadd.f32 %v1522_v13, %v780_v20 }
 0x388   :  { %v2995_v53 = vadd.f32 %v2994_v31, %v2964_v33  ;;  %v2926_v41 = vpop.permute.xlu1 %2925  ;;  %v2265_v17 = vadd.f32 %v2264_v5, %v1523_v40 }
 0x389   :  { %v2921_v35 = vpop.permute.xlu0 %2920  ;;  %v2967_v43 = vmul.f32 %v3287_v56, %v2926_v41 }
 0x38a   :  { %v2966_v2 = vmul.f32 %v3285_v14, %v2921_v35  ;;  %v2996_v34 = vadd.f32 %v2995_v53, %v2965_v58  ;;  %v3289_v62 = vpop.eup %3288 }
 0x38c   :  { %v2997_v0 = vadd.f32 %v2996_v34, %v2966_v2  ;;  %v2936_v15 = vpop.permute.xlu1 %2935 }
 0x38d   :  { %v2931_v26 = vpop.permute.xlu0 %2930 }
 0x38e   :  { %v3291_v21 = vpop.eup %3290  ;;  %v2968_v63 = vmul.f32 %v3289_v62, %v2931_v26  ;;  %v2998_v36 = vadd.f32 %v2997_v0, %v2967_v43 }
 0x38f   :  { %v2969_v10 = vmul.f32 %v3291_v21, %v2936_v15 }
 0x390   :  { %v2999_v11 = vadd.f32 %v2998_v36, %v2968_v63 }
 0x392   :  { %v3000_v37 = vadd.f32 %v2999_v11, %v2969_v10 }
 0x394   :  { %v3001_v27 = vrot.slane %v3000_v37, 4 }
 0x396   :  { %v3002_v38 = vadd.f32 %v3001_v27, %v3000_v37 }
 0x398   :  { %v3003_v48 = vrot.slane %v3002_v38, 2 }
 0x39a   :  { %v3004_v7 = vadd.f32 %v3003_v48, %v3002_v38 }
 0x39c   :  { %v3005_v44 = vrot.slane %v3004_v7, 1 }
 0x39e   :  { %v3006_v29 = vadd.f32 %v3005_v44, %v3004_v7 }
 0x3a0   :  { %v3007_v28 = vadd.f32 %v3006_v29, %v2265_v17 }
 0x3a2   :  { %v3008_v42 = vadd.f32 %v3007_v28, %v6084_v49 }
 0x3a4   :  { %v3010_v32 = vmul.f32 %v3009_v16, %v3008_v42 }
 0x3a6   :  { %v3012_v39 = vadd.f32 %v3011_v1, %v3010_v32 }
 0x3a8   :  { %3013 = vst [vmem:[#allocation4] sm:$0x1] %v3012_v39 }
 0x3a9   :  { %3315 = shalt.err (!%p3312_p9)
}
 0x3aa   :  { %s3316_s10 = scalar_lea.hbm %s5654_s5, 16 }
 0x3ab   :  { %p3317_p10 = scmp.ne.s32.totalorder %s5654_s5, %s3316_s10  ;;  %p3320_p11 = scmp.lt.u32.totalorder %s3316_s10, %s5654_s5 }
 0x3ad   :  { %p3322_p12 = pnand %p3320_p11, %p3317_p10 }
 0x3af   :  { %3325 = shalt.err (!%p3322_p12)
}
 0x3b0   :  { %3023 = dma.vmem_to_hbm [thread:$0]  %s3021_s30, 16, %s5654_s5, [#allocation5]  }
 0x3b1   :  { %3328 = dma.done.wait [#allocation5], 16  }
 0x3b2   :  { %3329 = vsyncadd [#allocation5], 4294967280 }
 0x3b3   :  { %3027 = vsyncpa [#allocation5], 1 }

</bundles_post_ra>
